<compile_context>
chip_gen: v7x
topology: tpu7x:2x2x1
jax: 0.10.0
libtpu: 0.0.40
codegen_flags: <defaults>
</compile_context>

<pallas_src>
import math

import jax
import jax.numpy as jnp
from jax.experimental import pallas as pl
from jax.experimental.pallas import tpu as pltpu  # noqa: F401  (TPU backend)

S = 4
T = 8
C = 32          # dim_c
H = 4           # attention heads
HD = C // H     # head dim
L = 2           # transformer encoder layers
N = S ** 3      # nodes per graph == flattened frame size
F_IN = 5        # GNN node-feature dim
FF = 4 * C      # transformer feed-forward dim
LN_EPS = 1e-5
NEG_INF = -1e30


def _layernorm(x, g, b):
    mu = jnp.mean(x, axis=-1, keepdims=True)
    var = jnp.mean((x - mu) ** 2, axis=-1, keepdims=True)
    return (x - mu) * jax.lax.rsqrt(var + LN_EPS) * g + b


# --------------------------- fused forward kernel -----------------------------
def fused_kernel(feat_ref, adjb_ref, acts_ref, ss_ref, pooln_ref, pools_ref, bias_ref,
                 w_in_ref, b_in_ref, wl_ref, bl_ref, wr_ref, gg_ref, gb_ref,
                 actw_ref, actb_ref,
                 qkvw_ref, qkvb_ref, ow_ref, ob_ref,
                 ln1g_ref, ln1b_ref, ln2g_ref, ln2b_ref,
                 f1w_ref, f1b_ref, f2w_ref, f2b_ref,
                 scw_ref, scb_ref,
                 out_ref):
    # ---------------- GNN branch: whole batch in single GEMMs ----------------
    feat = feat_ref[...]                                               # (B*N, F_IN)
    x = jnp.dot(feat, w_in_ref[...], preferred_element_type=jnp.float32) + b_in_ref[...]
    # SAGEConv(aggr='mean'): block-diagonal row-normalised adjacency aggregates the
    # neighbours of every graph with one (B*N, B*N) @ (B*N, C) matmul.
    neigh = jnp.dot(adjb_ref[...], x, preferred_element_type=jnp.float32)
    hg = (jnp.dot(neigh, wl_ref[...], preferred_element_type=jnp.float32) + bl_ref[...]
          + jnp.dot(x, wr_ref[...], preferred_element_type=jnp.float32))
    hg = jnp.maximum(hg, 0.0)
    hg = _layernorm(hg, gg_ref[...], gb_ref[...])
    gnn_mean = jnp.dot(pooln_ref[...], hg,
                       preferred_element_type=jnp.float32)             # (B, C)

    # ------------- Transformer branch (norm_first=True, batch folded in rows) -------
    a = acts_ref[...]                                                  # (B*(T-1), N)
    xt = jnp.dot(a, actw_ref[...], preferred_element_type=jnp.float32) + actb_ref[...]

    attn_bias = bias_ref[...]                 # (BT, BT): 0 within a batch, -1e30 across
    scale = 1.0 / math.sqrt(HD)
    for l in range(L):                        # pre-norm encoder layers (no final norm)
        # --- self-attention block ---
        y = _layernorm(xt, ln1g_ref[l], ln1b_ref[l])
        qkv = jnp.dot(y, qkvw_ref[l], preferred_element_type=jnp.float32) + qkvb_ref[l]
        heads = []
        for h in range(H):                    # static 4-way unroll, pure lane slices
            q = qkv[:, h * HD:(h + 1) * HD]
            k = qkv[:, C + h * HD:C + (h + 1) * HD]
            v = qkv[:, 2 * C + h * HD:2 * C + (h + 1) * HD]
            s = jax.lax.dot_general(q, k, (((1,), (1,)), ((), ())),
                                    preferred_element_type=jnp.float32) * scale
            s = s + attn_bias
            s = s - jnp.max(s, axis=-1, keepdims=True)
            e = jnp.exp(s)
            attn = e * pl.reciprocal(jnp.sum(e, axis=-1, keepdims=True), approx=True)
            heads.append(jnp.dot(attn, v, preferred_element_type=jnp.float32))
        o = jnp.concatenate(heads, axis=-1)                            # (BT, C)
        o = jnp.dot(o, ow_ref[l], preferred_element_type=jnp.float32) + ob_ref[l]
        xt = xt + o
        # --- feed-forward block ---
        z = _layernorm(xt, ln2g_ref[l], ln2b_ref[l])
        hid = jnp.maximum(
            jnp.dot(z, f1w_ref[l], preferred_element_type=jnp.float32) + f1b_ref[l], 0.0)
        xt = xt + jnp.dot(hid, f2w_ref[l], preferred_element_type=jnp.float32) + f2b_ref[l]

    act_emb = jnp.dot(pools_ref[...], xt,
                      preferred_element_type=jnp.float32)              # (B, C)

    # ---------------- moves_left scalar branch ----------------
    mv = jnp.maximum(ss_ref[...] * scw_ref[...] + scb_ref[...], 0.0)   # (B,1)*(1,C)->(B,C)

    # single lane-merged output slab: [gnn_mean | act_emb | mv]  -> one store / one DMA
    out_ref[...] = jnp.concatenate([gnn_mean, act_emb, mv], axis=-1)   # (B, 3C)


def fused_pallas(feat_flat, adj_block, acts_flat, ss, pool_nodes, pool_seq, attn_bias, p):
    B = ss.shape[0]
    # Single invocation (no grid): every operand is a whole-array VMEM block;
    # total resident footprint is well under 1 MiB on every TPU generation.
    return pl.pallas_call(
        fused_kernel,
        out_shape=jax.ShapeDtypeStruct((B, 3 * C), jnp.float32),
    )(feat_flat, adj_block, acts_flat, ss, pool_nodes, pool_seq, attn_bias,
      p["gnn_w_in"], p["gnn_b_in"], p["sage_wl"], p["sage_bl"], p["sage_wr"],
      p["gnn_ln_g"], p["gnn_ln_b"],
      p["act_w"], p["act_b"],
      p["qkv_w"], p["qkv_b"], p["out_w"], p["out_b"],
      p["ln1_g"], p["ln1_b"], p["ln2_g"], p["ln2_b"],
      p["ff1_w"], p["ff1_b"], p["ff2_w"], p["ff2_b"],
      p["sc_w"], p["sc_b"])


# ------------------------------ parameters ------------------------------------
def init_params(key):
    ks = jax.random.split(key, 16)

    def w(k, shape, scale=0.05):
        return scale * jax.random.normal(k, shape, jnp.float32)

    return {
        # DynamicGNNLine
        "gnn_w_in": w(ks[0], (F_IN, C)),
        "gnn_b_in": w(ks[1], (1, C)),
        "sage_wl": w(ks[2], (C, C)),
        "sage_bl": w(ks[3], (1, C)),
        "sage_wr": w(ks[4], (C, C)),
        "gnn_ln_g": jnp.ones((1, C), jnp.float32),
        "gnn_ln_b": jnp.zeros((1, C), jnp.float32),
        # act_lin : Linear(S^3, C)
        "act_w": w(ks[5], (N, C)),
        "act_b": w(ks[6], (1, C)),
        # TransformerEncoder (L layers, stacked along leading axis)
        "qkv_w": w(ks[7], (L, C, 3 * C)),
        "qkv_b": w(ks[8], (L, 1, 3 * C)),
        "out_w": w(ks[9], (L, C, C)),
        "out_b": w(ks[10], (L, 1, C)),
        "ln1_g": jnp.ones((L, 1, C), jnp.float32),
        "ln1_b": jnp.zeros((L, 1, C), jnp.float32),
        "ln2_g": jnp.ones((L, 1, C), jnp.float32),
        "ln2_b": jnp.zeros((L, 1, C), jnp.float32),
        "ff1_w": w(ks[11], (L, C, FF)),
        "ff1_b": w(ks[12], (L, 1, FF)),
        "ff2_w": w(ks[13], (L, FF, C)),
        "ff2_b": w(ks[14], (L, 1, C)),
        # scalar : Linear(1, C)
        "sc_w": w(ks[15], (1, C)),
        "sc_b": jnp.zeros((1, C), jnp.float32),
    }


# ------------------------------ forward (wrapper) ------------------------------
def build_grid_adjacency():
    idx = jnp.arange(N)
    ii = idx // (S * S)
    jj = (idx // S) % S
    kk = idx % S
    dist = (jnp.abs(ii[:, None] - ii[None, :])
            + jnp.abs(jj[:, None] - jj[None, :])
            + jnp.abs(kk[:, None] - kk[None, :]))
    a = (dist == 1).astype(jnp.float32)
    adj = a / jnp.sum(a, axis=1, keepdims=True)          # row-normalized -> mean aggr
    coords = jnp.stack([ii, jj, kk], axis=-1).astype(jnp.float32) / (S - 1)
    return adj, coords


def hybrid_gnn_torso_att(params, xx, ss, adj, coords):
    B = xx.shape[0]
    BT = B * (T - 1)
    xx = xx.astype(jnp.float32)
    ss = ss.astype(jnp.float32)

    # ----- graph node features of the current frame: [value, i, j, k, moves_left] -----
    vals = xx[:, 0].reshape(B, N, 1)
    coords_b = jnp.broadcast_to(coords[None], (B, N, 3))
    ss_b = jnp.broadcast_to(ss[:, None, :1], (B, N, 1))
    feat_flat = jnp.concatenate([vals, coords_b, ss_b], axis=-1).reshape(B * N, F_IN)

    # ----- past-action sequence, batch folded into rows (no in-kernel reshapes) -----
    acts_flat = xx[:, 1:].reshape(BT, N)                              # (B*(T-1), S^3)

    # ----- constant helper matrices (plain JAX glue) -----
    adj_block = jnp.kron(jnp.eye(B, dtype=jnp.float32), adj)          # (B*N, B*N)
    pool_nodes = jnp.kron(jnp.eye(B, dtype=jnp.float32),
                          jnp.full((1, N), 1.0 / N, jnp.float32))     # (B, B*N)
    pool_seq = jnp.kron(jnp.eye(B, dtype=jnp.float32),
                        jnp.full((1, T - 1), 1.0 / (T - 1), jnp.float32))  # (B, BT)
    tok_b = jnp.arange(BT) // (T - 1)
    attn_bias = jnp.where(tok_b[:, None] == tok_b[None, :],
                          0.0, NEG_INF).astype(jnp.float32)           # (BT, BT)

    # ----- single fused Pallas kernel -----
    emb = fused_pallas(feat_flat, adj_block, acts_flat, ss,
                       pool_nodes, pool_seq, attn_bias, params)       # (B, 3C)

    gnn_emb = jnp.broadcast_to(emb[:, None, :C], (B, 48, C))          # repeat(48, 1)
    act_emb = emb[:, None, C:2 * C]
    mv_emb = emb[:, None, 2 * C:]
    return jnp.concatenate([gnn_emb, act_emb, mv_emb], axis=1)        # (B, 50, C)


if __name__ == "__main__":
    key = jax.random.PRNGKey(0)
    kx, ks, kp = jax.random.split(key, 3)
    B = 2
    xx = jax.random.normal(kx, (B, T, S, S, S), jnp.float32)          # (2, 8, 4, 4, 4)
    ss = jax.random.uniform(ks, (B, 1), jnp.float32)                  # (2, 1)

    params = init_params(kp)
    adj, coords = build_grid_adjacency()

    out = hybrid_gnn_torso_att(params, xx, ss, adj, coords)
    out = jax.block_until_ready(out)
    assert out.shape == (B, 48 + 2, C), out.shape
    assert jnp.all(jnp.isfinite(out))
    print("KERNEL_OK")
</pallas_src>

<mosaic_0001>
module attributes {stable_mosaic.version = 11 : i64} {
  func.func @fused_kernel(%arg0: memref<128x5xf32, #tpu.memory_space<vmem>>, %arg1: memref<128x128xf32, #tpu.memory_space<vmem>>, %arg2: memref<14x64xf32, #tpu.memory_space<vmem>>, %arg3: memref<2x1xf32, #tpu.memory_space<vmem>>, %arg4: memref<2x128xf32, #tpu.memory_space<vmem>>, %arg5: memref<2x14xf32, #tpu.memory_space<vmem>>, %arg6: memref<14x14xf32, #tpu.memory_space<vmem>>, %arg7: memref<5x32xf32, #tpu.memory_space<vmem>>, %arg8: memref<1x32xf32, #tpu.memory_space<vmem>>, %arg9: memref<32x32xf32, #tpu.memory_space<vmem>>, %arg10: memref<1x32xf32, #tpu.memory_space<vmem>>, %arg11: memref<32x32xf32, #tpu.memory_space<vmem>>, %arg12: memref<1x32xf32, #tpu.memory_space<vmem>>, %arg13: memref<1x32xf32, #tpu.memory_space<vmem>>, %arg14: memref<64x32xf32, #tpu.memory_space<vmem>>, %arg15: memref<1x32xf32, #tpu.memory_space<vmem>>, %arg16: memref<2x32x96xf32, #tpu.memory_space<vmem>>, %arg17: memref<2x1x96xf32, #tpu.memory_space<vmem>>, %arg18: memref<2x32x32xf32, #tpu.memory_space<vmem>>, %arg19: memref<2x1x32xf32, #tpu.memory_space<vmem>>, %arg20: memref<2x1x32xf32, #tpu.memory_space<vmem>>, %arg21: memref<2x1x32xf32, #tpu.memory_space<vmem>>, %arg22: memref<2x1x32xf32, #tpu.memory_space<vmem>>, %arg23: memref<2x1x32xf32, #tpu.memory_space<vmem>>, %arg24: memref<2x32x128xf32, #tpu.memory_space<vmem>>, %arg25: memref<2x1x128xf32, #tpu.memory_space<vmem>>, %arg26: memref<2x128x32xf32, #tpu.memory_space<vmem>>, %arg27: memref<2x1x32xf32, #tpu.memory_space<vmem>>, %arg28: memref<1x32xf32, #tpu.memory_space<vmem>>, %arg29: memref<1x32xf32, #tpu.memory_space<vmem>>, %arg30: memref<2x96xf32, #tpu.memory_space<vmem>>) attributes {dimension_semantics = [], scalar_prefetch = 0 : i64, scratch_operands = 0 : i64, tpu.core_type = #tpu.core_type<tc>} {
    %c0 = arith.constant 0 : index
    %c0_0 = arith.constant 0 : index
    %0 = vector.load %arg0[%c0, %c0_0] : memref<128x5xf32, #tpu.memory_space<vmem>>, vector<128x5xf32>
    %c0_1 = arith.constant 0 : index
    %c0_2 = arith.constant 0 : index
    %1 = vector.load %arg7[%c0_1, %c0_2] : memref<5x32xf32, #tpu.memory_space<vmem>>, vector<5x32xf32>
    %cst = arith.constant dense<0.000000e+00> : vector<128x32xf32>
    %2 = tpu.matmul %0, %1, %cst {dimension_numbers = #tpu.dot_dimension_numbers<[1], [0], [0], [1], [0, 0, 1, 1], [], []>} : vector<128x5xf32>, vector<5x32xf32>, vector<128x32xf32> -> vector<128x32xf32>
    %c0_3 = arith.constant 0 : index
    %c0_4 = arith.constant 0 : index
    %3 = vector.load %arg8[%c0_3, %c0_4] : memref<1x32xf32, #tpu.memory_space<vmem>>, vector<1x32xf32>
    %4 = vector.broadcast %3 : vector<1x32xf32> to vector<128x32xf32>
    %5 = arith.addf %2, %4 : vector<128x32xf32>
    %c0_5 = arith.constant 0 : index
    %c0_6 = arith.constant 0 : index
    %6 = vector.load %arg1[%c0_5, %c0_6] : memref<128x128xf32, #tpu.memory_space<vmem>>, vector<128x128xf32>
    %cst_7 = arith.constant dense<0.000000e+00> : vector<128x32xf32>
    %7 = tpu.matmul %6, %5, %cst_7 {dimension_numbers = #tpu.dot_dimension_numbers<[1], [0], [0], [1], [0, 0, 1, 1], [], []>} : vector<128x128xf32>, vector<128x32xf32>, vector<128x32xf32> -> vector<128x32xf32>
    %c0_8 = arith.constant 0 : index
    %c0_9 = arith.constant 0 : index
    %8 = vector.load %arg9[%c0_8, %c0_9] : memref<32x32xf32, #tpu.memory_space<vmem>>, vector<32x32xf32>
    %cst_10 = arith.constant dense<0.000000e+00> : vector<128x32xf32>
    %9 = tpu.matmul %7, %8, %cst_10 {dimension_numbers = #tpu.dot_dimension_numbers<[1], [0], [0], [1], [0, 0, 1, 1], [], []>} : vector<128x32xf32>, vector<32x32xf32>, vector<128x32xf32> -> vector<128x32xf32>
    %c0_11 = arith.constant 0 : index
    %c0_12 = arith.constant 0 : index
    %10 = vector.load %arg10[%c0_11, %c0_12] : memref<1x32xf32, #tpu.memory_space<vmem>>, vector<1x32xf32>
    %11 = vector.broadcast %10 : vector<1x32xf32> to vector<128x32xf32>
    %12 = arith.addf %9, %11 : vector<128x32xf32>
    %c0_13 = arith.constant 0 : index
    %c0_14 = arith.constant 0 : index
    %13 = vector.load %arg11[%c0_13, %c0_14] : memref<32x32xf32, #tpu.memory_space<vmem>>, vector<32x32xf32>
    %cst_15 = arith.constant dense<0.000000e+00> : vector<128x32xf32>
    %14 = tpu.matmul %5, %13, %cst_15 {dimension_numbers = #tpu.dot_dimension_numbers<[1], [0], [0], [1], [0, 0, 1, 1], [], []>} : vector<128x32xf32>, vector<32x32xf32>, vector<128x32xf32> -> vector<128x32xf32>
    %15 = arith.addf %12, %14 : vector<128x32xf32>
    %cst_16 = arith.constant 0.000000e+00 : f32
    %16 = vector.broadcast %cst_16 : f32 to vector<128x32xf32>
    %17 = arith.maximumf %15, %16 : vector<128x32xf32>
    %c0_17 = arith.constant 0 : index
    %c0_18 = arith.constant 0 : index
    %18 = vector.load %arg12[%c0_17, %c0_18] : memref<1x32xf32, #tpu.memory_space<vmem>>, vector<1x32xf32>
    %c0_19 = arith.constant 0 : index
    %c0_20 = arith.constant 0 : index
    %19 = vector.load %arg13[%c0_19, %c0_20] : memref<1x32xf32, #tpu.memory_space<vmem>>, vector<1x32xf32>
    %cst_21 = arith.constant dense<0.000000e+00> : vector<128xf32>
    %20 = vector.multi_reduction <add>, %17, %cst_21 [1] : vector<128x32xf32> to vector<128xf32>
    %21 = vector.shape_cast %20 : vector<128xf32> to vector<128x1xf32>
    %cst_22 = arith.constant 3.200000e+01 : f32
    %22 = vector.broadcast %cst_22 : f32 to vector<128x1xf32>
    %23 = arith.divf %21, %22 : vector<128x1xf32>
    %24 = vector.broadcast %23 : vector<128x1xf32> to vector<128x32xf32>
    %25 = arith.subf %17, %24 : vector<128x32xf32>
    %26 = arith.mulf %25, %25 : vector<128x32xf32>
    %cst_23 = arith.constant dense<0.000000e+00> : vector<128xf32>
    %27 = vector.multi_reduction <add>, %26, %cst_23 [1] : vector<128x32xf32> to vector<128xf32>
    %28 = vector.shape_cast %27 : vector<128xf32> to vector<128x1xf32>
    %cst_24 = arith.constant 3.200000e+01 : f32
    %29 = vector.broadcast %cst_24 : f32 to vector<128x1xf32>
    %30 = arith.divf %28, %29 : vector<128x1xf32>
    %31 = vector.broadcast %23 : vector<128x1xf32> to vector<128x32xf32>
    %32 = arith.subf %17, %31 : vector<128x32xf32>
    %cst_25 = arith.constant 9.99999974E-6 : f32
    %33 = vector.broadcast %cst_25 : f32 to vector<128x1xf32>
    %34 = arith.addf %30, %33 : vector<128x1xf32>
    %35 = math.rsqrt %34 : vector<128x1xf32>
    %36 = vector.broadcast %35 : vector<128x1xf32> to vector<128x32xf32>
    %37 = arith.mulf %32, %36 : vector<128x32xf32>
    %38 = vector.broadcast %18 : vector<1x32xf32> to vector<128x32xf32>
    %39 = arith.mulf %37, %38 : vector<128x32xf32>
    %40 = vector.broadcast %19 : vector<1x32xf32> to vector<128x32xf32>
    %41 = arith.addf %39, %40 : vector<128x32xf32>
    %c0_26 = arith.constant 0 : index
    %c0_27 = arith.constant 0 : index
    %42 = vector.load %arg4[%c0_26, %c0_27] : memref<2x128xf32, #tpu.memory_space<vmem>>, vector<2x128xf32>
    %cst_28 = arith.constant dense<0.000000e+00> : vector<2x32xf32>
    %43 = tpu.matmul %42, %41, %cst_28 {dimension_numbers = #tpu.dot_dimension_numbers<[1], [0], [0], [1], [0, 0, 1, 1], [], []>} : vector<2x128xf32>, vector<128x32xf32>, vector<2x32xf32> -> vector<2x32xf32>
    %c0_29 = arith.constant 0 : index
    %c0_30 = arith.constant 0 : index
    %44 = vector.load %arg2[%c0_29, %c0_30] : memref<14x64xf32, #tpu.memory_space<vmem>>, vector<14x64xf32>
    %c0_31 = arith.constant 0 : index
    %c0_32 = arith.constant 0 : index
    %45 = vector.load %arg14[%c0_31, %c0_32] : memref<64x32xf32, #tpu.memory_space<vmem>>, vector<64x32xf32>
    %cst_33 = arith.constant dense<0.000000e+00> : vector<14x32xf32>
    %46 = tpu.matmul %44, %45, %cst_33 {dimension_numbers = #tpu.dot_dimension_numbers<[1], [0], [0], [1], [0, 0, 1, 1], [], []>} : vector<14x64xf32>, vector<64x32xf32>, vector<14x32xf32> -> vector<14x32xf32>
    %c0_34 = arith.constant 0 : index
    %c0_35 = arith.constant 0 : index
    %47 = vector.load %arg15[%c0_34, %c0_35] : memref<1x32xf32, #tpu.memory_space<vmem>>, vector<1x32xf32>
    %48 = vector.broadcast %47 : vector<1x32xf32> to vector<14x32xf32>
    %49 = arith.addf %46, %48 : vector<14x32xf32>
    %c0_36 = arith.constant 0 : index
    %c0_37 = arith.constant 0 : index
    %50 = vector.load %arg6[%c0_36, %c0_37] : memref<14x14xf32, #tpu.memory_space<vmem>>, vector<14x14xf32>
    %c0_38 = arith.constant 0 : index
    %c0_39 = arith.constant 0 : index
    %c0_40 = arith.constant 0 : index
    %51 = vector.load %arg20[%c0_38, %c0_39, %c0_40] : memref<2x1x32xf32, #tpu.memory_space<vmem>>, vector<1x1x32xf32>
    %52 = vector.shape_cast %51 : vector<1x1x32xf32> to vector<1x32xf32>
    %c0_41 = arith.constant 0 : index
    %c0_42 = arith.constant 0 : index
    %c0_43 = arith.constant 0 : index
    %53 = vector.load %arg21[%c0_41, %c0_42, %c0_43] : memref<2x1x32xf32, #tpu.memory_space<vmem>>, vector<1x1x32xf32>
    %54 = vector.shape_cast %53 : vector<1x1x32xf32> to vector<1x32xf32>
    %cst_44 = arith.constant dense<0.000000e+00> : vector<14xf32>
    %55 = vector.multi_reduction <add>, %49, %cst_44 [1] : vector<14x32xf32> to vector<14xf32>
    %56 = vector.shape_cast %55 : vector<14xf32> to vector<14x1xf32>
    %cst_45 = arith.constant 3.200000e+01 : f32
    %57 = vector.broadcast %cst_45 : f32 to vector<14x1xf32>
    %58 = arith.divf %56, %57 : vector<14x1xf32>
    %59 = vector.broadcast %58 : vector<14x1xf32> to vector<14x32xf32>
    %60 = arith.subf %49, %59 : vector<14x32xf32>
    %61 = arith.mulf %60, %60 : vector<14x32xf32>
    %cst_46 = arith.constant dense<0.000000e+00> : vector<14xf32>
    %62 = vector.multi_reduction <add>, %61, %cst_46 [1] : vector<14x32xf32> to vector<14xf32>
    %63 = vector.shape_cast %62 : vector<14xf32> to vector<14x1xf32>
    %cst_47 = arith.constant 3.200000e+01 : f32
    %64 = vector.broadcast %cst_47 : f32 to vector<14x1xf32>
    %65 = arith.divf %63, %64 : vector<14x1xf32>
    %66 = vector.broadcast %58 : vector<14x1xf32> to vector<14x32xf32>
    %67 = arith.subf %49, %66 : vector<14x32xf32>
    %cst_48 = arith.constant 9.99999974E-6 : f32
    %68 = vector.broadcast %cst_48 : f32 to vector<14x1xf32>
    %69 = arith.addf %65, %68 : vector<14x1xf32>
    %70 = math.rsqrt %69 : vector<14x1xf32>
    %71 = vector.broadcast %70 : vector<14x1xf32> to vector<14x32xf32>
    %72 = arith.mulf %67, %71 : vector<14x32xf32>
    %73 = vector.broadcast %52 : vector<1x32xf32> to vector<14x32xf32>
    %74 = arith.mulf %72, %73 : vector<14x32xf32>
    %75 = vector.broadcast %54 : vector<1x32xf32> to vector<14x32xf32>
    %76 = arith.addf %74, %75 : vector<14x32xf32>
    %c0_49 = arith.constant 0 : index
    %c0_50 = arith.constant 0 : index
    %c0_51 = arith.constant 0 : index
    %77 = vector.load %arg16[%c0_49, %c0_50, %c0_51] : memref<2x32x96xf32, #tpu.memory_space<vmem>>, vector<1x32x96xf32>
    %78 = vector.shape_cast %77 : vector<1x32x96xf32> to vector<32x96xf32>
    %cst_52 = arith.constant dense<0.000000e+00> : vector<14x96xf32>
    %79 = tpu.matmul %76, %78, %cst_52 {dimension_numbers = #tpu.dot_dimension_numbers<[1], [0], [0], [1], [0, 0, 1, 1], [], []>} : vector<14x32xf32>, vector<32x96xf32>, vector<14x96xf32> -> vector<14x96xf32>
    %c0_53 = arith.constant 0 : index
    %c0_54 = arith.constant 0 : index
    %c0_55 = arith.constant 0 : index
    %80 = vector.load %arg17[%c0_53, %c0_54, %c0_55] : memref<2x1x96xf32, #tpu.memory_space<vmem>>, vector<1x1x96xf32>
    %81 = vector.shape_cast %80 : vector<1x1x96xf32> to vector<1x96xf32>
    %82 = vector.broadcast %81 : vector<1x96xf32> to vector<14x96xf32>
    %83 = arith.addf %79, %82 : vector<14x96xf32>
    %84 = vector.extract_strided_slice %83 {offsets = [0, 0], sizes = [14, 8], strides = [1, 1]} : vector<14x96xf32> to vector<14x8xf32>
    %85 = vector.extract_strided_slice %83 {offsets = [0, 32], sizes = [14, 8], strides = [1, 1]} : vector<14x96xf32> to vector<14x8xf32>
    %86 = vector.extract_strided_slice %83 {offsets = [0, 64], sizes = [14, 8], strides = [1, 1]} : vector<14x96xf32> to vector<14x8xf32>
    %cst_56 = arith.constant dense<0.000000e+00> : vector<14x14xf32>
    %87 = tpu.matmul %84, %85, %cst_56 {dimension_numbers = #tpu.dot_dimension_numbers<[1], [1], [0], [0], [0, 0, 1, 0], [], []>} : vector<14x8xf32>, vector<14x8xf32>, vector<14x14xf32> -> vector<14x14xf32>
    %cst_57 = arith.constant 0.353553385 : f32
    %88 = vector.broadcast %cst_57 : f32 to vector<14x14xf32>
    %89 = arith.mulf %87, %88 : vector<14x14xf32>
    %90 = arith.addf %89, %50 : vector<14x14xf32>
    %cst_58 = arith.constant dense<0xFF800000> : vector<14xf32>
    %91 = vector.multi_reduction <maximumf>, %90, %cst_58 [1] : vector<14x14xf32> to vector<14xf32>
    %92 = vector.shape_cast %91 : vector<14xf32> to vector<14x1xf32>
    %93 = vector.broadcast %92 : vector<14x1xf32> to vector<14x14xf32>
    %94 = arith.subf %90, %93 : vector<14x14xf32>
    %95 = math.exp %94 : vector<14x14xf32>
    %cst_59 = arith.constant dense<0.000000e+00> : vector<14xf32>
    %96 = vector.multi_reduction <add>, %95, %cst_59 [1] : vector<14x14xf32> to vector<14xf32>
    %97 = vector.shape_cast %96 : vector<14xf32> to vector<14x1xf32>
    %98 = tpu.reciprocal %97 {approx = true} : vector<14x1xf32> -> vector<14x1xf32>
    %99 = vector.broadcast %98 : vector<14x1xf32> to vector<14x14xf32>
    %100 = arith.mulf %95, %99 : vector<14x14xf32>
    %cst_60 = arith.constant dense<0.000000e+00> : vector<14x8xf32>
    %101 = tpu.matmul %100, %86, %cst_60 {dimension_numbers = #tpu.dot_dimension_numbers<[1], [0], [0], [1], [0, 0, 1, 1], [], []>} : vector<14x14xf32>, vector<14x8xf32>, vector<14x8xf32> -> vector<14x8xf32>
    %102 = vector.extract_strided_slice %83 {offsets = [0, 8], sizes = [14, 8], strides = [1, 1]} : vector<14x96xf32> to vector<14x8xf32>
    %103 = vector.extract_strided_slice %83 {offsets = [0, 40], sizes = [14, 8], strides = [1, 1]} : vector<14x96xf32> to vector<14x8xf32>
    %104 = vector.extract_strided_slice %83 {offsets = [0, 72], sizes = [14, 8], strides = [1, 1]} : vector<14x96xf32> to vector<14x8xf32>
    %cst_61 = arith.constant dense<0.000000e+00> : vector<14x14xf32>
    %105 = tpu.matmul %102, %103, %cst_61 {dimension_numbers = #tpu.dot_dimension_numbers<[1], [1], [0], [0], [0, 0, 1, 0], [], []>} : vector<14x8xf32>, vector<14x8xf32>, vector<14x14xf32> -> vector<14x14xf32>
    %cst_62 = arith.constant 0.353553385 : f32
    %106 = vector.broadcast %cst_62 : f32 to vector<14x14xf32>
    %107 = arith.mulf %105, %106 : vector<14x14xf32>
    %108 = arith.addf %107, %50 : vector<14x14xf32>
    %cst_63 = arith.constant dense<0xFF800000> : vector<14xf32>
    %109 = vector.multi_reduction <maximumf>, %108, %cst_63 [1] : vector<14x14xf32> to vector<14xf32>
    %110 = vector.shape_cast %109 : vector<14xf32> to vector<14x1xf32>
    %111 = vector.broadcast %110 : vector<14x1xf32> to vector<14x14xf32>
    %112 = arith.subf %108, %111 : vector<14x14xf32>
    %113 = math.exp %112 : vector<14x14xf32>
    %cst_64 = arith.constant dense<0.000000e+00> : vector<14xf32>
    %114 = vector.multi_reduction <add>, %113, %cst_64 [1] : vector<14x14xf32> to vector<14xf32>
    %115 = vector.shape_cast %114 : vector<14xf32> to vector<14x1xf32>
    %116 = tpu.reciprocal %115 {approx = true} : vector<14x1xf32> -> vector<14x1xf32>
    %117 = vector.broadcast %116 : vector<14x1xf32> to vector<14x14xf32>
    %118 = arith.mulf %113, %117 : vector<14x14xf32>
    %cst_65 = arith.constant dense<0.000000e+00> : vector<14x8xf32>
    %119 = tpu.matmul %118, %104, %cst_65 {dimension_numbers = #tpu.dot_dimension_numbers<[1], [0], [0], [1], [0, 0, 1, 1], [], []>} : vector<14x14xf32>, vector<14x8xf32>, vector<14x8xf32> -> vector<14x8xf32>
    %120 = vector.extract_strided_slice %83 {offsets = [0, 16], sizes = [14, 8], strides = [1, 1]} : vector<14x96xf32> to vector<14x8xf32>
    %121 = vector.extract_strided_slice %83 {offsets = [0, 48], sizes = [14, 8], strides = [1, 1]} : vector<14x96xf32> to vector<14x8xf32>
    %122 = vector.extract_strided_slice %83 {offsets = [0, 80], sizes = [14, 8], strides = [1, 1]} : vector<14x96xf32> to vector<14x8xf32>
    %cst_66 = arith.constant dense<0.000000e+00> : vector<14x14xf32>
    %123 = tpu.matmul %120, %121, %cst_66 {dimension_numbers = #tpu.dot_dimension_numbers<[1], [1], [0], [0], [0, 0, 1, 0], [], []>} : vector<14x8xf32>, vector<14x8xf32>, vector<14x14xf32> -> vector<14x14xf32>
    %cst_67 = arith.constant 0.353553385 : f32
    %124 = vector.broadcast %cst_67 : f32 to vector<14x14xf32>
    %125 = arith.mulf %123, %124 : vector<14x14xf32>
    %126 = arith.addf %125, %50 : vector<14x14xf32>
    %cst_68 = arith.constant dense<0xFF800000> : vector<14xf32>
    %127 = vector.multi_reduction <maximumf>, %126, %cst_68 [1] : vector<14x14xf32> to vector<14xf32>
    %128 = vector.shape_cast %127 : vector<14xf32> to vector<14x1xf32>
    %129 = vector.broadcast %128 : vector<14x1xf32> to vector<14x14xf32>
    %130 = arith.subf %126, %129 : vector<14x14xf32>
    %131 = math.exp %130 : vector<14x14xf32>
    %cst_69 = arith.constant dense<0.000000e+00> : vector<14xf32>
    %132 = vector.multi_reduction <add>, %131, %cst_69 [1] : vector<14x14xf32> to vector<14xf32>
    %133 = vector.shape_cast %132 : vector<14xf32> to vector<14x1xf32>
    %134 = tpu.reciprocal %133 {approx = true} : vector<14x1xf32> -> vector<14x1xf32>
    %135 = vector.broadcast %134 : vector<14x1xf32> to vector<14x14xf32>
    %136 = arith.mulf %131, %135 : vector<14x14xf32>
    %cst_70 = arith.constant dense<0.000000e+00> : vector<14x8xf32>
    %137 = tpu.matmul %136, %122, %cst_70 {dimension_numbers = #tpu.dot_dimension_numbers<[1], [0], [0], [1], [0, 0, 1, 1], [], []>} : vector<14x14xf32>, vector<14x8xf32>, vector<14x8xf32> -> vector<14x8xf32>
    %138 = vector.extract_strided_slice %83 {offsets = [0, 24], sizes = [14, 8], strides = [1, 1]} : vector<14x96xf32> to vector<14x8xf32>
    %139 = vector.extract_strided_slice %83 {offsets = [0, 56], sizes = [14, 8], strides = [1, 1]} : vector<14x96xf32> to vector<14x8xf32>
    %140 = vector.extract_strided_slice %83 {offsets = [0, 88], sizes = [14, 8], strides = [1, 1]} : vector<14x96xf32> to vector<14x8xf32>
    %cst_71 = arith.constant dense<0.000000e+00> : vector<14x14xf32>
    %141 = tpu.matmul %138, %139, %cst_71 {dimension_numbers = #tpu.dot_dimension_numbers<[1], [1], [0], [0], [0, 0, 1, 0], [], []>} : vector<14x8xf32>, vector<14x8xf32>, vector<14x14xf32> -> vector<14x14xf32>
    %cst_72 = arith.constant 0.353553385 : f32
    %142 = vector.broadcast %cst_72 : f32 to vector<14x14xf32>
    %143 = arith.mulf %141, %142 : vector<14x14xf32>
    %144 = arith.addf %143, %50 : vector<14x14xf32>
    %cst_73 = arith.constant dense<0xFF800000> : vector<14xf32>
    %145 = vector.multi_reduction <maximumf>, %144, %cst_73 [1] : vector<14x14xf32> to vector<14xf32>
    %146 = vector.shape_cast %145 : vector<14xf32> to vector<14x1xf32>
    %147 = vector.broadcast %146 : vector<14x1xf32> to vector<14x14xf32>
    %148 = arith.subf %144, %147 : vector<14x14xf32>
    %149 = math.exp %148 : vector<14x14xf32>
    %cst_74 = arith.constant dense<0.000000e+00> : vector<14xf32>
    %150 = vector.multi_reduction <add>, %149, %cst_74 [1] : vector<14x14xf32> to vector<14xf32>
    %151 = vector.shape_cast %150 : vector<14xf32> to vector<14x1xf32>
    %152 = tpu.reciprocal %151 {approx = true} : vector<14x1xf32> -> vector<14x1xf32>
    %153 = vector.broadcast %152 : vector<14x1xf32> to vector<14x14xf32>
    %154 = arith.mulf %149, %153 : vector<14x14xf32>
    %cst_75 = arith.constant dense<0.000000e+00> : vector<14x8xf32>
    %155 = tpu.matmul %154, %140, %cst_75 {dimension_numbers = #tpu.dot_dimension_numbers<[1], [0], [0], [1], [0, 0, 1, 1], [], []>} : vector<14x14xf32>, vector<14x8xf32>, vector<14x8xf32> -> vector<14x8xf32>
    %156 = tpu.concatenate %101, %119, %137, %155 in 1 : vector<14x8xf32>, vector<14x8xf32>, vector<14x8xf32>, vector<14x8xf32> -> vector<14x32xf32>
    %c0_76 = arith.constant 0 : index
    %c0_77 = arith.constant 0 : index
    %c0_78 = arith.constant 0 : index
    %157 = vector.load %arg18[%c0_76, %c0_77, %c0_78] : memref<2x32x32xf32, #tpu.memory_space<vmem>>, vector<1x32x32xf32>
    %158 = vector.shape_cast %157 : vector<1x32x32xf32> to vector<32x32xf32>
    %cst_79 = arith.constant dense<0.000000e+00> : vector<14x32xf32>
    %159 = tpu.matmul %156, %158, %cst_79 {dimension_numbers = #tpu.dot_dimension_numbers<[1], [0], [0], [1], [0, 0, 1, 1], [], []>} : vector<14x32xf32>, vector<32x32xf32>, vector<14x32xf32> -> vector<14x32xf32>
    %c0_80 = arith.constant 0 : index
    %c0_81 = arith.constant 0 : index
    %c0_82 = arith.constant 0 : index
    %160 = vector.load %arg19[%c0_80, %c0_81, %c0_82] : memref<2x1x32xf32, #tpu.memory_space<vmem>>, vector<1x1x32xf32>
    %161 = vector.shape_cast %160 : vector<1x1x32xf32> to vector<1x32xf32>
    %162 = vector.broadcast %161 : vector<1x32xf32> to vector<14x32xf32>
    %163 = arith.addf %159, %162 : vector<14x32xf32>
    %164 = arith.addf %49, %163 : vector<14x32xf32>
    %c0_83 = arith.constant 0 : index
    %c0_84 = arith.constant 0 : index
    %c0_85 = arith.constant 0 : index
    %165 = vector.load %arg22[%c0_83, %c0_84, %c0_85] : memref<2x1x32xf32, #tpu.memory_space<vmem>>, vector<1x1x32xf32>
    %166 = vector.shape_cast %165 : vector<1x1x32xf32> to vector<1x32xf32>
    %c0_86 = arith.constant 0 : index
    %c0_87 = arith.constant 0 : index
    %c0_88 = arith.constant 0 : index
    %167 = vector.load %arg23[%c0_86, %c0_87, %c0_88] : memref<2x1x32xf32, #tpu.memory_space<vmem>>, vector<1x1x32xf32>
    %168 = vector.shape_cast %167 : vector<1x1x32xf32> to vector<1x32xf32>
    %cst_89 = arith.constant dense<0.000000e+00> : vector<14xf32>
    %169 = vector.multi_reduction <add>, %164, %cst_89 [1] : vector<14x32xf32> to vector<14xf32>
    %170 = vector.shape_cast %169 : vector<14xf32> to vector<14x1xf32>
    %cst_90 = arith.constant 3.200000e+01 : f32
    %171 = vector.broadcast %cst_90 : f32 to vector<14x1xf32>
    %172 = arith.divf %170, %171 : vector<14x1xf32>
    %173 = vector.broadcast %172 : vector<14x1xf32> to vector<14x32xf32>
    %174 = arith.subf %164, %173 : vector<14x32xf32>
    %175 = arith.mulf %174, %174 : vector<14x32xf32>
    %cst_91 = arith.constant dense<0.000000e+00> : vector<14xf32>
    %176 = vector.multi_reduction <add>, %175, %cst_91 [1] : vector<14x32xf32> to vector<14xf32>
    %177 = vector.shape_cast %176 : vector<14xf32> to vector<14x1xf32>
    %cst_92 = arith.constant 3.200000e+01 : f32
    %178 = vector.broadcast %cst_92 : f32 to vector<14x1xf32>
    %179 = arith.divf %177, %178 : vector<14x1xf32>
    %180 = vector.broadcast %172 : vector<14x1xf32> to vector<14x32xf32>
    %181 = arith.subf %164, %180 : vector<14x32xf32>
    %cst_93 = arith.constant 9.99999974E-6 : f32
    %182 = vector.broadcast %cst_93 : f32 to vector<14x1xf32>
    %183 = arith.addf %179, %182 : vector<14x1xf32>
    %184 = math.rsqrt %183 : vector<14x1xf32>
    %185 = vector.broadcast %184 : vector<14x1xf32> to vector<14x32xf32>
    %186 = arith.mulf %181, %185 : vector<14x32xf32>
    %187 = vector.broadcast %166 : vector<1x32xf32> to vector<14x32xf32>
    %188 = arith.mulf %186, %187 : vector<14x32xf32>
    %189 = vector.broadcast %168 : vector<1x32xf32> to vector<14x32xf32>
    %190 = arith.addf %188, %189 : vector<14x32xf32>
    %c0_94 = arith.constant 0 : index
    %c0_95 = arith.constant 0 : index
    %c0_96 = arith.constant 0 : index
    %191 = vector.load %arg24[%c0_94, %c0_95, %c0_96] : memref<2x32x128xf32, #tpu.memory_space<vmem>>, vector<1x32x128xf32>
    %192 = vector.shape_cast %191 : vector<1x32x128xf32> to vector<32x128xf32>
    %cst_97 = arith.constant dense<0.000000e+00> : vector<14x128xf32>
    %193 = tpu.matmul %190, %192, %cst_97 {dimension_numbers = #tpu.dot_dimension_numbers<[1], [0], [0], [1], [0, 0, 1, 1], [], []>} : vector<14x32xf32>, vector<32x128xf32>, vector<14x128xf32> -> vector<14x128xf32>
    %c0_98 = arith.constant 0 : index
    %c0_99 = arith.constant 0 : index
    %c0_100 = arith.constant 0 : index
    %194 = vector.load %arg25[%c0_98, %c0_99, %c0_100] : memref<2x1x128xf32, #tpu.memory_space<vmem>>, vector<1x1x128xf32>
    %195 = vector.shape_cast %194 : vector<1x1x128xf32> to vector<1x128xf32>
    %196 = vector.broadcast %195 : vector<1x128xf32> to vector<14x128xf32>
    %197 = arith.addf %193, %196 : vector<14x128xf32>
    %cst_101 = arith.constant 0.000000e+00 : f32
    %198 = vector.broadcast %cst_101 : f32 to vector<14x128xf32>
    %199 = arith.maximumf %197, %198 : vector<14x128xf32>
    %c0_102 = arith.constant 0 : index
    %c0_103 = arith.constant 0 : index
    %c0_104 = arith.constant 0 : index
    %200 = vector.load %arg26[%c0_102, %c0_103, %c0_104] : memref<2x128x32xf32, #tpu.memory_space<vmem>>, vector<1x128x32xf32>
    %201 = vector.shape_cast %200 : vector<1x128x32xf32> to vector<128x32xf32>
    %cst_105 = arith.constant dense<0.000000e+00> : vector<14x32xf32>
    %202 = tpu.matmul %199, %201, %cst_105 {dimension_numbers = #tpu.dot_dimension_numbers<[1], [0], [0], [1], [0, 0, 1, 1], [], []>} : vector<14x128xf32>, vector<128x32xf32>, vector<14x32xf32> -> vector<14x32xf32>
    %203 = arith.addf %164, %202 : vector<14x32xf32>
    %c0_106 = arith.constant 0 : index
    %c0_107 = arith.constant 0 : index
    %c0_108 = arith.constant 0 : index
    %204 = vector.load %arg27[%c0_106, %c0_107, %c0_108] : memref<2x1x32xf32, #tpu.memory_space<vmem>>, vector<1x1x32xf32>
    %205 = vector.shape_cast %204 : vector<1x1x32xf32> to vector<1x32xf32>
    %206 = vector.broadcast %205 : vector<1x32xf32> to vector<14x32xf32>
    %207 = arith.addf %203, %206 : vector<14x32xf32>
    %c1 = arith.constant 1 : index
    %c0_109 = arith.constant 0 : index
    %c0_110 = arith.constant 0 : index
    %208 = vector.load %arg20[%c1, %c0_109, %c0_110] : memref<2x1x32xf32, #tpu.memory_space<vmem>>, vector<1x1x32xf32>
    %209 = vector.shape_cast %208 : vector<1x1x32xf32> to vector<1x32xf32>
    %c1_111 = arith.constant 1 : index
    %c0_112 = arith.constant 0 : index
    %c0_113 = arith.constant 0 : index
    %210 = vector.load %arg21[%c1_111, %c0_112, %c0_113] : memref<2x1x32xf32, #tpu.memory_space<vmem>>, vector<1x1x32xf32>
    %211 = vector.shape_cast %210 : vector<1x1x32xf32> to vector<1x32xf32>
    %cst_114 = arith.constant dense<0.000000e+00> : vector<14xf32>
    %212 = vector.multi_reduction <add>, %207, %cst_114 [1] : vector<14x32xf32> to vector<14xf32>
    %213 = vector.shape_cast %212 : vector<14xf32> to vector<14x1xf32>
    %cst_115 = arith.constant 3.200000e+01 : f32
    %214 = vector.broadcast %cst_115 : f32 to vector<14x1xf32>
    %215 = arith.divf %213, %214 : vector<14x1xf32>
    %216 = vector.broadcast %215 : vector<14x1xf32> to vector<14x32xf32>
    %217 = arith.subf %207, %216 : vector<14x32xf32>
    %218 = arith.mulf %217, %217 : vector<14x32xf32>
    %cst_116 = arith.constant dense<0.000000e+00> : vector<14xf32>
    %219 = vector.multi_reduction <add>, %218, %cst_116 [1] : vector<14x32xf32> to vector<14xf32>
    %220 = vector.shape_cast %219 : vector<14xf32> to vector<14x1xf32>
    %cst_117 = arith.constant 3.200000e+01 : f32
    %221 = vector.broadcast %cst_117 : f32 to vector<14x1xf32>
    %222 = arith.divf %220, %221 : vector<14x1xf32>
    %223 = vector.broadcast %215 : vector<14x1xf32> to vector<14x32xf32>
    %224 = arith.subf %207, %223 : vector<14x32xf32>
    %cst_118 = arith.constant 9.99999974E-6 : f32
    %225 = vector.broadcast %cst_118 : f32 to vector<14x1xf32>
    %226 = arith.addf %222, %225 : vector<14x1xf32>
    %227 = math.rsqrt %226 : vector<14x1xf32>
    %228 = vector.broadcast %227 : vector<14x1xf32> to vector<14x32xf32>
    %229 = arith.mulf %224, %228 : vector<14x32xf32>
    %230 = vector.broadcast %209 : vector<1x32xf32> to vector<14x32xf32>
    %231 = arith.mulf %229, %230 : vector<14x32xf32>
    %232 = vector.broadcast %211 : vector<1x32xf32> to vector<14x32xf32>
    %233 = arith.addf %231, %232 : vector<14x32xf32>
    %c1_119 = arith.constant 1 : index
    %c0_120 = arith.constant 0 : index
    %c0_121 = arith.constant 0 : index
    %234 = vector.load %arg16[%c1_119, %c0_120, %c0_121] : memref<2x32x96xf32, #tpu.memory_space<vmem>>, vector<1x32x96xf32>
    %235 = vector.shape_cast %234 : vector<1x32x96xf32> to vector<32x96xf32>
    %cst_122 = arith.constant dense<0.000000e+00> : vector<14x96xf32>
    %236 = tpu.matmul %233, %235, %cst_122 {dimension_numbers = #tpu.dot_dimension_numbers<[1], [0], [0], [1], [0, 0, 1, 1], [], []>} : vector<14x32xf32>, vector<32x96xf32>, vector<14x96xf32> -> vector<14x96xf32>
    %c1_123 = arith.constant 1 : index
    %c0_124 = arith.constant 0 : index
    %c0_125 = arith.constant 0 : index
    %237 = vector.load %arg17[%c1_123, %c0_124, %c0_125] : memref<2x1x96xf32, #tpu.memory_space<vmem>>, vector<1x1x96xf32>
    %238 = vector.shape_cast %237 : vector<1x1x96xf32> to vector<1x96xf32>
    %239 = vector.broadcast %238 : vector<1x96xf32> to vector<14x96xf32>
    %240 = arith.addf %236, %239 : vector<14x96xf32>
    %241 = vector.extract_strided_slice %240 {offsets = [0, 0], sizes = [14, 8], strides = [1, 1]} : vector<14x96xf32> to vector<14x8xf32>
    %242 = vector.extract_strided_slice %240 {offsets = [0, 32], sizes = [14, 8], strides = [1, 1]} : vector<14x96xf32> to vector<14x8xf32>
    %243 = vector.extract_strided_slice %240 {offsets = [0, 64], sizes = [14, 8], strides = [1, 1]} : vector<14x96xf32> to vector<14x8xf32>
    %cst_126 = arith.constant dense<0.000000e+00> : vector<14x14xf32>
    %244 = tpu.matmul %241, %242, %cst_126 {dimension_numbers = #tpu.dot_dimension_numbers<[1], [1], [0], [0], [0, 0, 1, 0], [], []>} : vector<14x8xf32>, vector<14x8xf32>, vector<14x14xf32> -> vector<14x14xf32>
    %cst_127 = arith.constant 0.353553385 : f32
    %245 = vector.broadcast %cst_127 : f32 to vector<14x14xf32>
    %246 = arith.mulf %244, %245 : vector<14x14xf32>
    %247 = arith.addf %246, %50 : vector<14x14xf32>
    %cst_128 = arith.constant dense<0xFF800000> : vector<14xf32>
    %248 = vector.multi_reduction <maximumf>, %247, %cst_128 [1] : vector<14x14xf32> to vector<14xf32>
    %249 = vector.shape_cast %248 : vector<14xf32> to vector<14x1xf32>
    %250 = vector.broadcast %249 : vector<14x1xf32> to vector<14x14xf32>
    %251 = arith.subf %247, %250 : vector<14x14xf32>
    %252 = math.exp %251 : vector<14x14xf32>
    %cst_129 = arith.constant dense<0.000000e+00> : vector<14xf32>
    %253 = vector.multi_reduction <add>, %252, %cst_129 [1] : vector<14x14xf32> to vector<14xf32>
    %254 = vector.shape_cast %253 : vector<14xf32> to vector<14x1xf32>
    %255 = tpu.reciprocal %254 {approx = true} : vector<14x1xf32> -> vector<14x1xf32>
    %256 = vector.broadcast %255 : vector<14x1xf32> to vector<14x14xf32>
    %257 = arith.mulf %252, %256 : vector<14x14xf32>
    %cst_130 = arith.constant dense<0.000000e+00> : vector<14x8xf32>
    %258 = tpu.matmul %257, %243, %cst_130 {dimension_numbers = #tpu.dot_dimension_numbers<[1], [0], [0], [1], [0, 0, 1, 1], [], []>} : vector<14x14xf32>, vector<14x8xf32>, vector<14x8xf32> -> vector<14x8xf32>
    %259 = vector.extract_strided_slice %240 {offsets = [0, 8], sizes = [14, 8], strides = [1, 1]} : vector<14x96xf32> to vector<14x8xf32>
    %260 = vector.extract_strided_slice %240 {offsets = [0, 40], sizes = [14, 8], strides = [1, 1]} : vector<14x96xf32> to vector<14x8xf32>
    %261 = vector.extract_strided_slice %240 {offsets = [0, 72], sizes = [14, 8], strides = [1, 1]} : vector<14x96xf32> to vector<14x8xf32>
    %cst_131 = arith.constant dense<0.000000e+00> : vector<14x14xf32>
    %262 = tpu.matmul %259, %260, %cst_131 {dimension_numbers = #tpu.dot_dimension_numbers<[1], [1], [0], [0], [0, 0, 1, 0], [], []>} : vector<14x8xf32>, vector<14x8xf32>, vector<14x14xf32> -> vector<14x14xf32>
    %cst_132 = arith.constant 0.353553385 : f32
    %263 = vector.broadcast %cst_132 : f32 to vector<14x14xf32>
    %264 = arith.mulf %262, %263 : vector<14x14xf32>
    %265 = arith.addf %264, %50 : vector<14x14xf32>
    %cst_133 = arith.constant dense<0xFF800000> : vector<14xf32>
    %266 = vector.multi_reduction <maximumf>, %265, %cst_133 [1] : vector<14x14xf32> to vector<14xf32>
    %267 = vector.shape_cast %266 : vector<14xf32> to vector<14x1xf32>
    %268 = vector.broadcast %267 : vector<14x1xf32> to vector<14x14xf32>
    %269 = arith.subf %265, %268 : vector<14x14xf32>
    %270 = math.exp %269 : vector<14x14xf32>
    %cst_134 = arith.constant dense<0.000000e+00> : vector<14xf32>
    %271 = vector.multi_reduction <add>, %270, %cst_134 [1] : vector<14x14xf32> to vector<14xf32>
    %272 = vector.shape_cast %271 : vector<14xf32> to vector<14x1xf32>
    %273 = tpu.reciprocal %272 {approx = true} : vector<14x1xf32> -> vector<14x1xf32>
    %274 = vector.broadcast %273 : vector<14x1xf32> to vector<14x14xf32>
    %275 = arith.mulf %270, %274 : vector<14x14xf32>
    %cst_135 = arith.constant dense<0.000000e+00> : vector<14x8xf32>
    %276 = tpu.matmul %275, %261, %cst_135 {dimension_numbers = #tpu.dot_dimension_numbers<[1], [0], [0], [1], [0, 0, 1, 1], [], []>} : vector<14x14xf32>, vector<14x8xf32>, vector<14x8xf32> -> vector<14x8xf32>
    %277 = vector.extract_strided_slice %240 {offsets = [0, 16], sizes = [14, 8], strides = [1, 1]} : vector<14x96xf32> to vector<14x8xf32>
    %278 = vector.extract_strided_slice %240 {offsets = [0, 48], sizes = [14, 8], strides = [1, 1]} : vector<14x96xf32> to vector<14x8xf32>
    %279 = vector.extract_strided_slice %240 {offsets = [0, 80], sizes = [14, 8], strides = [1, 1]} : vector<14x96xf32> to vector<14x8xf32>
    %cst_136 = arith.constant dense<0.000000e+00> : vector<14x14xf32>
    %280 = tpu.matmul %277, %278, %cst_136 {dimension_numbers = #tpu.dot_dimension_numbers<[1], [1], [0], [0], [0, 0, 1, 0], [], []>} : vector<14x8xf32>, vector<14x8xf32>, vector<14x14xf32> -> vector<14x14xf32>
    %cst_137 = arith.constant 0.353553385 : f32
    %281 = vector.broadcast %cst_137 : f32 to vector<14x14xf32>
    %282 = arith.mulf %280, %281 : vector<14x14xf32>
    %283 = arith.addf %282, %50 : vector<14x14xf32>
    %cst_138 = arith.constant dense<0xFF800000> : vector<14xf32>
    %284 = vector.multi_reduction <maximumf>, %283, %cst_138 [1] : vector<14x14xf32> to vector<14xf32>
    %285 = vector.shape_cast %284 : vector<14xf32> to vector<14x1xf32>
    %286 = vector.broadcast %285 : vector<14x1xf32> to vector<14x14xf32>
    %287 = arith.subf %283, %286 : vector<14x14xf32>
    %288 = math.exp %287 : vector<14x14xf32>
    %cst_139 = arith.constant dense<0.000000e+00> : vector<14xf32>
    %289 = vector.multi_reduction <add>, %288, %cst_139 [1] : vector<14x14xf32> to vector<14xf32>
    %290 = vector.shape_cast %289 : vector<14xf32> to vector<14x1xf32>
    %291 = tpu.reciprocal %290 {approx = true} : vector<14x1xf32> -> vector<14x1xf32>
    %292 = vector.broadcast %291 : vector<14x1xf32> to vector<14x14xf32>
    %293 = arith.mulf %288, %292 : vector<14x14xf32>
    %cst_140 = arith.constant dense<0.000000e+00> : vector<14x8xf32>
    %294 = tpu.matmul %293, %279, %cst_140 {dimension_numbers = #tpu.dot_dimension_numbers<[1], [0], [0], [1], [0, 0, 1, 1], [], []>} : vector<14x14xf32>, vector<14x8xf32>, vector<14x8xf32> -> vector<14x8xf32>
    %295 = vector.extract_strided_slice %240 {offsets = [0, 24], sizes = [14, 8], strides = [1, 1]} : vector<14x96xf32> to vector<14x8xf32>
    %296 = vector.extract_strided_slice %240 {offsets = [0, 56], sizes = [14, 8], strides = [1, 1]} : vector<14x96xf32> to vector<14x8xf32>
    %297 = vector.extract_strided_slice %240 {offsets = [0, 88], sizes = [14, 8], strides = [1, 1]} : vector<14x96xf32> to vector<14x8xf32>
    %cst_141 = arith.constant dense<0.000000e+00> : vector<14x14xf32>
    %298 = tpu.matmul %295, %296, %cst_141 {dimension_numbers = #tpu.dot_dimension_numbers<[1], [1], [0], [0], [0, 0, 1, 0], [], []>} : vector<14x8xf32>, vector<14x8xf32>, vector<14x14xf32> -> vector<14x14xf32>
    %cst_142 = arith.constant 0.353553385 : f32
    %299 = vector.broadcast %cst_142 : f32 to vector<14x14xf32>
    %300 = arith.mulf %298, %299 : vector<14x14xf32>
    %301 = arith.addf %300, %50 : vector<14x14xf32>
    %cst_143 = arith.constant dense<0xFF800000> : vector<14xf32>
    %302 = vector.multi_reduction <maximumf>, %301, %cst_143 [1] : vector<14x14xf32> to vector<14xf32>
    %303 = vector.shape_cast %302 : vector<14xf32> to vector<14x1xf32>
    %304 = vector.broadcast %303 : vector<14x1xf32> to vector<14x14xf32>
    %305 = arith.subf %301, %304 : vector<14x14xf32>
    %306 = math.exp %305 : vector<14x14xf32>
    %cst_144 = arith.constant dense<0.000000e+00> : vector<14xf32>
    %307 = vector.multi_reduction <add>, %306, %cst_144 [1] : vector<14x14xf32> to vector<14xf32>
    %308 = vector.shape_cast %307 : vector<14xf32> to vector<14x1xf32>
    %309 = tpu.reciprocal %308 {approx = true} : vector<14x1xf32> -> vector<14x1xf32>
    %310 = vector.broadcast %309 : vector<14x1xf32> to vector<14x14xf32>
    %311 = arith.mulf %306, %310 : vector<14x14xf32>
    %cst_145 = arith.constant dense<0.000000e+00> : vector<14x8xf32>
    %312 = tpu.matmul %311, %297, %cst_145 {dimension_numbers = #tpu.dot_dimension_numbers<[1], [0], [0], [1], [0, 0, 1, 1], [], []>} : vector<14x14xf32>, vector<14x8xf32>, vector<14x8xf32> -> vector<14x8xf32>
    %313 = tpu.concatenate %258, %276, %294, %312 in 1 : vector<14x8xf32>, vector<14x8xf32>, vector<14x8xf32>, vector<14x8xf32> -> vector<14x32xf32>
    %c1_146 = arith.constant 1 : index
    %c0_147 = arith.constant 0 : index
    %c0_148 = arith.constant 0 : index
    %314 = vector.load %arg18[%c1_146, %c0_147, %c0_148] : memref<2x32x32xf32, #tpu.memory_space<vmem>>, vector<1x32x32xf32>
    %315 = vector.shape_cast %314 : vector<1x32x32xf32> to vector<32x32xf32>
    %cst_149 = arith.constant dense<0.000000e+00> : vector<14x32xf32>
    %316 = tpu.matmul %313, %315, %cst_149 {dimension_numbers = #tpu.dot_dimension_numbers<[1], [0], [0], [1], [0, 0, 1, 1], [], []>} : vector<14x32xf32>, vector<32x32xf32>, vector<14x32xf32> -> vector<14x32xf32>
    %c1_150 = arith.constant 1 : index
    %c0_151 = arith.constant 0 : index
    %c0_152 = arith.constant 0 : index
    %317 = vector.load %arg19[%c1_150, %c0_151, %c0_152] : memref<2x1x32xf32, #tpu.memory_space<vmem>>, vector<1x1x32xf32>
    %318 = vector.shape_cast %317 : vector<1x1x32xf32> to vector<1x32xf32>
    %319 = vector.broadcast %318 : vector<1x32xf32> to vector<14x32xf32>
    %320 = arith.addf %316, %319 : vector<14x32xf32>
    %321 = arith.addf %207, %320 : vector<14x32xf32>
    %c1_153 = arith.constant 1 : index
    %c0_154 = arith.constant 0 : index
    %c0_155 = arith.constant 0 : index
    %322 = vector.load %arg22[%c1_153, %c0_154, %c0_155] : memref<2x1x32xf32, #tpu.memory_space<vmem>>, vector<1x1x32xf32>
    %323 = vector.shape_cast %322 : vector<1x1x32xf32> to vector<1x32xf32>
    %c1_156 = arith.constant 1 : index
    %c0_157 = arith.constant 0 : index
    %c0_158 = arith.constant 0 : index
    %324 = vector.load %arg23[%c1_156, %c0_157, %c0_158] : memref<2x1x32xf32, #tpu.memory_space<vmem>>, vector<1x1x32xf32>
    %325 = vector.shape_cast %324 : vector<1x1x32xf32> to vector<1x32xf32>
    %cst_159 = arith.constant dense<0.000000e+00> : vector<14xf32>
    %326 = vector.multi_reduction <add>, %321, %cst_159 [1] : vector<14x32xf32> to vector<14xf32>
    %327 = vector.shape_cast %326 : vector<14xf32> to vector<14x1xf32>
    %cst_160 = arith.constant 3.200000e+01 : f32
    %328 = vector.broadcast %cst_160 : f32 to vector<14x1xf32>
    %329 = arith.divf %327, %328 : vector<14x1xf32>
    %330 = vector.broadcast %329 : vector<14x1xf32> to vector<14x32xf32>
    %331 = arith.subf %321, %330 : vector<14x32xf32>
    %332 = arith.mulf %331, %331 : vector<14x32xf32>
    %cst_161 = arith.constant dense<0.000000e+00> : vector<14xf32>
    %333 = vector.multi_reduction <add>, %332, %cst_161 [1] : vector<14x32xf32> to vector<14xf32>
    %334 = vector.shape_cast %333 : vector<14xf32> to vector<14x1xf32>
    %cst_162 = arith.constant 3.200000e+01 : f32
    %335 = vector.broadcast %cst_162 : f32 to vector<14x1xf32>
    %336 = arith.divf %334, %335 : vector<14x1xf32>
    %337 = vector.broadcast %329 : vector<14x1xf32> to vector<14x32xf32>
    %338 = arith.subf %321, %337 : vector<14x32xf32>
    %cst_163 = arith.constant 9.99999974E-6 : f32
    %339 = vector.broadcast %cst_163 : f32 to vector<14x1xf32>
    %340 = arith.addf %336, %339 : vector<14x1xf32>
    %341 = math.rsqrt %340 : vector<14x1xf32>
    %342 = vector.broadcast %341 : vector<14x1xf32> to vector<14x32xf32>
    %343 = arith.mulf %338, %342 : vector<14x32xf32>
    %344 = vector.broadcast %323 : vector<1x32xf32> to vector<14x32xf32>
    %345 = arith.mulf %343, %344 : vector<14x32xf32>
    %346 = vector.broadcast %325 : vector<1x32xf32> to vector<14x32xf32>
    %347 = arith.addf %345, %346 : vector<14x32xf32>
    %c1_164 = arith.constant 1 : index
    %c0_165 = arith.constant 0 : index
    %c0_166 = arith.constant 0 : index
    %348 = vector.load %arg24[%c1_164, %c0_165, %c0_166] : memref<2x32x128xf32, #tpu.memory_space<vmem>>, vector<1x32x128xf32>
    %349 = vector.shape_cast %348 : vector<1x32x128xf32> to vector<32x128xf32>
    %cst_167 = arith.constant dense<0.000000e+00> : vector<14x128xf32>
    %350 = tpu.matmul %347, %349, %cst_167 {dimension_numbers = #tpu.dot_dimension_numbers<[1], [0], [0], [1], [0, 0, 1, 1], [], []>} : vector<14x32xf32>, vector<32x128xf32>, vector<14x128xf32> -> vector<14x128xf32>
    %c1_168 = arith.constant 1 : index
    %c0_169 = arith.constant 0 : index
    %c0_170 = arith.constant 0 : index
    %351 = vector.load %arg25[%c1_168, %c0_169, %c0_170] : memref<2x1x128xf32, #tpu.memory_space<vmem>>, vector<1x1x128xf32>
    %352 = vector.shape_cast %351 : vector<1x1x128xf32> to vector<1x128xf32>
    %353 = vector.broadcast %352 : vector<1x128xf32> to vector<14x128xf32>
    %354 = arith.addf %350, %353 : vector<14x128xf32>
    %cst_171 = arith.constant 0.000000e+00 : f32
    %355 = vector.broadcast %cst_171 : f32 to vector<14x128xf32>
    %356 = arith.maximumf %354, %355 : vector<14x128xf32>
    %c1_172 = arith.constant 1 : index
    %c0_173 = arith.constant 0 : index
    %c0_174 = arith.constant 0 : index
    %357 = vector.load %arg26[%c1_172, %c0_173, %c0_174] : memref<2x128x32xf32, #tpu.memory_space<vmem>>, vector<1x128x32xf32>
    %358 = vector.shape_cast %357 : vector<1x128x32xf32> to vector<128x32xf32>
    %cst_175 = arith.constant dense<0.000000e+00> : vector<14x32xf32>
    %359 = tpu.matmul %356, %358, %cst_175 {dimension_numbers = #tpu.dot_dimension_numbers<[1], [0], [0], [1], [0, 0, 1, 1], [], []>} : vector<14x128xf32>, vector<128x32xf32>, vector<14x32xf32> -> vector<14x32xf32>
    %360 = arith.addf %321, %359 : vector<14x32xf32>
    %c1_176 = arith.constant 1 : index
    %c0_177 = arith.constant 0 : index
    %c0_178 = arith.constant 0 : index
    %361 = vector.load %arg27[%c1_176, %c0_177, %c0_178] : memref<2x1x32xf32, #tpu.memory_space<vmem>>, vector<1x1x32xf32>
    %362 = vector.shape_cast %361 : vector<1x1x32xf32> to vector<1x32xf32>
    %363 = vector.broadcast %362 : vector<1x32xf32> to vector<14x32xf32>
    %364 = arith.addf %360, %363 : vector<14x32xf32>
    %c0_179 = arith.constant 0 : index
    %c0_180 = arith.constant 0 : index
    %365 = vector.load %arg5[%c0_179, %c0_180] : memref<2x14xf32, #tpu.memory_space<vmem>>, vector<2x14xf32>
    %cst_181 = arith.constant dense<0.000000e+00> : vector<2x32xf32>
    %366 = tpu.matmul %365, %364, %cst_181 {dimension_numbers = #tpu.dot_dimension_numbers<[1], [0], [0], [1], [0, 0, 1, 1], [], []>} : vector<2x14xf32>, vector<14x32xf32>, vector<2x32xf32> -> vector<2x32xf32>
    %c0_182 = arith.constant 0 : index
    %c0_183 = arith.constant 0 : index
    %367 = vector.load %arg3[%c0_182, %c0_183] : memref<2x1xf32, #tpu.memory_space<vmem>>, vector<2x1xf32>
    %c0_184 = arith.constant 0 : index
    %c0_185 = arith.constant 0 : index
    %368 = vector.load %arg28[%c0_184, %c0_185] : memref<1x32xf32, #tpu.memory_space<vmem>>, vector<1x32xf32>
    %369 = vector.broadcast %367 : vector<2x1xf32> to vector<2x32xf32>
    %370 = vector.broadcast %368 : vector<1x32xf32> to vector<2x32xf32>
    %371 = arith.mulf %369, %370 : vector<2x32xf32>
    %c0_186 = arith.constant 0 : index
    %c0_187 = arith.constant 0 : index
    %372 = vector.load %arg29[%c0_186, %c0_187] : memref<1x32xf32, #tpu.memory_space<vmem>>, vector<1x32xf32>
    %373 = vector.broadcast %372 : vector<1x32xf32> to vector<2x32xf32>
    %374 = arith.addf %371, %373 : vector<2x32xf32>
    %cst_188 = arith.constant 0.000000e+00 : f32
    %375 = vector.broadcast %cst_188 : f32 to vector<2x32xf32>
    %376 = arith.maximumf %374, %375 : vector<2x32xf32>
    %377 = tpu.concatenate %43, %366, %376 in 1 : vector<2x32xf32>, vector<2x32xf32>, vector<2x32xf32> -> vector<2x96xf32>
    %c0_189 = arith.constant 0 : index
    %c0_190 = arith.constant 0 : index
    %378 = vector.load %arg30[%c0_189, %c0_190] : memref<2x96xf32, #tpu.memory_space<vmem>>, vector<2x96xf32>
    tpu.vector_store %arg30[%c0_189, %c0_190], %377 {strides = array<i32>} : memref<2x96xf32, #tpu.memory_space<vmem>>, vector<2x96xf32>,
    return
  }
}

</mosaic_0001>

<bundles_post_ra>
// kernel: tpu_custom_call.1
= control target key start
LH: loop header
LB: loop body
LE: loop exit
PB: predicated region body
PF: predicated region fallthrough
CT: control target
= control target key end

     0   :  { %s5674_s6 = smov 1   ;;  %s5675_s10 = smov 2   ;;  %s6797_s0 = inlined_call_operand.smem [shape: u32[31], index: -1, kind: input, shape index: {}] }
   0x1   :  { %s5733_s5 = sld [smem:[%s6797_s0]]   ;;  %s5676_s14 = smov 3  }
   0x2   :  { %s5738_s9 = sld [smem:[%s6797_s0 + %s5674_s6]]   ;;  %s5677_s18 = smov 4  }
   0x3   :  { %s5743_s13 = sld [smem:[%s6797_s0 + %s5675_s10]]   ;;  %s5678_s22 = smov 5  }
   0x4   :  { %s5748_s17 = sld [smem:[%s6797_s0 + %s5676_s14]]   ;;  %s5679_s26 = smov 6  }
   0x5   :  { %s5753_s21 = sld [smem:[%s6797_s0 + %s5677_s18]]   ;;  %s5680_s30 = smov 7  }
   0x6   :  { %s5758_s25 = sld [smem:[%s6797_s0 + %s5678_s22]]   ;;  %s5681_s4 = smov 8  }
   0x7   :  { %s5763_s29 = sld [smem:[%s6797_s0 + %s5679_s26]]   ;;  %s5682_s10 = smov 9  }
   0x8   :  { %s5768_s3 = sld [smem:[%s6797_s0 + %s5680_s30]]   ;;  %s5683_s15 = smov 10  }
   0x9   :  { %s5773_s8 = sld [smem:[%s6797_s0 + %s5681_s4]]   ;;  %s5684_s20 = smov 11  }
   0xa   :  { %6809 = sst [smem:[#allocation5_spill]] %s5748_s17  ;;  %s5685_s26 = smov 12  }
   0xb   :  { %s5778_s14 = sld [smem:[%s6797_s0 + %s5682_s10]]   ;;  %s5686_s1 = smov 13  }
   0xc   :  { %6810 = sst [smem:[#allocation6_spill]] %s5758_s25  ;;  %s5687_s7 = smov 14  }
   0xd   :  { %6811 = sst [smem:[#allocation7_spill]] %s5763_s29  ;;  %s5689_s22 = smov 16  }
   0xe   :  { %s5783_s19 = sld [smem:[%s6797_s0 + %s5683_s15]]   ;;  %s5688_s15 = smov 15  }
   0xf   :  { %s5788_s24 = sld [smem:[%s6797_s0 + %s5684_s20]]   ;;  %s5690_s28 = smov 17  }
  0x10   :  { %s5793_s30 = sld [smem:[%s6797_s0 + %s5685_s26]]  }
  0x11   :  { %s5798_s6 = sld [smem:[%s6797_s0 + %s5686_s1]]  }
  0x12   :  { %s5803_s12 = sld [smem:[%s6797_s0 + %s5687_s7]]   ;;  %s5691_s7 = smov 18  }
  0x13   :  { %s5808_s20 = sld [smem:[%s6797_s0 + %s5688_s15]]   ;;  %s5692_s15 = smov 19  }
  0x14   :  { %s5813_s27 = sld [smem:[%s6797_s0 + %s5689_s22]]   ;;  %s5693_s22 = smov 20  }
  0x15   :  { %s5818_s4 = sld [smem:[%s6797_s0 + %s5690_s28]]   ;;  %s5694_s28 = smov 21  }
  0x16   :  { %s5823_s25 = sld [smem:[%s6797_s0 + %s5691_s7]]   ;;  %s5695_s7 = smov 22  }
  0x17   :  { %s5828_s17 = sld [smem:[%s6797_s0 + %s5692_s15]]   ;;  %s5696_s15 = smov 23  }
  0x18   :  { %s5833_s29 = sld [smem:[%s6797_s0 + %s5693_s22]]   ;;  %s5697_s22 = smov 24  }
  0x1b   :  { %6812 = sst [smem:[#allocation8_spill]] %s5818_s4 }
  0x1c   :  { %6813 = sst [smem:[#allocation9_spill]] %s5823_s25 }
  0x1d   :  { %6814 = sst [smem:[#allocation10_spill]] %s5828_s17 }
  0x1e   :  { %6815 = sst [smem:[#allocation11_spill]] %s5833_s29 }
  0x1f   :  { %s5838_s4 = sld [smem:[%s6797_s0 + %s5694_s28]]   ;;  %s5698_s28 = smov 25  }
  0x20   :  { %s5843_s25 = sld [smem:[%s6797_s0 + %s5695_s7]]   ;;  %s5699_s7 = smov 26  }
  0x21   :  { %s5848_s17 = sld [smem:[%s6797_s0 + %s5696_s15]]   ;;  %s5700_s15 = smov 27  }
  0x22   :  { %s5853_s29 = sld [smem:[%s6797_s0 + %s5697_s22]]   ;;  %s5701_s22 = smov 28  }
  0x25   :  { %6816 = sst [smem:[#allocation12_spill]] %s5838_s4 }
  0x26   :  { %6817 = sst [smem:[#allocation13_spill]] %s5843_s25 }
  0x27   :  { %6818 = sst [smem:[#allocation14_spill]] %s5848_s17 }
  0x28   :  { %6819 = sst [smem:[#allocation15_spill]] %s5853_s29 }
  0x29   :  { %s5858_s4 = sld [smem:[%s6797_s0 + %s5698_s28]]   ;;  %s5702_s28 = smov 29  }
  0x2a   :  { %s5863_s25 = sld [smem:[%s6797_s0 + %s5699_s7]]   ;;  %s5703_s7 = smov 30  }
  0x2b   :  { %s5868_s17 = sld [smem:[%s6797_s0 + %s5700_s15]]  }
  0x2c   :  { %s5873_s29 = sld [smem:[%s6797_s0 + %s5701_s22]]  }
  0x2f   :  { %6820 = sst [smem:[#allocation16_spill]] %s5858_s4 }
  0x30   :  { %6821 = sst [smem:[#allocation17_spill]] %s5863_s25 }
  0x31   :  { %s5878_s4 = sld [smem:[%s6797_s0 + %s5702_s28]]  }
  0x32   :  { %s5883_s25 = sld [smem:[%s6797_s0 + %s5703_s7]]  }
  0x33   :  { %v143_v0 = vld [vmem:[%s5768_s3] sm:$0x1f]  ;;  %vm200_vm0 = vcmask 1044480   ;;  %vm151_vm1 = vcmask 39936   ;;  %v128_v2 = vld [vmem:[%s5733_s5 + $0x8] sm:$0xff]  ;;  %v129_v3 = vld [vmem:[%s5733_s5 + $0x10] sm:$0xff] }
  0x34   :  { %v127_v1 = vld [vmem:[%s5733_s5] sm:$0xff]  ;;  %4617 = vmatprep.subr.msk.mxu1 %vm200_vm0, %v143_v0  ;;  %v130_v4 = vld [vmem:[%s5733_s5 + $0x18] sm:$0xff] }
  0x35   :  { %4619 = vmatprep.mubr.msk.f32.mxu1 %vm151_vm1, %v127_v1  ;;  %4618 = vmatpush3.msk.msra.mxu1 %vm200_vm0, %v143_v0  ;;  %v131_v5 = vld [vmem:[%s5733_s5 + $0x20] sm:$0xff] }
  0x36   :  { %4620 = vmatmul.mubr.msk.f32.vlgmr.msra.gmra.mrb[0].mxu1 %vm151_vm1, %v128_v2 }
  0x37   :  { %4622 = vmatprep.mubr.msk.f32.mxu1 %vm151_vm1, %v129_v3 }
  0x38   :  { %66 = vsyncpa [#allocation3], 0  ;;  %v132_v6 = vld [vmem:[%s5733_s5 + $0x28] sm:$0xff]  ;;  %v133_v7 = vld [vmem:[%s5733_s5 + $0x30] sm:$0xff]  ;;  %vm521_vm2 = vcmask 261120   ;;  %vm5705_vm3 = vmmov 0  }
  0x39   :  { %v134_v8 = vld [vmem:[%s5733_s5 + $0x38] sm:$0xff]  ;;  %v135_v9 = vld [vmem:[%s5733_s5 + $0x40] sm:$0xff]  ;;  %v136_v10 = vld [vmem:[%s5733_s5 + $0x48] sm:$0xff]  ;;  %vm1287_vm4 = vcmask 523264   ;;  %vm1376_vm5 = vcmask 259072   ;;  %s6822_s0 = sld [smem:[#allocation11_spill]] }
  0x3a   :  { %4623 = vmatmul.mubr.msk.f32.gmra.mrb[2].mxu1 %vm151_vm1, %v130_v4  ;;  %v137_v11 = vld [vmem:[%s5733_s5 + $0x50] sm:$0xff]  ;;  %v138_v12 = vld [vmem:[%s5733_s5 + $0x58] sm:$0xff]  ;;  %v139_v13 = vld [vmem:[%s5733_s5 + $0x60] sm:$0xff]  ;;  %vm1514_vm6 = vcmask 64512   ;;  %s5709_s3 = smov 120   ;;  %vm1606_vm8 = vcmask 111616  }
  0x3b   :  { %4625 = vmatprep.mubr.msk.f32.mxu1 %vm151_vm1, %v131_v5  ;;  %v140_v14 = vld [vmem:[%s5733_s5 + $0x68] sm:$0xff]  ;;  %v141_v15 = vld [vmem:[%s5733_s5 + $0x70] sm:$0xff]  ;;  %v142_v16 = vld [vmem:[%s5733_s5 + $0x78] sm:$0xff]  ;;  %s6823_s5 = sld [smem:[#allocation12_spill]]  ;;  %vm1602_vm9 = vcmask 113664   ;;  %vm1637_vm10 = vcmask 1045504  }
  0x3c   :  { %v349_v17 = vld [vmem:[%s5738_s9] sm:$0xff]  ;;  %v511_v19 = vld [vmem:[%s5778_s14 + $0x8] sm:$0xff]  ;;  %v512_v20 = vld [vmem:[%s5778_s14 + $0x10] sm:$0xff]  ;;  %vm5714_vm11 = vmmov 1   ;;  %s5718_s15 = smov 40   ;;  %s5719_s16 = smov 8  }
  0x3d   :  { %v510_v18 = vld [vmem:[%s5778_s14] sm:$0xff]  ;;  %v513_v22 = vld [vmem:[%s5778_s14 + $0x18] sm:$0xff]  ;;  %v350_v1 = vld [vmem:[%s5738_s9 + $0x8] sm:$0xff]  ;;  %s5710_s14 = smov 56   ;;  %s5720_s18 = smov 16   ;;  %vm2356_vm13 = vcmask 130048  }
  0x3e   :  { %4626 = vmatmul.mubr.msk.f32.gmra.mrb[4].mxu1 %vm151_vm1, %v132_v6  ;;  %v5104_v21 = vpack.c.bf16 %v511_v19, %v510_v18  ;;  %v5108_v23 = vpack.c.bf16 %v513_v22, %v512_v20  ;;  %v4182_v24 = vld [vmem:[%s5773_s8] ss:$0 sm:$0xff]  ;;  %v351_v2 = vld [vmem:[%s5738_s9 + $0x10] sm:$0xff]  ;;  %v352_v3 = vld [vmem:[%s5738_s9 + $0x18] sm:$0xff]  ;;  %s6825_s8 = sld [smem:[#allocation7_spill]]  ;;  %s6830_s22 = sld [smem:[#allocation9_spill]] }
  0x3f   :  { %4628 = vmatprep.mubr.msk.f32.mxu1 %vm151_vm1, %v133_v7  ;;  %v353_v4 = vld [vmem:[%s5738_s9 + $0x20] sm:$0xff]  ;;  %v354_v5 = vld [vmem:[%s5738_s9 + $0x28] sm:$0xff]  ;;  %v355_v6 = vld [vmem:[%s5738_s9 + $0x30] sm:$0xff]  ;;  %s5721_s23 = smov 24   ;;  %s6831_s26 = sld [smem:[#allocation10_spill]]  ;;  %vm2359_vm14 = vcmask 195584  }
  0x40   :  { %5105 = vmatprep.subr.bf16.mxu0 %v5104_v21  ;;  %v356_v7 = vld [vmem:[%s5738_s9 + $0x38] sm:$0xff]  ;;  %v717_v19 = vld [vmem:[%s5788_s24 + $0x10] sm:$0xff]  ;;  %vm6387_vm7 = vmpackc.low %vm1514_vm6, %vm1514_vm6  ;;  %s6832_s28 = sld [smem:[#allocation15_spill]]  ;;  %s6833_s1 = sld [smem:[#allocation17_spill]]  ;;  %vm4136_vm15 = vcmask 779264  }
  0x41   :  { %5107 = vmatpush3.bf16.msra.mxu0 %v5104_v21  ;;  %v718_v20 = vld [vmem:[%s5788_s24 + $0x18] sm:$0xff]  ;;  %vm6432_vm12 = vmpackc.low %vm1637_vm10, %vm5714_vm11  ;;  %s6834_s2 = sld [smem:[#allocation13_spill]]  ;;  %s6835_s7 = sld [smem:[#allocation14_spill]] }
  0x42   :  { %4629 = vmatmul.mubr.msk.f32.gmra.mrb[6].mxu1 %vm151_vm1, %v134_v8  ;;  %5109 = vmatprep.subr.bf16.mxu0 %v5108_v23  ;;  %v357_v8 = vld [vmem:[%s5738_s9 + $0x40] sm:$0xff]  ;;  %s6836_s10 = sld [smem:[#allocation16_spill]]  ;;  %s6838_s11 = sld [smem:[#allocation6_spill]] }
  0x43   :  { %4631 = vmatprep.mubr.msk.f32.mxu1 %vm151_vm1, %v135_v9  ;;  %v358_v9 = vld [vmem:[%s5738_s9 + $0x48] sm:$0xff] }
  0x45   :  { %5111 = vmatpush3.bf16.msra.mxu0 %v5108_v23  ;;  %v5116_v23 = vpack.c.bf16 %v718_v20, %v717_v19 }
  0x46   :  { %4632 = vmatmul.mubr.msk.f32.gmra.mrb[8].mxu1 %vm151_vm1, %v136_v10  ;;  %v359_v10 = vld [vmem:[%s5738_s9 + $0x50] sm:$0xff] }
  0x47   :  { %4634 = vmatprep.mubr.msk.f32.mxu1 %vm151_vm1, %v137_v11  ;;  %v360_v11 = vld [vmem:[%s5738_s9 + $0x58] sm:$0xff] }
  0x4a   :  { %4635 = vmatmul.mubr.msk.f32.gmra.mrb[10].mxu1 %vm151_vm1, %v138_v12  ;;  %v361_v12 = vld [vmem:[%s5738_s9 + $0x60] sm:$0xff] }
  0x4b   :  { %4637 = vmatprep.mubr.msk.f32.mxu1 %vm151_vm1, %v139_v13  ;;  %v362_v13 = vld [vmem:[%s5738_s9 + $0x68] sm:$0xff] }
  0x4e   :  { %4638 = vmatmul.mubr.msk.f32.gmra.mrb[12].mxu1 %vm151_vm1, %v140_v14  ;;  %v363_v14 = vld [vmem:[%s5738_s9 + $0x70] sm:$0xff] }
  0x4f   :  { %4640 = vmatprep.mubr.msk.f32.mxu1 %vm151_vm1, %v141_v15  ;;  %v364_v15 = vld [vmem:[%s5738_s9 + $0x78] sm:$0xff]  ;;  %s6824_s9 = sld [smem:[#allocation8_spill]] }
  0x52   :  { %4641 = vmatmul.mubr.msk.f32.gmra.mrb[14].mxu1 %vm151_vm1, %v142_v16  ;;  %v715_v16 = vld [vmem:[%s5788_s24] sm:$0xff] }
  0x53   :  { %4675 = vmatprep.mubr.f32.mxu1 %v349_v17  ;;  %v716_v17 = vld [vmem:[%s5788_s24 + $0x8] sm:$0xff]  ;;  %s5712_s24 = smov 80  }
  0x54   :  { %v5112_v18 = vpack.c.bf16 %v716_v17, %v715_v16 }
  0x56   :  { %5113 = vmatprep.subr.bf16.mxu0 %v5112_v18 }
 0x109   :  { %v4621_v25 = vpop.f32.mrb[0].mxu1 }
 0x10a   :  { %v5924_v26 = vadd.f32 %v4621_v25, %v4182_v24  ;;  %v270_v27 = vpop.f32.mrb[1].mxu1 }
 0x10b   :  { %v5926_v28 = vadd.f32 %v4182_v24, %v270_v27 }
 0x10d   :  { %v5072_v29 = vpack.c.bf16 %v5924_v26, %v5926_v28  ;;  %v4624_v30 = vpop.f32.mrb[2].mxu1 }
 0x10e   :  { %v5930_v31 = vadd.f32 %v4624_v30, %v4182_v24  ;;  %v280_v32 = vpop.f32.mrb[3].mxu1 }
 0x10f   :  { %v5932_v33 = vadd.f32 %v4182_v24, %v280_v32  ;;  %5073 = vmatprep.subr.bf16.mxu1 %v5072_v29 }
 0x110   :  { %5075 = vmatpush3.bf16.msra.mxu1 %v5072_v29 }
 0x111   :  { %v5076_v34 = vpack.c.bf16 %v5930_v31, %v5932_v33  ;;  %v4627_v35 = vpop.f32.mrb[4].mxu1 }
 0x112   :  { %v5936_v36 = vadd.f32 %v4627_v35, %v4182_v24  ;;  %v290_v37 = vpop.f32.mrb[5].mxu1 }
 0x113   :  { %v5938_v38 = vadd.f32 %v4182_v24, %v290_v37  ;;  %5077 = vmatprep.subr.bf16.mxu1 %v5076_v34 }
 0x114   :  { %5079 = vmatpush3.bf16.msra.mxu1 %v5076_v34 }
 0x115   :  { %v5080_v39 = vpack.c.bf16 %v5936_v36, %v5938_v38  ;;  %v4630_v40 = vpop.f32.mrb[6].mxu1 }
 0x116   :  { %v5942_v41 = vadd.f32 %v4630_v40, %v4182_v24  ;;  %v300_v42 = vpop.f32.mrb[7].mxu1 }
 0x117   :  { %v5944_v43 = vadd.f32 %v4182_v24, %v300_v42  ;;  %5081 = vmatprep.subr.bf16.mxu1 %v5080_v39 }
 0x118   :  { %5083 = vmatpush3.bf16.msra.mxu1 %v5080_v39 }
 0x119   :  { %v5084_v44 = vpack.c.bf16 %v5942_v41, %v5944_v43  ;;  %v4633_v45 = vpop.f32.mrb[8].mxu1 }
 0x11a   :  { %v5948_v46 = vadd.f32 %v4633_v45, %v4182_v24  ;;  %v310_v47 = vpop.f32.mrb[9].mxu1 }
 0x11b   :  { %v5950_v48 = vadd.f32 %v4182_v24, %v310_v47  ;;  %5085 = vmatprep.subr.bf16.mxu1 %v5084_v44 }
 0x11c   :  { %5087 = vmatpush3.bf16.msra.mxu1 %v5084_v44 }
 0x11d   :  { %v5088_v49 = vpack.c.bf16 %v5948_v46, %v5950_v48  ;;  %v4636_v50 = vpop.f32.mrb[10].mxu1 }
 0x11e   :  { %v5954_v51 = vadd.f32 %v4636_v50, %v4182_v24  ;;  %v320_v52 = vpop.f32.mrb[11].mxu1 }
 0x11f   :  { %v5956_v53 = vadd.f32 %v4182_v24, %v320_v52  ;;  %5089 = vmatprep.subr.bf16.mxu1 %v5088_v49 }
 0x120   :  { %5091 = vmatpush3.bf16.msra.mxu1 %v5088_v49 }
 0x121   :  { %v5092_v54 = vpack.c.bf16 %v5954_v51, %v5956_v53  ;;  %v4639_v55 = vpop.f32.mrb[12].mxu1 }
 0x122   :  { %v5960_v56 = vadd.f32 %v4639_v55, %v4182_v24  ;;  %v330_v57 = vpop.f32.mrb[13].mxu1 }
 0x123   :  { %v5962_v58 = vadd.f32 %v4182_v24, %v330_v57  ;;  %5093 = vmatprep.subr.bf16.mxu1 %v5092_v54 }
 0x124   :  { %5095 = vmatpush3.bf16.msra.mxu1 %v5092_v54 }
 0x125   :  { %v5096_v59 = vpack.c.bf16 %v5960_v56, %v5962_v58  ;;  %v4642_v60 = vpop.f32.mrb[14].mxu1 }
 0x126   :  { %v5966_v61 = vadd.f32 %v4642_v60, %v4182_v24  ;;  %v340_v62 = vpop.f32.mrb[15].mxu1 }
 0x127   :  { %v5968_v63 = vadd.f32 %v4182_v24, %v340_v62  ;;  %5097 = vmatprep.subr.bf16.mxu1 %v5096_v59 }
 0x128   :  { %5099 = vmatpush3.bf16.msra.mxu1 %v5096_v59 }
 0x129   :  { %v5100_v0 = vpack.c.bf16 %v5966_v61, %v5968_v63 }
 0x12b   :  { %5101 = vmatprep.subr.bf16.mxu1 %v5100_v0 }
 0x12c   :  { %5103 = vmatpush3.bf16.msra.mxu1 %v5100_v0 }
 0x12f   :  { %4676 = vmatmul.mubr.f32.vlgmr.msra.gmra.mrb[16].mxu1 %v350_v1 }
 0x130   :  { %4678 = vmatprep.mubr.f32.mxu1 %v351_v2 }
 0x133   :  { %4679 = vmatmul.mubr.f32.gmra.mrb[18].mxu1 %v352_v3 }
 0x134   :  { %4681 = vmatprep.mubr.f32.mxu1 %v353_v4 }
 0x137   :  { %4682 = vmatmul.mubr.f32.gmra.mrb[20].mxu1 %v354_v5 }
 0x138   :  { %4684 = vmatprep.mubr.f32.mxu1 %v355_v6 }
 0x13b   :  { %4685 = vmatmul.mubr.f32.gmra.mrb[22].mxu1 %v356_v7 }
 0x13c   :  { %4687 = vmatprep.mubr.f32.mxu1 %v357_v8 }
 0x13f   :  { %4688 = vmatmul.mubr.f32.gmra.mrb[24].mxu1 %v358_v9 }
 0x140   :  { %4690 = vmatprep.mubr.f32.mxu1 %v359_v10 }
 0x143   :  { %4691 = vmatmul.mubr.f32.gmra.mrb[26].mxu1 %v360_v11 }
 0x144   :  { %4693 = vmatprep.mubr.f32.mxu1 %v361_v12 }
 0x147   :  { %4694 = vmatmul.mubr.f32.gmra.mrb[28].mxu1 %v362_v13 }
 0x148   :  { %4696 = vmatprep.mubr.f32.mxu1 %v363_v14 }
 0x14b   :  { %4697 = vmatmul.mubr.f32.gmra.mrb[30].mxu1 %v364_v15 }
 0x202   :  { %v4677_v21 = vpop.f32.mrb[16].mxu1 }
 0x203   :  { %v431_v22 = vpop.f32.mrb[17].mxu1 }
 0x204   :  { %4707 = vmatprep.mubr.msk.f32.mxu0 %vm521_vm2, %v431_v22 }
 0x205   :  { %4708 = vmatmul.mubr.msk.f32.vlgmr.msra.gmra.mrb[0].mxu0 %vm521_vm2, %v4677_v21 }
 0x206   :  { %v4680_v24 = vpop.f32.mrb[18].mxu1  ;;  %5115 = vmatpush3.bf16.msra.mxu0 %v5112_v18 }
 0x207   :  { %v441_v25 = vpop.f32.mrb[19].mxu1  ;;  %5117 = vmatprep.subr.bf16.mxu0 %v5116_v23 }
 0x208   :  { %4710 = vmatprep.mubr.msk.f32.mxu0 %vm521_vm2, %v441_v25 }
 0x209   :  { %4711 = vmatmul.mubr.msk.f32.gmra.mrb[2].mxu0 %vm521_vm2, %v4680_v24 }
 0x20a   :  { %v4683_v27 = vpop.f32.mrb[20].mxu1  ;;  %5119 = vmatpush3.bf16.msra.mxu0 %v5116_v23 }
 0x20b   :  { %v451_v29 = vpop.f32.mrb[21].mxu1 }
 0x20c   :  { %4713 = vmatprep.mubr.msk.f32.mxu0 %vm521_vm2, %v451_v29 }
 0x20d   :  { %4714 = vmatmul.mubr.msk.f32.gmra.mrb[4].mxu0 %vm521_vm2, %v4683_v27 }
 0x20e   :  { %v4686_v30 = vpop.f32.mrb[22].mxu1 }
 0x20f   :  { %v461_v32 = vpop.f32.mrb[23].mxu1 }
 0x210   :  { %4716 = vmatprep.mubr.msk.f32.mxu0 %vm521_vm2, %v461_v32 }
 0x211   :  { %4717 = vmatmul.mubr.msk.f32.gmra.mrb[6].mxu0 %vm521_vm2, %v4686_v30 }
 0x212   :  { %v4689_v34 = vpop.f32.mrb[24].mxu1 }
 0x213   :  { %v471_v35 = vpop.f32.mrb[25].mxu1 }
 0x214   :  { %4719 = vmatprep.mubr.msk.f32.mxu0 %vm521_vm2, %v471_v35 }
 0x215   :  { %4720 = vmatmul.mubr.msk.f32.gmra.mrb[8].mxu0 %vm521_vm2, %v4689_v34 }
 0x216   :  { %v4692_v37 = vpop.f32.mrb[26].mxu1 }
 0x217   :  { %v481_v39 = vpop.f32.mrb[27].mxu1 }
 0x218   :  { %4722 = vmatprep.mubr.msk.f32.mxu0 %vm521_vm2, %v481_v39 }
 0x219   :  { %4723 = vmatmul.mubr.msk.f32.gmra.mrb[10].mxu0 %vm521_vm2, %v4692_v37 }
 0x21a   :  { %v4695_v40 = vpop.f32.mrb[28].mxu1 }
 0x21b   :  { %v491_v42 = vpop.f32.mrb[29].mxu1 }
 0x21c   :  { %4725 = vmatprep.mubr.msk.f32.mxu0 %vm521_vm2, %v491_v42 }
 0x21d   :  { %4726 = vmatmul.mubr.msk.f32.gmra.mrb[12].mxu0 %vm521_vm2, %v4695_v40 }
 0x21e   :  { %v4698_v44 = vpop.f32.mrb[30].mxu1 }
 0x21f   :  { %v501_v45 = vpop.f32.mrb[31].mxu1 }
 0x220   :  { %4728 = vmatprep.mubr.msk.f32.mxu0 %vm521_vm2, %v501_v45 }
 0x221   :  { %4729 = vmatmul.mubr.msk.f32.gmra.mrb[14].mxu0 %vm521_vm2, %v4698_v44 }
 0x222   :  { %4739 = vmatprep.mubr.msk.f32.mxu0 %vm521_vm2, %v5926_v28 }
 0x225   :  { %4740 = vmatmul.mubr.msk.f32.vlgmr.msra.gmra.mrb[0].mxu0 %vm521_vm2, %v5924_v26  ;;  %v6040_v26 = vld [vmem:[%s5783_s19] ss:$0 sm:$0xff]  ;;  %s5711_s19 = smov 64  }
 0x226   :  { %4742 = vmatprep.mubr.msk.f32.mxu0 %vm521_vm2, %v5932_v33 }
 0x229   :  { %4743 = vmatmul.mubr.msk.f32.gmra.mrb[2].mxu0 %vm521_vm2, %v5930_v31 }
 0x22a   :  { %4745 = vmatprep.mubr.msk.f32.mxu0 %vm521_vm2, %v5938_v38 }
 0x22d   :  { %4746 = vmatmul.mubr.msk.f32.gmra.mrb[4].mxu0 %vm521_vm2, %v5936_v36 }
 0x22e   :  { %4748 = vmatprep.mubr.msk.f32.mxu0 %vm521_vm2, %v5944_v43 }
 0x231   :  { %4749 = vmatmul.mubr.msk.f32.gmra.mrb[6].mxu0 %vm521_vm2, %v5942_v41 }
 0x232   :  { %4751 = vmatprep.mubr.msk.f32.mxu0 %vm521_vm2, %v5950_v48 }
 0x235   :  { %4752 = vmatmul.mubr.msk.f32.gmra.mrb[8].mxu0 %vm521_vm2, %v5948_v46 }
 0x236   :  { %4754 = vmatprep.mubr.msk.f32.mxu0 %vm521_vm2, %v5956_v53 }
 0x239   :  { %4755 = vmatmul.mubr.msk.f32.gmra.mrb[10].mxu0 %vm521_vm2, %v5954_v51 }
 0x23a   :  { %4757 = vmatprep.mubr.msk.f32.mxu0 %vm521_vm2, %v5962_v58 }
 0x23d   :  { %4758 = vmatmul.mubr.msk.f32.gmra.mrb[12].mxu0 %vm521_vm2, %v5960_v56 }
 0x23e   :  { %4760 = vmatprep.mubr.msk.f32.mxu0 %vm521_vm2, %v5968_v63 }
 0x241   :  { %4761 = vmatmul.mubr.msk.f32.gmra.mrb[14].mxu0 %vm521_vm2, %v5966_v61 }
 0x2f8   :  { %v4741_v28 = vpop.f32.mrb[0].mxu0 }
 0x2f9   :  { %v833_v31 = vpop.f32.mrb[1].mxu0  ;;  %v6043_v33 = vadd.f32 %v4741_v28, %v6040_v26 }
 0x2fa   :  { %v6046_v36 = vadd.f32 %v6040_v26, %v833_v31 }
 0x2fb   :  { %v929_v47 = vmax.f32 %v6043_v33, 0.0 }
 0x2fc   :  { %v928_v38 = vmax.f32 %v6046_v36, 0.0  ;;  %v4744_v41 = vpop.f32.mrb[2].mxu0 }
 0x2fd   :  { %v6050_v43 = vadd.f32 %v4744_v41, %v6040_v26  ;;  %v843_v46 = vpop.f32.mrb[3].mxu0  ;;  %v949_v57 = vsel %vm521_vm2, %v929_v47, 0.0 }
 0x2fe   :  { %v6054_v48 = vadd.f32 %v6040_v26, %v843_v46  ;;  %v946_v49 = vsel %vm521_vm2, %v928_v38, 0.0 }
 0x2ff   :  { %v931_v50 = vmax.f32 %v6050_v43, 0.0  ;;  %947 = vadd.xlane.f32.xlu0 %v946_v49 }
 0x300   :  { %v4747_v51 = vpop.f32.mrb[4].mxu0  ;;  %v930_v52 = vmax.f32 %v6054_v48, 0.0 }
 0x301   :  { %v6062_v53 = vadd.f32 %v4747_v51, %v6040_v26  ;;  %v853_v54 = vpop.f32.mrb[5].mxu0  ;;  %v955_v55 = vsel %vm521_vm2, %v931_v50, 0.0 }
 0x302   :  { %v6068_v56 = vadd.f32 %v6040_v26, %v853_v54  ;;  %956 = vadd.xlane.f32.xlu1 %v955_v55  ;;  %v952_v63 = vsel %vm521_vm2, %v930_v52, 0.0 }
 0x303   :  { %950 = vadd.xlane.f32.xlu0 %v949_v57  ;;  %v933_v60 = vmax.f32 %v6062_v53, 0.0 }
 0x304   :  { %v932_v58 = vmax.f32 %v6068_v56, 0.0  ;;  %v4750_v59 = vpop.f32.mrb[6].mxu0 }
 0x305   :  { %v6076_v61 = vadd.f32 %v4750_v59, %v6040_v26  ;;  %v863_v62 = vpop.f32.mrb[7].mxu0  ;;  %v961_v7 = vsel %vm521_vm2, %v933_v60, 0.0 }
 0x306   :  { %v6082_v0 = vadd.f32 %v6040_v26, %v863_v62  ;;  %953 = vadd.xlane.f32.xlu1 %v952_v63  ;;  %v958_v1 = vsel %vm521_vm2, %v932_v58, 0.0 }
 0x307   :  { %959 = vadd.xlane.f32.xlu0 %v958_v1  ;;  %v935_v4 = vmax.f32 %v6076_v61, 0.0 }
 0x308   :  { %v934_v2 = vmax.f32 %v6082_v0, 0.0  ;;  %v4753_v3 = vpop.f32.mrb[8].mxu0 }
 0x309   :  { %v6090_v5 = vadd.f32 %v4753_v3, %v6040_v26  ;;  %v873_v6 = vpop.f32.mrb[9].mxu0  ;;  %v967_v15 = vsel %vm521_vm2, %v935_v4, 0.0 }
 0x30a   :  { %v6096_v8 = vadd.f32 %v6040_v26, %v873_v6  ;;  %962 = vadd.xlane.f32.xlu1 %v961_v7  ;;  %v964_v9 = vsel %vm521_vm2, %v934_v2, 0.0 }
 0x30b   :  { %965 = vadd.xlane.f32.xlu0 %v964_v9  ;;  %v937_v12 = vmax.f32 %v6090_v5, 0.0 }
 0x30c   :  { %v936_v10 = vmax.f32 %v6096_v8, 0.0  ;;  %v4756_v11 = vpop.f32.mrb[10].mxu0 }
 0x30d   :  { %v6104_v13 = vadd.f32 %v4756_v11, %v6040_v26  ;;  %v883_v14 = vpop.f32.mrb[11].mxu0  ;;  %v973_v23 = vsel %vm521_vm2, %v937_v12, 0.0 }
 0x30e   :  { %v6110_v16 = vadd.f32 %v6040_v26, %v883_v14  ;;  %968 = vadd.xlane.f32.xlu1 %v967_v15  ;;  %v970_v17 = vsel %vm521_vm2, %v936_v10, 0.0 }
 0x30f   :  { %971 = vadd.xlane.f32.xlu0 %v970_v17  ;;  %v939_v20 = vmax.f32 %v6104_v13, 0.0 }
 0x310   :  { %v938_v18 = vmax.f32 %v6110_v16, 0.0  ;;  %v4759_v19 = vpop.f32.mrb[12].mxu0 }
 0x311   :  { %v6118_v21 = vadd.f32 %v4759_v19, %v6040_v26  ;;  %v893_v22 = vpop.f32.mrb[13].mxu0  ;;  %v979_v35 = vsel %vm521_vm2, %v939_v20, 0.0 }
 0x312   :  { %v6124_v24 = vadd.f32 %v6040_v26, %v893_v22  ;;  %974 = vadd.xlane.f32.xlu1 %v973_v23  ;;  %v976_v25 = vsel %vm521_vm2, %v938_v18, 0.0 }
 0x313   :  { %977 = vadd.xlane.f32.xlu0 %v976_v25  ;;  %v941_v30 = vmax.f32 %v6118_v21, 0.0 }
 0x314   :  { %v940_v27 = vmax.f32 %v6124_v24, 0.0  ;;  %v4762_v29 = vpop.f32.mrb[14].mxu0 }
 0x315   :  { %v6132_v32 = vadd.f32 %v4762_v29, %v6040_v26  ;;  %v903_v34 = vpop.f32.mrb[15].mxu0  ;;  %v985_v44 = vsel %vm521_vm2, %v941_v30, 0.0 }
 0x316   :  { %v6138_v37 = vadd.f32 %v6040_v26, %v903_v34  ;;  %980 = vadd.xlane.f32.xlu1 %v979_v35  ;;  %v982_v39 = vsel %vm521_vm2, %v940_v27, 0.0 }
 0x317   :  { %983 = vadd.xlane.f32.xlu0 %v982_v39  ;;  %v943_v42 = vmax.f32 %v6132_v32, 0.0  ;;  %v5704_v32 = vmov 0.0|0.0  }
 0x318   :  { %v942_v40 = vmax.f32 %v6138_v37, 0.0  ;;  %5120 = vmatprep.subr.bf16.mxu1 %v5704_v32 }
 0x319   :  { %v991_v26 = vsel %vm521_vm2, %v943_v42, 0.0 }
 0x31a   :  { %986 = vadd.xlane.f32.xlu1 %v985_v44  ;;  %v988_v45 = vsel %vm521_vm2, %v942_v40, 0.0 }
 0x31b   :  { %989 = vadd.xlane.f32.xlu0 %v988_v45 }
 0x31e   :  { %992 = vadd.xlane.f32.xlu1 %v991_v26 }
 0x38c   :  { %v948_v28 = vpop.xlane.xlu0 %947 }
 0x38d   :  { %v995_v31 = vmul.f32 0.03125, %v948_v28 }
 0x38f   :  { %v6156_v41 = vsub.f32 %v928_v38, %v995_v31  ;;  %v957_v46 = vpop.xlane.xlu1 %956 }
 0x390   :  { %v998_v49 = vmul.f32 0.03125, %v957_v46  ;;  %v951_v51 = vpop.xlane.xlu0 %950 }
 0x391   :  { %v996_v54 = vmul.f32 0.03125, %v951_v51  ;;  %v1027_v55 = vmul.f32 %v6156_v41, %v6156_v41 }
 0x392   :  { %v6162_v57 = vsub.f32 %v931_v50, %v998_v49 }
 0x393   :  { %v6166_v59 = vsub.f32 %v929_v47, %v996_v54  ;;  %v954_v62 = vpop.xlane.xlu1 %953  ;;  %v1043_v36 = vsel %vm521_vm2, %v1027_v55, 0.0 }
 0x394   :  { %v997_v38 = vmul.f32 0.03125, %v954_v62  ;;  %v960_v63 = vpop.xlane.xlu0 %959  ;;  %1044 = vadd.xlane.f32.xlu0 %v1043_v36  ;;  %v1030_v50 = vmul.f32 %v6162_v57, %v6162_v57 }
 0x395   :  { %v999_v1 = vmul.f32 0.03125, %v960_v63  ;;  %v1028_v3 = vmul.f32 %v6166_v59, %v6166_v59 }
 0x396   :  { %v6173_v6 = vsub.f32 %v930_v52, %v997_v38  ;;  %v1052_v17 = vsel %vm521_vm2, %v1030_v50, 0.0 }
 0x397   :  { %v6177_v43 = vsub.f32 %v932_v58, %v999_v1  ;;  %v963_v33 = vpop.xlane.xlu1 %962  ;;  %v1046_v47 = vsel %vm521_vm2, %v1028_v3, 0.0 }
 0x398   :  { %v1000_v7 = vmul.f32 0.03125, %v963_v33  ;;  %v966_v9 = vpop.xlane.xlu0 %965  ;;  %1047 = vadd.xlane.f32.xlu1 %v1046_v47  ;;  %v1029_v11 = vmul.f32 %v6173_v6, %v6173_v6 }
 0x399   :  { %v1001_v14 = vmul.f32 0.03125, %v966_v9  ;;  %v1031_v56 = vmul.f32 %v6177_v43, %v6177_v43 }
 0x39a   :  { %v6186_v48 = vsub.f32 %v933_v60, %v1000_v7  ;;  %v1049_v52 = vsel %vm521_vm2, %v1029_v11, 0.0 }
 0x39b   :  { %v6193_v58 = vsub.f32 %v934_v2, %v1001_v14  ;;  %v969_v15 = vpop.xlane.xlu1 %968  ;;  %1050 = vadd.xlane.f32.xlu0 %v1049_v52  ;;  %v1055_v25 = vsel %vm521_vm2, %v1031_v56, 0.0 }
 0x39c   :  { %v1002_v19 = vmul.f32 0.03125, %v969_v15  ;;  %v972_v22 = vpop.xlane.xlu0 %971  ;;  %1053 = vadd.xlane.f32.xlu1 %v1052_v17  ;;  %v1032_v53 = vmul.f32 %v6186_v48, %v6186_v48 }
 0x39d   :  { %v1003_v60 = vmul.f32 0.03125, %v972_v22  ;;  %v1033_v2 = vmul.f32 %v6193_v58, %v6193_v58 }
 0x39e   :  { %v6200_v23 = vsub.f32 %v935_v4, %v1002_v19  ;;  %v1058_v0 = vsel %vm521_vm2, %v1032_v53, 0.0 }
 0x39f   :  { %v6208_v29 = vsub.f32 %v936_v10, %v1003_v60  ;;  %v975_v34 = vpop.xlane.xlu1 %974  ;;  %1056 = vadd.xlane.f32.xlu0 %v1055_v25  ;;  %v1061_v45 = vsel %vm521_vm2, %v1033_v2, 0.0 }
 0x3a0   :  { %v1004_v35 = vmul.f32 0.03125, %v975_v34  ;;  %v978_v39 = vpop.xlane.xlu0 %977  ;;  %1059 = vadd.xlane.f32.xlu1 %v1058_v0  ;;  %v1034_v61 = vmul.f32 %v6200_v23, %v6200_v23 }
 0x3a1   :  { %v1005_v4 = vmul.f32 0.03125, %v978_v39  ;;  %v1035_v8 = vmul.f32 %v6208_v29, %v6208_v29 }
 0x3a2   :  { %v6214_v44 = vsub.f32 %v937_v12, %v1004_v35  ;;  %v1064_v26 = vsel %vm521_vm2, %v1034_v61, 0.0 }
 0x3a3   :  { %v6222_v10 = vsub.f32 %v938_v18, %v1005_v4  ;;  %v981_v28 = vpop.xlane.xlu1 %980  ;;  %1062 = vadd.xlane.f32.xlu0 %v1061_v45  ;;  %v1067_v51 = vsel %vm521_vm2, %v1035_v8, 0.0 }
 0x3a4   :  { %v1006_v31 = vmul.f32 0.03125, %v981_v28  ;;  %v984_v46 = vpop.xlane.xlu0 %983  ;;  %1065 = vadd.xlane.f32.xlu1 %v1064_v26  ;;  %v1036_v5 = vmul.f32 %v6214_v44, %v6214_v44 }
 0x3a5   :  { %v1007_v12 = vmul.f32 0.03125, %v984_v46  ;;  %v1037_v16 = vmul.f32 %v6222_v10, %v6222_v10 }
 0x3a6   :  { %v6228_v49 = vsub.f32 %v939_v20, %v1006_v31  ;;  %v1070_v54 = vsel %vm521_vm2, %v1036_v5, 0.0  ;;  %v6270_v31 = vld [vmem:[%s5793_s30] ss:$0 sm:$0xff]  ;;  %s5713_s30 = smov 112  }
 0x3a7   :  { %v6236_v18 = vsub.f32 %v940_v27, %v1007_v12  ;;  %v987_v55 = vpop.xlane.xlu1 %986  ;;  %1068 = vadd.xlane.f32.xlu0 %v1067_v51  ;;  %v1073_v63 = vsel %vm521_vm2, %v1037_v16, 0.0 }
 0x3a8   :  { %v1008_v62 = vmul.f32 0.03125, %v987_v55  ;;  %1071 = vadd.xlane.f32.xlu1 %v1070_v54  ;;  %v990_v36 = vpop.xlane.xlu0 %989  ;;  %v1038_v13 = vmul.f32 %v6228_v49, %v6228_v49 }
 0x3a9   :  { %v1009_v20 = vmul.f32 0.03125, %v990_v36  ;;  %v1039_v24 = vmul.f32 %v6236_v18, %v6236_v18 }
 0x3aa   :  { %v6242_v38 = vsub.f32 %v941_v30, %v1008_v62  ;;  %v1076_v1 = vsel %vm521_vm2, %v1038_v13, 0.0  ;;  %v6275_v13 = vld [vmem:[%s5798_s6] ss:$0 sm:$0xff]  ;;  %s5715_s6 = smov 48  }
 0x3ab   :  { %v6250_v27 = vsub.f32 %v942_v40, %v1009_v20  ;;  %v993_v3 = vpop.xlane.xlu1 %992  ;;  %1074 = vadd.xlane.f32.xlu0 %v1073_v63  ;;  %v1079_v47 = vsel %vm521_vm2, %v1039_v24, 0.0 }
 0x3ac   :  { %v1010_v33 = vmul.f32 0.03125, %v993_v3  ;;  %1077 = vadd.xlane.f32.xlu1 %v1076_v1  ;;  %v1040_v21 = vmul.f32 %v6242_v38, %v6242_v38 }
 0x3ad   :  { %v1041_v37 = vmul.f32 %v6250_v27, %v6250_v27 }
 0x3ae   :  { %v6256_v30 = vsub.f32 %v943_v42, %v1010_v33  ;;  %v1082_v50 = vsel %vm521_vm2, %v1040_v21, 0.0  ;;  %v5706_v42 = vmov 0.0  }
 0x3af   :  { %1080 = vadd.xlane.f32.xlu0 %v1079_v47  ;;  %v1085_v7 = vsel %vm521_vm2, %v1041_v37, 0.0  ;;  %4795 = vmatprep.mubr.msk.f32.mxu1 %vm5705_vm3, %v5706_v42 }
 0x3b0   :  { %1083 = vadd.xlane.f32.xlu1 %v1082_v50  ;;  %v1042_v40 = vmul.f32 %v6256_v30, %v6256_v30 }
 0x3b2   :  { %v1088_v9 = vsel %vm521_vm2, %v1042_v40, 0.0 }
 0x3b3   :  { %1086 = vadd.xlane.f32.xlu0 %v1085_v7 }
 0x3b4   :  { %1089 = vadd.xlane.f32.xlu1 %v1088_v9 }
 0x421   :  { %v1045_v11 = vpop.xlane.xlu0 %1044 }
 0x422   :  { %v1091_v14 = vmul.f32 0.03125, %v1045_v11 }
 0x424   :  { %v1107_v52 = vadd.f32 1e-05, %v1091_v14 }
 0x425   :  { %v1048_v56 = vpop.xlane.xlu1 %1047 }
 0x426   :  { %5536 = vrsqrt.f32 %v1107_v52  ;;  %v1092_v15 = vmul.f32 0.03125, %v1048_v56 }
 0x428   :  { %v1108_v17 = vadd.f32 1e-05, %v1092_v15  ;;  %v1051_v19 = vpop.xlane.xlu0 %1050 }
 0x429   :  { %v1093_v22 = vmul.f32 0.03125, %v1051_v19  ;;  %v1054_v53 = vpop.xlane.xlu1 %1053 }
 0x42a   :  { %5538 = vrsqrt.f32 %v1108_v17  ;;  %v1094_v60 = vmul.f32 0.03125, %v1054_v53 }
 0x42b   :  { %v1109_v25 = vadd.f32 1e-05, %v1093_v22 }
 0x42c   :  { %v1110_v0 = vadd.f32 1e-05, %v1094_v60  ;;  %v1057_v2 = vpop.xlane.xlu0 %1056 }
 0x42d   :  { %5540 = vrsqrt.f32 %v1109_v25  ;;  %v1095_v34 = vmul.f32 0.03125, %v1057_v2  ;;  %v1060_v35 = vpop.xlane.xlu1 %1059 }
 0x42e   :  { %5542 = vrsqrt.f32 %v1110_v0  ;;  %v1096_v39 = vmul.f32 0.03125, %v1060_v35 }
 0x42f   :  { %v1111_v61 = vadd.f32 1e-05, %v1095_v34 }
 0x430   :  { %v5537_v4 = vpop.eup %5536  ;;  %v1112_v45 = vadd.f32 1e-05, %v1096_v39  ;;  %v1063_v26 = vpop.xlane.xlu0 %1062 }
 0x431   :  { %5544 = vrsqrt.f32 %v1111_v61  ;;  %v1097_v8 = vmul.f32 0.03125, %v1063_v26  ;;  %v1066_v28 = vpop.xlane.xlu1 %1065  ;;  %v1139_v46 = vmul.f32 %v5537_v4, %v6156_v41 }
 0x432   :  { %5546 = vrsqrt.f32 %v1112_v45  ;;  %v1098_v5 = vmul.f32 0.03125, %v1066_v28 }
 0x433   :  { %v1113_v12 = vadd.f32 1e-05, %v1097_v8  ;;  %v1161_v55 = vmul.f32 %v6270_v31, %v1139_v46 }
 0x434   :  { %v5539_v51 = vpop.eup %5538  ;;  %v1114_v54 = vadd.f32 1e-05, %v1098_v5  ;;  %v1069_v16 = vpop.xlane.xlu0 %1068 }
 0x435   :  { %5548 = vrsqrt.f32 %v1113_v12  ;;  %v1099_v62 = vmul.f32 0.03125, %v1069_v16  ;;  %v1072_v36 = vpop.xlane.xlu1 %1071  ;;  %v1140_v20 = vmul.f32 %v5539_v51, %v6166_v59  ;;  %v1183_v47 = vadd.f32 %v6275_v13, %v1161_v55 }
 0x436   :  { %5550 = vrsqrt.f32 %v1114_v54  ;;  %v1100_v63 = vmul.f32 0.03125, %v1072_v36 }
 0x437   :  { %v5541_v1 = vpop.eup %5540  ;;  %v1115_v24 = vadd.f32 1e-05, %v1099_v62  ;;  %v1162_v41 = vmul.f32 %v6270_v31, %v1140_v20 }
 0x438   :  { %v5543_v3 = vpop.eup %5542  ;;  %v1116_v33 = vadd.f32 1e-05, %v1100_v63  ;;  %v1075_v21 = vpop.xlane.xlu0 %1074  ;;  %v1141_v50 = vmul.f32 %v5541_v1, %v6173_v6 }
 0x439   :  { %5552 = vrsqrt.f32 %v1115_v24  ;;  %v1101_v37 = vmul.f32 0.03125, %v1075_v21  ;;  %v1078_v40 = vpop.xlane.xlu1 %1077  ;;  %v1184_v7 = vadd.f32 %v6275_v13, %v1162_v41  ;;  %v1142_v59 = vmul.f32 %v5543_v3, %v6162_v57 }
 0x43a   :  { %5554 = vrsqrt.f32 %v1116_v33  ;;  %v1102_v9 = vmul.f32 0.03125, %v1078_v40  ;;  %v1163_v11 = vmul.f32 %v6270_v31, %v1141_v50 }
 0x43b   :  { %v5545_v14 = vpop.eup %5544  ;;  %v1117_v52 = vadd.f32 1e-05, %v1101_v37  ;;  %v5121_v56 = vpack.c.bf16 %v1184_v7, %v1183_v47  ;;  %v1164_v15 = vmul.f32 %v6270_v31, %v1142_v59 }
 0x43c   :  { %v5547_v17 = vpop.eup %5546  ;;  %v1118_v19 = vadd.f32 1e-05, %v1102_v9  ;;  %v1081_v22 = vpop.xlane.xlu0 %1080  ;;  %v1185_v6 = vadd.f32 %v6275_v13, %v1163_v11  ;;  %v1143_v53 = vmul.f32 %v5545_v14, %v6177_v43 }
 0x43d   :  { %5556 = vrsqrt.f32 %v1117_v52  ;;  %v1103_v60 = vmul.f32 0.03125, %v1081_v22  ;;  %v1084_v25 = vpop.xlane.xlu1 %1083  ;;  %5122 = vmatpush3.bf16.msra.mxu1 %v5121_v56  ;;  %v1186_v57 = vadd.f32 %v6275_v13, %v1164_v15  ;;  %v1144_v0 = vmul.f32 %v5547_v17, %v6186_v48 }
 0x43e   :  { %5558 = vrsqrt.f32 %v1118_v19  ;;  %v1104_v2 = vmul.f32 0.03125, %v1084_v25  ;;  %5123 = vmatprep.subr.bf16.mxu1 %v5704_v32  ;;  %v1165_v34 = vmul.f32 %v6270_v31, %v1143_v53 }
 0x43f   :  { %v5549_v35 = vpop.eup %5548  ;;  %v1119_v39 = vadd.f32 1e-05, %v1103_v60  ;;  %v5124_v61 = vpack.c.bf16 %v1186_v57, %v1185_v6  ;;  %v1166_v4 = vmul.f32 %v6270_v31, %v1144_v0  ;;  %v1272_v0 = vld [vmem:[%s5803_s12] sm:$0xff] }
 0x440   :  { %v5551_v43 = vpop.eup %5550  ;;  %v1120_v45 = vadd.f32 1e-05, %v1104_v2  ;;  %v1087_v26 = vpop.xlane.xlu0 %1086  ;;  %v1187_v8 = vadd.f32 %v6275_v13, %v1165_v34  ;;  %v1145_v28 = vmul.f32 %v5549_v35, %v6193_v58 }
 0x441   :  { %5560 = vrsqrt.f32 %v1119_v39  ;;  %v1105_v48 = vmul.f32 0.03125, %v1087_v26  ;;  %v1090_v46 = vpop.xlane.xlu1 %1089  ;;  %5125 = vmatpush3.bf16.msra.mxu1 %v5124_v61  ;;  %v1188_v5 = vadd.f32 %v6275_v13, %v1166_v4  ;;  %v1146_v12 = vmul.f32 %v5551_v43, %v6200_v23  ;;  %v1274_v39 = vld [vmem:[%s5803_s12 + $0x10] sm:$0xff]  ;;  %v1275_v61 = vld [vmem:[%s5803_s12 + $0x18] sm:$0xff]  ;;  %v1199_v4 = vld [vmem:[%s5753_s21] sm:$0x3]  ;;  %s5708_s21 = smov 96  }
 0x442   :  { %5562 = vrsqrt.f32 %v1120_v45  ;;  %v1106_v51 = vmul.f32 0.03125, %v1090_v46  ;;  %5126 = vmatprep.subr.bf16.mxu1 %v5704_v32  ;;  %v1167_v54 = vmul.f32 %v6270_v31, %v1145_v28  ;;  %v1270_v43 = vld [vmem:[%s5743_s13] sm:$0xff]  ;;  %v1277_v26 = vld [vmem:[%s5803_s12 + $0x28] sm:$0xff]  ;;  %v1279_v28 = vld [vmem:[%s5803_s12 + $0x38] sm:$0xff] }
 0x443   :  { %v5553_v16 = vpop.eup %5552  ;;  %v1121_v55 = vadd.f32 1e-05, %v1105_v48  ;;  %v5127_v62 = vpack.c.bf16 %v1188_v5, %v1187_v8  ;;  %v1168_v36 = vmul.f32 %v6270_v31, %v1146_v12  ;;  %v1276_v45 = vld [vmem:[%s5803_s12 + $0x20] sm:$0xff]  ;;  %v1278_v8 = vld [vmem:[%s5803_s12 + $0x30] sm:$0xff]  ;;  %v1271_v46 = vld [vmem:[%s5743_s13 + $0x8] sm:$0x3f] }
 0x444   :  { %v5555_v58 = vpop.eup %5554  ;;  %v1147_v20 = vmul.f32 %v5553_v16, %v6208_v29  ;;  %v1122_v63 = vadd.f32 1e-05, %v1106_v51  ;;  %v1189_v1 = vadd.f32 %v6275_v13, %v1167_v54  ;;  %v5156_v48 = vpack.c.bf16 %v1279_v28, %v1278_v8  ;;  %v4235_v51 = vld [vmem:[%s5808_s20] ss:$0 sm:$0xff]  ;;  %s5707_s13 = smov 88   ;;  %s5717_s20 = smov 72  }
 0x445   :  { %5564 = vrsqrt.f32 %v1121_v55  ;;  %5128 = vmatpush3.bf16.msra.mxu1 %v5127_v62  ;;  %v1190_v23 = vadd.f32 %v6275_v13, %v1168_v36  ;;  %v1148_v24 = vmul.f32 %v5555_v58, %v6214_v44  ;;  %v6404_v28 = vld [vmem:[%s6825_s8 + $0x8] sm:$0x3f] }
 0x446   :  { %5566 = vrsqrt.f32 %v1122_v63  ;;  %5129 = vmatprep.subr.bf16.mxu1 %v5704_v32  ;;  %v1169_v41 = vmul.f32 %v6270_v31, %v1147_v20 }
 0x447   :  { %v5557_v3 = vpop.eup %5556  ;;  %v5130_v33 = vpack.c.bf16 %v1190_v23, %v1189_v1  ;;  %v1170_v21 = vmul.f32 %v6270_v31, %v1148_v24 }
 0x448   :  { %v5559_v47 = vpop.eup %5558  ;;  %v1149_v29 = vmul.f32 %v5557_v3, %v6222_v10  ;;  %v1191_v50 = vadd.f32 %v6275_v13, %v1169_v41 }
 0x449   :  { %v1150_v37 = vmul.f32 %v5559_v47, %v6228_v49  ;;  %5131 = vmatpush3.bf16.msra.mxu1 %v5130_v33  ;;  %v1192_v40 = vadd.f32 %v6275_v13, %v1170_v21 }
 0x44a   :  { %5132 = vmatprep.subr.bf16.mxu1 %v5704_v32  ;;  %v1171_v44 = vmul.f32 %v6270_v31, %v1149_v29  ;;  %v1416_v29 = vld [vmem:[%s5813_s27] sm:$0xff] }
 0x44b   :  { %v5561_v7 = vpop.eup %5560  ;;  %v5133_v59 = vpack.c.bf16 %v1192_v40, %v1191_v50  ;;  %v1172_v9 = vmul.f32 %v6270_v31, %v1150_v37  ;;  %v1417_v50 = vld [vmem:[%s5813_s27 + $0x8] sm:$0xff]  ;;  %v1418_v40 = vld [vmem:[%s5813_s27 + $0x10] sm:$0xff] }
 0x44c   :  { %v5563_v11 = vpop.eup %5562  ;;  %v1151_v14 = vmul.f32 %v5561_v7, %v6236_v18  ;;  %v1193_v10 = vadd.f32 %v6275_v13, %v1171_v44  ;;  %v5160_v37 = vpack.c.bf16 %v1417_v50, %v1416_v29  ;;  %v1419_v44 = vld [vmem:[%s5813_s27 + $0x18] sm:$0xff] }
 0x44d   :  { %v1152_v52 = vmul.f32 %v5563_v11, %v6242_v38  ;;  %5134 = vmatpush3.bf16.msra.mxu1 %v5133_v59  ;;  %v1194_v49 = vadd.f32 %v6275_v13, %v1172_v9  ;;  %v5164_v7 = vpack.c.bf16 %v1419_v44, %v1418_v40 }
 0x44e   :  { %5135 = vmatprep.subr.bf16.mxu1 %v5704_v32  ;;  %v1173_v56 = vmul.f32 %v6270_v31, %v1151_v14 }
 0x44f   :  { %v5565_v15 = vpop.eup %5564  ;;  %v5136_v17 = vpack.c.bf16 %v1194_v49, %v1193_v10  ;;  %v1174_v19 = vmul.f32 %v6270_v31, %v1152_v52 }
 0x450   :  { %v5567_v22 = vpop.eup %5566  ;;  %v1153_v18 = vmul.f32 %v5565_v15, %v6250_v27  ;;  %v1195_v6 = vadd.f32 %v6275_v13, %v1173_v56  ;;  %v1273_v27 = vld [vmem:[%s5803_s12 + $0x8] sm:$0xff]  ;;  %v4238_v56 = vld [vmem:[%s6822_s0] ss:$0 sm:$0xff]  ;;  %s5716_s12 = smov 104  }
 0x451   :  { %v1154_v38 = vmul.f32 %v5567_v22, %v6256_v30  ;;  %5137 = vmatpush3.bf16.msra.mxu1 %v5136_v17  ;;  %v1196_v53 = vadd.f32 %v6275_v13, %v1174_v19  ;;  %v5144_v34 = vpack.c.bf16 %v1273_v27, %v1272_v0  ;;  %v4239_v22 = vld [vmem:[%s6823_s5] ss:$0 sm:$0xff] }
 0x452   :  { %5138 = vmatprep.subr.bf16.mxu1 %v5704_v32  ;;  %v1175_v60 = vmul.f32 %v6270_v31, %v1153_v18 }
 0x453   :  { %v5139_v25 = vpack.c.bf16 %v1196_v53, %v1195_v6  ;;  %v1176_v57 = vmul.f32 %v6270_v31, %v1154_v38  ;;  %v5148_v31 = vpack.c.bf16 %v1275_v61, %v1274_v39 }
 0x454   :  { %v1197_v2 = vadd.f32 %v6275_v13, %v1175_v60  ;;  %v4240_v60 = vld [vmem:[%s6824_s9] ss:$0 sm:$0xff] }
 0x455   :  { %5140 = vmatpush3.bf16.msra.mxu1 %v5139_v25  ;;  %v1198_v30 = vadd.f32 %v6275_v13, %v1176_v57  ;;  %v5152_v13 = vpack.c.bf16 %v1277_v26, %v1276_v45 }
 0x456   :  { %5141 = vmatprep.subr.bf16.mxu1 %v5704_v32 }
 0x457   :  { %v5142_v35 = vpack.c.bf16 %v1198_v30, %v1197_v2 }
 0x459   :  { %5143 = vmatpush3.bf16.msra.mxu1 %v5142_v35 }
 0x45a   :  { %5145 = vmatprep.subr.bf16.mxu1 %v5144_v34 }
 0x45c   :  { %4796 = vmatmul.mubr.f32.vlgmr.msra.gmra.mrb[32].mxu1 %v1199_v4 }
 0x45d   :  { %5147 = vmatpush3.bf16.msra.mxu1 %v5144_v34  ;;  %4814 = vmatprep.mubr.msk.f32.mxu1 %vm1287_vm4, %v1270_v43 }
 0x45e   :  { %5149 = vmatprep.subr.bf16.mxu1 %v5148_v31 }
 0x461   :  { %5151 = vmatpush3.bf16.msra.mxu1 %v5148_v31 }
 0x462   :  { %5153 = vmatprep.subr.bf16.mxu1 %v5152_v13 }
 0x465   :  { %5155 = vmatpush3.bf16.msra.mxu1 %v5152_v13 }
 0x466   :  { %5157 = vmatprep.subr.bf16.mxu1 %v5156_v48 }
 0x469   :  { %5159 = vmatpush3.bf16.msra.mxu1 %v5156_v48 }
 0x46a   :  { %5161 = vmatprep.subr.bf16.mxu1 %v5160_v37 }
 0x46c   :  { %4815 = vmatmul.mubr.msk.f32.vlgmr.msra.gmra.mrb[34].mxu1 %vm1287_vm4, %v1271_v46 }
 0x46d   :  { %5163 = vmatpush3.bf16.msra.mxu1 %v5160_v37 }
 0x46e   :  { %5165 = vmatprep.subr.bf16.mxu1 %v5164_v7 }
 0x471   :  { %5167 = vmatpush3.bf16.msra.mxu1 %v5164_v7 }
 0x52f   :  { %v6343_v5 = vpop.f32.mrb[32].mxu1 }
 0x530   :  { %v4797_v12 = vpop.f32.mrb[33].mxu1 }
 0x531   :  { %v6407_v12 = vld [vmem:[%s6825_s8] sm:$0xff] }
 0x53f   :  { %v4816_v54 = vpop.f32.mrb[34].mxu1 }
 0x540   :  { %v6346_v16 = vadd.f32 %v4816_v54, %v4235_v51  ;;  %v1360_v55 = vpop.f32.mrb[35].mxu1 }
 0x541   :  { %v6348_v62 = vadd.f32 %v4235_v51, %v1360_v55 }
 0x542   :  { %v1377_v36 = vsel %vm1376_vm5, %v6346_v16, 0.0 }
 0x543   :  { %1378 = vadd.xlane.f32.xlu1 %v1377_v36  ;;  %v1373_v58 = vsel %vm521_vm2, %v6348_v62, 0.0 }
 0x544   :  { %1374 = vadd.xlane.f32.xlu0 %v1373_v58 }
 0x5d0   :  { %v1379_v20 = vpop.xlane.xlu1 %1378 }
 0x5d1   :  { %v1381_v63 = vmul.f32 0.03125, %v1379_v20  ;;  %v1375_v1 = vpop.xlane.xlu0 %1374 }
 0x5d2   :  { %v1380_v23 = vmul.f32 0.03125, %v1375_v1 }
 0x5d3   :  { %v1383_v24 = vsub.f32 %v6346_v16, %v1381_v63 }
 0x5d4   :  { %v1382_v41 = vsub.f32 %v6348_v62, %v1380_v23 }
 0x5d5   :  { %v1385_v3 = vmul.f32 %v1383_v24, %v1383_v24 }
 0x5d6   :  { %v1384_v33 = vmul.f32 %v1382_v41, %v1382_v41 }
 0x5d7   :  { %v1389_v21 = vsel %vm1376_vm5, %v1385_v3, 0.0 }
 0x5d8   :  { %1390 = vadd.xlane.f32.xlu1 %v1389_v21  ;;  %v1386_v47 = vsel %vm521_vm2, %v1384_v33, 0.0 }
 0x5d9   :  { %1387 = vadd.xlane.f32.xlu0 %v1386_v47 }
 0x665   :  { %v1391_v59 = vpop.xlane.xlu1 %1390 }
 0x666   :  { %v1393_v9 = vmul.f32 0.03125, %v1391_v59  ;;  %v1388_v11 = vpop.xlane.xlu0 %1387 }
 0x667   :  { %v1392_v14 = vmul.f32 0.03125, %v1388_v11 }
 0x668   :  { %v1395_v10 = vadd.f32 1e-05, %v1393_v9 }
 0x669   :  { %v1394_v52 = vadd.f32 1e-05, %v1392_v14 }
 0x66a   :  { %5568 = vrsqrt.f32 %v1395_v10 }
 0x66b   :  { %5570 = vrsqrt.f32 %v1394_v52 }
 0x674   :  { %v5569_v49 = vpop.eup %5568 }
 0x675   :  { %v5571_v15 = vpop.eup %5570  ;;  %v1399_v17 = vmul.f32 %v5569_v49, %v1383_v24 }
 0x676   :  { %v1398_v19 = vmul.f32 %v5571_v15, %v1382_v41 }
 0x677   :  { %v1407_v18 = vmul.f32 %v4238_v56, %v1399_v17 }
 0x678   :  { %v1406_v6 = vmul.f32 %v4238_v56, %v1398_v19 }
 0x679   :  { %v1415_v53 = vadd.f32 %v4239_v22, %v1407_v18 }
 0x67a   :  { %v1414_v38 = vadd.f32 %v4239_v22, %v1406_v6 }
 0x67c   :  { %4825 = vmatprep.mubr.msk.f32.mxu1 %vm521_vm2, %v1414_v38 }
 0x67d   :  { %4826 = vmatmul.mubr.msk.f32.vlgmr.msra.gmra.mrb[36].mxu1 %vm521_vm2, %v1415_v53 }
 0x750   :  { %v4827_v25 = vpop.f32.mrb[36].mxu1 }
 0x751   :  { %v6367_v57 = vadd.f32 %v4827_v25, %v4240_v60  ;;  %v1499_v0 = vpop.f32.mrb[37].mxu1 }
 0x752   :  { %v6369_v27 = vadd.f32 %v4240_v60, %v1499_v0 }
 0x754   :  { %4832 = vmatprep.mubr.msk.f32.mxu1 %vm1514_vm6, %v6369_v27  ;;  %v6375_v2 = vpack.i.bf16 %v6367_v57, %v6369_v27 }
 0x756   :  { %5461 = vrot.lane.b32.xlu1 %v6375_v2, %s5707_s13  ;;  %5456 = vrot.lane.b32.xlu0 %v6375_v2, %s5708_s21 }
 0x75a   :  { %1715 = vrot.lane.b32.xlu1 %v6369_v27, %s5709_s3 }
 0x75e   :  { %1717 = vrot.lane.b32.xlu1 %v6367_v57, %s5709_s3 }
 0x7c8   :  { %v5462_v30 = vpop.permute.xlu1 %5461  ;;  %v5457_v34 = vpop.permute.xlu0 %5456 }
 0x7c9   :  { %v5464_v35 = vunpack.i.h.bf16 %v5462_v30  ;;  %v5463_v39 = vunpack.i.l.bf16 %v5462_v30  ;;  %v5459_v61 = vunpack.i.h.bf16 %v5457_v34  ;;  %v5458_v4 = vunpack.i.l.bf16 %v5457_v34 }
 0x7cb   :  { %v5168_v43 = vpack.c.bf16 %v5459_v61, %v5458_v4  ;;  %v5180_v45 = vpack.c.bf16 %v5464_v35, %v5463_v39 }
 0x7cc   :  { %v1716_v26 = vpop.permute.xlu1 %1715 }
 0x7cd   :  { %5170 = vmatprep.subr.msk.bf16.mxu1 %vm6387_vm7, %v5168_v43 }
 0x7ce   :  { %5173 = vmatpush3.bf16.xpose.msk.msra.mxu1 %vm6387_vm7, %v5168_v43 }
 0x7cf   :  { %5182 = vmatprep.subr.msk.bf16.mxu1 %vm6387_vm7, %v5180_v45 }
 0x7d0   :  { %v1718_v13 = vpop.permute.xlu1 %1717 }
 0x7d5   :  { %4833 = vmatmul.mubr.msk.f32.vlgmr.msra.gmra.mrb[38].mxu1 %vm1514_vm6, %v6367_v57 }
 0x7d6   :  { %5185 = vmatpush3.bf16.xpose.msk.msra.mxu1 %vm6387_vm7, %v5180_v45  ;;  %4846 = vmatprep.mubr.msk.f32.mxu1 %vm1514_vm6, %v1716_v26 }
 0x7dd   :  { %4847 = vmatmul.mubr.msk.f32.vlgmr.msra.gmra.mrb[40].mxu1 %vm1514_vm6, %v1718_v13 }
 0x8a8   :  { %v4834_v8 = vpop.f32.mrb[38].mxu1 }
 0x8a9   :  { %v1599_v48 = vmul.f32 0.35355338, %v4834_v8  ;;  %v1589_v46 = vpop.f32.mrb[39].mxu1 }
 0x8aa   :  { %v1598_v51 = vmul.f32 0.35355338, %v1589_v46 }
 0x8ab   :  { %v1601_v54 = vadd.f32 %v1599_v48, %v6404_v28 }
 0x8ac   :  { %v1600_v55 = vadd.f32 %v1598_v51, %v6407_v12 }
 0x8ad   :  { %v1607_v36 = vsel %vm1606_vm8, %v1601_v54, -inf }
 0x8ae   :  { %1608 = vmax.xlane.f32.xlu1 %v1607_v36  ;;  %v1603_v58 = vsel %vm1602_vm9, %v1600_v55, -inf }
 0x8af   :  { %1604 = vmax.xlane.f32.xlu0 %v1603_v58 }
 0x8b0   :  { %v4848_v20 = vpop.f32.mrb[40].mxu1 }
 0x8b1   :  { %v1797_v63 = vpop.f32.mrb[41].mxu1  ;;  %v1807_v1 = vmul.f32 0.35355338, %v4848_v20 }
 0x8b2   :  { %v1806_v23 = vmul.f32 0.35355338, %v1797_v63 }
 0x8b3   :  { %v1809_v3 = vadd.f32 %v1807_v1, %v6404_v28 }
 0x8b4   :  { %v1808_v24 = vadd.f32 %v1806_v23, %v6407_v12 }
 0x8b5   :  { %v1813_v33 = vsel %vm1606_vm8, %v1809_v3, -inf }
 0x8b6   :  { %v1810_v41 = vsel %vm1602_vm9, %v1808_v24, -inf }
 0x8b7   :  { %1811 = vmax.xlane.f32.xlu0 %v1810_v41 }
 0x8bb   :  { %1814 = vmax.xlane.f32.xlu0 %v1813_v33 }
 0x93b   :  { %v1609_v21 = vpop.xlane.xlu1 %1608 }
 0x93c   :  { %v1611_v47 = vsub.f32 %v1601_v54, %v1609_v21  ;;  %v1605_v29 = vpop.xlane.xlu0 %1604 }
 0x93d   :  { %v1610_v50 = vsub.f32 %v1600_v55, %v1605_v29 }
 0x93e   :  { %v1614_v37 = vmul.f32 1.442695, %v1611_v47 }
 0x93f   :  { %v1612_v40 = vmul.f32 1.442695, %v1610_v50 }
 0x940   :  { %5572 = vpow2.f32 %v1614_v37 }
 0x941   :  { %5574 = vpow2.f32 %v1612_v40 }
 0x944   :  { %v1812_v44 = vpop.xlane.xlu0 %1811 }
 0x945   :  { %v1816_v7 = vsub.f32 %v1808_v24, %v1812_v44 }
 0x947   :  { %v1818_v59 = vmul.f32 1.442695, %v1816_v7 }
 0x948   :  { %v1815_v9 = vpop.xlane.xlu0 %1814 }
 0x949   :  { %5576 = vpow2.f32 %v1818_v59  ;;  %v1817_v11 = vsub.f32 %v1809_v3, %v1815_v9 }
 0x94a   :  { %v5573_v14 = vpop.eup %5572 }
 0x94b   :  { %v5575_v10 = vpop.eup %5574  ;;  %v1820_v52 = vmul.f32 1.442695, %v1817_v11  ;;  %v1619_v49 = vsel %vm1606_vm8, %v5573_v14, 0.0 }
 0x94c   :  { %1620 = vadd.xlane.f32.xlu1 %v1619_v49  ;;  %v1616_v56 = vsel %vm1602_vm9, %v5575_v10, 0.0 }
 0x94d   :  { %5578 = vpow2.f32 %v1820_v52  ;;  %1617 = vadd.xlane.f32.xlu0 %v1616_v56 }
 0x953   :  { %v5577_v15 = vpop.eup %5576 }
 0x954   :  { %v1822_v17 = vsel %vm1602_vm9, %v5577_v15, 0.0 }
 0x955   :  { %1823 = vadd.xlane.f32.xlu0 %v1822_v17 }
 0x957   :  { %v5579_v19 = vpop.eup %5578 }
 0x958   :  { %v1825_v22 = vsel %vm1606_vm8, %v5579_v19, 0.0 }
 0x959   :  { %1826 = vadd.xlane.f32.xlu1 %v1825_v22 }
 0x96a   :  { %5471 = vrot.lane.b32.xlu1 %v6375_v2, %s5710_s14 }
 0x96b   :  { %5466 = vrot.lane.b32.xlu0 %v6375_v2, %s5711_s19 }
 0x96e   :  { %5476 = vrot.lane.b32.xlu1 %v6375_v2, %s5712_s24 }
 0x96f   :  { %1922 = vrot.lane.b32.xlu0 %v6367_v57, %s5713_s30 }
 0x972   :  { %1920 = vrot.lane.b32.xlu1 %v6369_v27, %s5713_s30 }
 0x9d9   :  { %v1621_v6 = vpop.xlane.xlu1 %1620 }
 0x9da   :  { %v1618_v18 = vpop.xlane.xlu0 %1617 }
 0x9db   :  { %5580 = vrcp.f32 %v1618_v18 }
 0x9dc   :  { %5582 = vrcp.f32 %v1621_v6 }
 0x9e2   :  { %v1824_v38 = vpop.xlane.xlu0 %1823 }
 0x9e3   :  { %5584 = vrcp.f32 %v1824_v38 }
 0x9e5   :  { %v5581_v53 = vpop.eup %5580 }
 0x9e6   :  { %v1827_v60 = vpop.xlane.xlu1 %1826  ;;  %v5467_v25 = vpop.permute.xlu0 %5466  ;;  %v1624_v0 = vmul.f32 %v5581_v53, %v5575_v10 }
 0x9e7   :  { %5586 = vrcp.f32 %v1827_v60  ;;  %v5469_v30 = vunpack.i.h.bf16 %v5467_v25  ;;  %v5468_v34 = vunpack.i.l.bf16 %v5467_v25  ;;  %v5583_v61 = vpop.eup %5582 }
 0x9e8   :  { %4839 = vmatprep.mubr.msk.f32.mxu0 %vm1602_vm9, %v1624_v0  ;;  %v1625_v13 = vmul.f32 %v5583_v61, %v5573_v14 }
 0x9e9   :  { %v5174_v39 = vpack.c.bf16 %v5469_v30, %v5468_v34 }
 0x9ea   :  { %v5472_v4 = vpop.permute.xlu1 %5471  ;;  %v1923_v63 = vpop.permute.xlu0 %1922 }
 0x9eb   :  { %v5474_v43 = vunpack.i.h.bf16 %v5472_v4  ;;  %v5473_v45 = vunpack.i.l.bf16 %v5472_v4  ;;  %5176 = vmatprep.subr.msk.bf16.mxu0 %vm6432_vm12, %v5174_v39 }
 0x9ec   :  { %5179 = vmatpush3.bf16.msk.msra.mxu0 %vm6432_vm12, %v5174_v39 }
 0x9ed   :  { %v5585_v26 = vpop.eup %5584  ;;  %v5186_v8 = vpack.c.bf16 %v5474_v43, %v5473_v45 }
 0x9ee   :  { %v5477_v48 = vpop.permute.xlu1 %5476  ;;  %v1830_v46 = vmul.f32 %v5585_v26, %v5577_v15 }
 0x9ef   :  { %v5479_v51 = vunpack.i.h.bf16 %v5477_v48  ;;  %v5478_v54 = vunpack.i.l.bf16 %v5477_v48  ;;  %4840 = vmatmul.mubr.msk.f32.vlgmr.msra.gmra.mrb[16].mxu0 %vm1602_vm9, %v1625_v13  ;;  %5188 = vmatprep.subr.msk.bf16.mxu0 %vm6432_vm12, %v5186_v8 }
 0x9f0   :  { %5191 = vmatpush3.bf16.msk.msra.mxu0 %vm6432_vm12, %v5186_v8  ;;  %4853 = vmatprep.mubr.msk.f32.mxu0 %vm1602_vm9, %v1830_v46 }
 0x9f1   :  { %v5587_v55 = vpop.eup %5586  ;;  %v5192_v36 = vpack.c.bf16 %v5479_v51, %v5478_v54 }
 0x9f2   :  { %v1831_v58 = vmul.f32 %v5587_v55, %v5579_v19  ;;  %v1921_v20 = vpop.permute.xlu1 %1920 }
 0x9f3   :  { %5194 = vmatprep.subr.msk.bf16.mxu0 %vm6387_vm7, %v5192_v36 }
 0x9f4   :  { %4854 = vmatmul.mubr.msk.f32.vlgmr.msra.gmra.mrb[18].mxu0 %vm1602_vm9, %v1831_v58 }
 0x9f5   :  { %4860 = vmatprep.mubr.msk.f32.mxu0 %vm1514_vm6, %v1921_v20 }
 0x9f9   :  { %5197 = vmatpush3.bf16.xpose.msk.msra.mxu0 %vm6387_vm7, %v5192_v36 }
 0xa00   :  { %4861 = vmatmul.mubr.msk.f32.vlgmr.msra.gmra.mrb[20].mxu0 %vm1514_vm6, %v1923_v63 }
 0xac2   :  { %v6453_v1 = vpop.f32.mrb[16].mxu0 }
 0xac3   :  { %v6455_v23 = vpop.f32.mrb[17].mxu0 }
 0xac7   :  { %v6457_v24 = vpop.f32.mrb[18].mxu0 }
 0xac8   :  { %v6459_v41 = vpop.f32.mrb[19].mxu0 }
 0xad3   :  { %v4862_v3 = vpop.f32.mrb[20].mxu0 }
 0xad4   :  { %v2012_v33 = vmul.f32 0.35355338, %v4862_v3  ;;  %v2002_v21 = vpop.f32.mrb[21].mxu0 }
 0xad5   :  { %v2011_v47 = vmul.f32 0.35355338, %v2002_v21 }
 0xad6   :  { %v2014_v29 = vadd.f32 %v2012_v33, %v6404_v28 }
 0xad7   :  { %v2013_v50 = vadd.f32 %v2011_v47, %v6407_v12 }
 0xad8   :  { %v2018_v37 = vsel %vm1606_vm8, %v2014_v29, -inf }
 0xad9   :  { %2019 = vmax.xlane.f32.xlu0 %v2018_v37  ;;  %v2015_v40 = vsel %vm1602_vm9, %v2013_v50, -inf }
 0xada   :  { %2016 = vmax.xlane.f32.xlu1 %v2015_v40 }
 0xaeb   :  { %5481 = vrot.lane.b32.xlu1 %v6375_v2, %s5715_s6 }
 0xaef   :  { %2125 = vrot.lane.b32.xlu1 %v6369_v27, %s5716_s12 }
 0xaf3   :  { %2127 = vrot.lane.b32.xlu1 %v6367_v57, %s5716_s12 }
 0xb66   :  { %v2020_v44 = vpop.xlane.xlu0 %2019 }
 0xb67   :  { %v2022_v7 = vsub.f32 %v2014_v29, %v2020_v44  ;;  %v2017_v59 = vpop.xlane.xlu1 %2016 }
 0xb68   :  { %v2021_v9 = vsub.f32 %v2013_v50, %v2017_v59 }
 0xb69   :  { %v2025_v11 = vmul.f32 1.442695, %v2022_v7 }
 0xb6a   :  { %v2023_v14 = vmul.f32 1.442695, %v2021_v9 }
 0xb6b   :  { %5588 = vpow2.f32 %v2025_v11  ;;  %v5482_v10 = vpop.permute.xlu1 %5481  ;;  %v2362_v11 = vld [vmem:[%s6830_s22] sm:$0xff] }
 0xb6c   :  { %v5484_v52 = vunpack.i.h.bf16 %v5482_v10  ;;  %v5483_v49 = vunpack.i.l.bf16 %v5482_v10  ;;  %5590 = vpow2.f32 %v2023_v14  ;;  %v2363_v14 = vld [vmem:[%s6830_s22 + $0x8] sm:$0xff]  ;;  %v2364_v10 = vld [vmem:[%s6830_s22 + $0x10] sm:$0xff] }
 0xb6e   :  { %v5198_v56 = vpack.c.bf16 %v5484_v52, %v5483_v49  ;;  %v5216_v52 = vpack.c.bf16 %v2363_v14, %v2362_v11  ;;  %v2365_v49 = vld [vmem:[%s6830_s22 + $0x18] sm:$0xff]  ;;  %v2602_v11 = vld [vmem:[%s6833_s1 + $0x40] sm:$0xff]  ;;  %v2603_v14 = vld [vmem:[%s6833_s1 + $0x48] sm:$0xff] }
 0xb6f   :  { %v2126_v34 = vpop.permute.xlu1 %2125 }
 0xb70   :  { %5200 = vmatprep.subr.msk.bf16.mxu1 %vm6432_vm12, %v5198_v56 }
 0xb71   :  { %5203 = vmatpush3.bf16.msk.msra.mxu1 %vm6432_vm12, %v5198_v56  ;;  %v5220_v56 = vpack.c.bf16 %v2365_v49, %v2364_v10  ;;  %v5248_v10 = vpack.c.bf16 %v2603_v14, %v2602_v11  ;;  %v2605_v49 = vld [vmem:[%s6833_s1 + $0x58] sm:$0xff]  ;;  %v4286_v11 = vld [vmem:[%s5813_s27 + $0x30] sm:$0xff] }
 0xb72   :  { %v4287_v14 = vld [vmem:[%s5813_s27 + $0x38] sm:$0xff] }
 0xb73   :  { %v2128_v39 = vpop.permute.xlu1 %2127 }
 0xb75   :  { %v5589_v27 = vpop.eup %5588 }
 0xb76   :  { %v2030_v57 = vsel %vm1606_vm8, %v5589_v27, 0.0  ;;  %v5591_v15 = vpop.eup %5590 }
 0xb77   :  { %2031 = vadd.xlane.f32.xlu0 %v2030_v57  ;;  %v2027_v17 = vsel %vm1602_vm9, %v5591_v15, 0.0 }
 0xb7b   :  { %2028 = vadd.xlane.f32.xlu0 %v2027_v17 }
 0xb91   :  { %5486 = vrot.lane.b32.xlu0 %v6375_v2, %s5717_s20 }
 0xc04   :  { %v2032_v19 = vpop.xlane.xlu0 %2031 }
 0xc05   :  { %5592 = vrcp.f32 %v2032_v19 }
 0xc08   :  { %v2029_v22 = vpop.xlane.xlu0 %2028 }
 0xc09   :  { %5594 = vrcp.f32 %v2029_v22 }
 0xc0c   :  { %v5487_v18 = vpop.permute.xlu0 %5486 }
 0xc0d   :  { %v5489_v6 = vunpack.i.h.bf16 %v5487_v18  ;;  %v5488_v38 = vunpack.i.l.bf16 %v5487_v18 }
 0xc0f   :  { %v5204_v53 = vpack.c.bf16 %v5489_v6, %v5488_v38  ;;  %v5593_v60 = vpop.eup %5592 }
 0xc10   :  { %v2036_v30 = vmul.f32 %v5593_v60, %v5589_v27 }
 0xc11   :  { %5206 = vmatprep.subr.msk.bf16.mxu1 %vm6387_vm7, %v5204_v53 }
 0xc13   :  { %v5595_v25 = vpop.eup %5594 }
 0xc14   :  { %v2035_v0 = vmul.f32 %v5595_v25, %v5591_v15 }
 0xc16   :  { %4867 = vmatprep.mubr.msk.f32.mxu1 %vm1602_vm9, %v2035_v0 }
 0xc17   :  { %4868 = vmatmul.mubr.msk.f32.vlgmr.msra.gmra.mrb[42].mxu1 %vm1602_vm9, %v2036_v30 }
 0xc18   :  { %5209 = vmatpush3.bf16.xpose.msk.msra.mxu1 %vm6387_vm7, %v5204_v53  ;;  %4874 = vmatprep.mubr.msk.f32.mxu1 %vm1514_vm6, %v2126_v34 }
 0xc1f   :  { %4875 = vmatmul.mubr.msk.f32.vlgmr.msra.gmra.mrb[44].mxu1 %vm1514_vm6, %v2128_v39 }
 0xcea   :  { %v4869_v61 = vpop.f32.mrb[42].mxu1 }
 0xceb   :  { %v2116_v4 = vpop.f32.mrb[43].mxu1 }
 0xcf2   :  { %v4876_v43 = vpop.f32.mrb[44].mxu1 }
 0xcf3   :  { %v2217_v45 = vmul.f32 0.35355338, %v4876_v43  ;;  %v2207_v26 = vpop.f32.mrb[45].mxu1 }
 0xcf4   :  { %v2216_v13 = vmul.f32 0.35355338, %v2207_v26 }
 0xcf5   :  { %v2219_v8 = vadd.f32 %v2217_v45, %v6404_v28 }
 0xcf6   :  { %v2218_v48 = vadd.f32 %v2216_v13, %v6407_v12 }
 0xcf7   :  { %v2223_v46 = vsel %vm1606_vm8, %v2219_v8, -inf }
 0xcf8   :  { %2224 = vmax.xlane.f32.xlu0 %v2223_v46  ;;  %v2220_v51 = vsel %vm1602_vm9, %v2218_v48, -inf }
 0xcf9   :  { %2221 = vmax.xlane.f32.xlu1 %v2220_v51 }
 0xd0a   :  { %5491 = vrot.lane.b32.xlu1 %v6375_v2, %s5718_s15 }
 0xd0e   :  { %2334 = vrot.lane.b32.xlu1 %v6457_v24, %s5719_s16 }
 0xd12   :  { %2340 = vrot.lane.b32.xlu1 %v2116_v4, %s5720_s18 }
 0xd16   :  { %2342 = vrot.lane.b32.xlu1 %v4869_v61, %s5720_s18 }
 0xd85   :  { %v2225_v54 = vpop.xlane.xlu0 %2224 }
 0xd86   :  { %v2227_v55 = vsub.f32 %v2219_v8, %v2225_v54  ;;  %v2222_v36 = vpop.xlane.xlu1 %2221 }
 0xd87   :  { %v2226_v58 = vsub.f32 %v2218_v48, %v2222_v36  ;;  %v2500_v36 = vld [vmem:[%s6832_s28] sm:$0xff] }
 0xd88   :  { %v2230_v20 = vmul.f32 1.442695, %v2227_v55 }
 0xd89   :  { %v2228_v63 = vmul.f32 1.442695, %v2226_v58  ;;  %v2501_v58 = vld [vmem:[%s6832_s28 + $0x8] sm:$0xff] }
 0xd8a   :  { %v5492_v3 = vpop.permute.xlu1 %5491 }
 0xd8b   :  { %5596 = vpow2.f32 %v2228_v63  ;;  %v5494_v33 = vunpack.i.h.bf16 %v5492_v3  ;;  %v5493_v21 = vunpack.i.l.bf16 %v5492_v3  ;;  %v2502_v63 = vld [vmem:[%s6832_s28 + $0x10] sm:$0xff]  ;;  %v2503_v3 = vld [vmem:[%s6832_s28 + $0x18] sm:$0xff] }
 0xd8c   :  { %5598 = vpow2.f32 %v2230_v20  ;;  %v5224_v20 = vpack.c.bf16 %v2501_v58, %v2500_v36 }
 0xd8d   :  { %v5210_v2 = vpack.c.bf16 %v5494_v33, %v5493_v21  ;;  %v5228_v33 = vpack.c.bf16 %v2503_v3, %v2502_v63  ;;  %v2594_v21 = vld [vmem:[%s6833_s1] sm:$0xff] }
 0xd8e   :  { %v2335_v57 = vpop.permute.xlu1 %2334  ;;  %5225 = vmatprep.subr.bf16.mxu1 %v5224_v20 }
 0xd8f   :  { %5212 = vmatprep.subr.msk.bf16.mxu0 %vm6432_vm12, %v5210_v2  ;;  %v2355_v6 = vsel %vm1514_vm6, %v6453_v1, %v2335_v57  ;;  %5227 = vmatpush3.bf16.msra.mxu1 %v5224_v20 }
 0xd90   :  { %5215 = vmatpush3.bf16.msk.msra.mxu0 %vm6432_vm12, %v5210_v2  ;;  %5229 = vmatprep.subr.bf16.mxu1 %v5228_v33  ;;  %v2595_v2 = vld [vmem:[%s6833_s1 + $0x8] sm:$0xff] }
 0xd91   :  { %5217 = vmatprep.subr.bf16.mxu0 %v5216_v52 }
 0xd92   :  { %v2341_v15 = vpop.permute.xlu1 %2340 }
 0xd93   :  { %5231 = vmatpush3.bf16.msra.mxu1 %v5228_v33 }
 0xd95   :  { %v5597_v24 = vpop.eup %5596 }
 0xd96   :  { %v2232_v47 = vsel %vm1602_vm9, %v5597_v24, 0.0  ;;  %v5599_v29 = vpop.eup %5598  ;;  %v2343_v19 = vpop.permute.xlu1 %2342 }
 0xd97   :  { %2233 = vadd.xlane.f32.xlu0 %v2232_v47  ;;  %v2235_v50 = vsel %vm1606_vm8, %v5599_v29, 0.0  ;;  %v2358_v60 = vsel %vm2356_vm13, %v2355_v6, %v2343_v19  ;;  %v5232_v47 = vpack.c.bf16 %v2595_v2, %v2594_v21 }
 0xd9b   :  { %2236 = vadd.xlane.f32.xlu0 %v2235_v50 }
 0xdb1   :  { %2332 = vrot.lane.b32.xlu0 %v6459_v41, %s5719_s16 }
 0xe24   :  { %v2234_v37 = vpop.xlane.xlu0 %2233 }
 0xe25   :  { %5600 = vrcp.f32 %v2234_v37  ;;  %v2598_v37 = vld [vmem:[%s6833_s1 + $0x20] sm:$0xff] }
 0xe28   :  { %v2237_v40 = vpop.xlane.xlu0 %2236 }
 0xe29   :  { %5602 = vrcp.f32 %v2237_v40  ;;  %v2599_v40 = vld [vmem:[%s6833_s1 + $0x28] sm:$0xff] }
 0xe2c   :  { %v2333_v17 = vpop.permute.xlu0 %2332 }
 0xe2d   :  { %v2354_v22 = vsel %vm1514_vm6, %v6455_v23, %v2333_v17  ;;  %v4271_v23 = vld [vmem:[%s6831_s26] ss:$0 sm:$0xff] }
 0xe2e   :  { %v2357_v38 = vsel %vm2356_vm13, %v2354_v22, %v2341_v15 }
 0xe2f   :  { %v5601_v44 = vpop.eup %5600 }
 0xe30   :  { %v2240_v7 = vmul.f32 %v5601_v44, %v5597_v24  ;;  %v2596_v24 = vld [vmem:[%s6833_s1 + $0x10] sm:$0xff]  ;;  %v5240_v44 = vpack.c.bf16 %v2599_v40, %v2598_v37 }
 0xe32   :  { %4881 = vmatprep.mubr.msk.f32.mxu0 %vm1602_vm9, %v2240_v7  ;;  %v2600_v7 = vld [vmem:[%s6833_s1 + $0x30] sm:$0xff] }
 0xe33   :  { %v5603_v59 = vpop.eup %5602 }
 0xe34   :  { %v2241_v9 = vmul.f32 %v5603_v59, %v5599_v29  ;;  %v2597_v29 = vld [vmem:[%s6833_s1 + $0x18] sm:$0xff] }
 0xe35   :  { %v5236_v50 = vpack.c.bf16 %v2597_v29, %v2596_v24  ;;  %v2601_v59 = vld [vmem:[%s6833_s1 + $0x38] sm:$0xff] }
 0xe36   :  { %4882 = vmatmul.mubr.msk.f32.vlgmr.msra.gmra.mrb[22].mxu0 %vm1602_vm9, %v2241_v9  ;;  %v5244_v9 = vpack.c.bf16 %v2601_v59, %v2600_v7  ;;  %v4284_v7 = vld [vmem:[%s5813_s27 + $0x20] sm:$0xff]  ;;  %v4285_v59 = vld [vmem:[%s5813_s27 + $0x28] sm:$0xff]  ;;  %s6837_s27 = sld [smem:[#allocation5_spill]] }
 0xe37   :  { %5219 = vmatpush3.bf16.msra.mxu0 %v5216_v52  ;;  %v2604_v52 = vld [vmem:[%s6833_s1 + $0x50] sm:$0xff] }
 0xe38   :  { %5221 = vmatprep.subr.bf16.mxu0 %v5220_v56 }
 0xe3b   :  { %5223 = vmatpush3.bf16.msra.mxu0 %v5220_v56  ;;  %v5252_v56 = vpack.c.bf16 %v2605_v49, %v2604_v52 }
 0xe3c   :  { %5233 = vmatprep.subr.bf16.mxu0 %v5232_v47 }
 0xf09   :  { %v4883_v41 = vpop.f32.mrb[22].mxu0 }
 0xf0a   :  { %2350 = vrot.lane.b32.xlu1 %v4883_v41, %s5721_s23  ;;  %v2321_v27 = vpop.f32.mrb[23].mxu0  ;;  %v2606_v41 = vld [vmem:[%s6833_s1 + $0x60] sm:$0xff] }
 0xf0b   :  { %2348 = vrot.lane.b32.xlu0 %v2321_v27, %s5721_s23  ;;  %v2607_v27 = vld [vmem:[%s6833_s1 + $0x68] sm:$0xff] }
 0xf0c   :  { %v5256_v57 = vpack.c.bf16 %v2607_v27, %v2606_v41 }
 0xf7c   :  { %v2351_v18 = vpop.permute.xlu1 %2350 }
 0xf7d   :  { %v2349_v53 = vpop.permute.xlu0 %2348  ;;  %v2361_v0 = vsel %vm2359_vm14, %v2358_v60, %v2351_v18 }
 0xf7e   :  { %v2360_v25 = vsel %vm2359_vm14, %v2357_v38, %v2349_v53  ;;  %v4274_v53 = vld [vmem:[%s6834_s2] ss:$0 sm:$0xff] }
 0xf7f   :  { %4892 = vmatprep.mubr.msk.f32.mxu0 %vm521_vm2, %v2360_v25  ;;  %v4275_v25 = vld [vmem:[%s6835_s7] ss:$0 sm:$0xff] }
 0xf80   :  { %4893 = vmatmul.mubr.msk.f32.vlgmr.msra.gmra.mrb[24].mxu0 %vm521_vm2, %v2361_v0 }
 0xf81   :  { %5235 = vmatpush3.bf16.msra.mxu0 %v5232_v47 }
 0xf82   :  { %5237 = vmatprep.subr.bf16.mxu0 %v5236_v50 }
 0xf85   :  { %5239 = vmatpush3.bf16.msra.mxu0 %v5236_v50 }
 0xf86   :  { %5241 = vmatprep.subr.bf16.mxu0 %v5240_v44 }
 0xf89   :  { %5243 = vmatpush3.bf16.msra.mxu0 %v5240_v44 }
 0xf8a   :  { %5245 = vmatprep.subr.bf16.mxu0 %v5244_v9 }
 0xf8d   :  { %5247 = vmatpush3.bf16.msra.mxu0 %v5244_v9  ;;  %v5264_v9 = vpack.c.bf16 %v4285_v59, %v4284_v7 }
 0xf8e   :  { %5249 = vmatprep.subr.bf16.mxu0 %v5248_v10 }
 0xf8f   :  { %5265 = vmatprep.subr.bf16.mxu1 %v5264_v9 }
 0xf91   :  { %5251 = vmatpush3.bf16.msra.mxu0 %v5248_v10  ;;  %v5268_v10 = vpack.c.bf16 %v4287_v14, %v4286_v11 }
 0xf92   :  { %5253 = vmatprep.subr.bf16.mxu0 %v5252_v56 }
 0xf95   :  { %5255 = vmatpush3.bf16.msra.mxu0 %v5252_v56 }
 0xf96   :  { %5257 = vmatprep.subr.bf16.mxu0 %v5256_v57 }
 0xf99   :  { %5259 = vmatpush3.bf16.msra.mxu0 %v5256_v57 }
0x1053   :  { %v4894_v30 = vpop.f32.mrb[24].mxu0 }
0x1054   :  { %v2451_v34 = vadd.f32 %v4894_v30, %v4271_v23  ;;  %v2445_v39 = vpop.f32.mrb[25].mxu0 }
0x1055   :  { %v2446_v61 = vadd.f32 %v4271_v23, %v2445_v39 }
0x1056   :  { %v6525_v1 = vadd.f32 %v2451_v34, %v6346_v16 }
0x1057   :  { %v6528_v4 = vadd.f32 %v2446_v61, %v6348_v62 }
0x1058   :  { %v2461_v43 = vsel %vm1376_vm5, %v6525_v1, 0.0 }
0x1059   :  { %2462 = vadd.xlane.f32.xlu1 %v2461_v43  ;;  %v2458_v45 = vsel %vm521_vm2, %v6528_v4, 0.0  ;;  %v2608_v43 = vld [vmem:[%s6833_s1 + $0x70] sm:$0xff] }
0x105a   :  { %2459 = vadd.xlane.f32.xlu0 %v2458_v45  ;;  %v2609_v45 = vld [vmem:[%s6833_s1 + $0x78] sm:$0xff] }
0x10e6   :  { %v2463_v26 = vpop.xlane.xlu1 %2462 }
0x10e7   :  { %v2465_v13 = vmul.f32 0.03125, %v2463_v26  ;;  %v2460_v8 = vpop.xlane.xlu0 %2459  ;;  %v5260_v26 = vpack.c.bf16 %v2609_v45, %v2608_v43 }
0x10e8   :  { %v2464_v16 = vmul.f32 0.03125, %v2460_v8 }
0x10e9   :  { %v6535_v48 = vsub.f32 %v6525_v1, %v2465_v13  ;;  %5261 = vmatprep.subr.bf16.mxu0 %v5260_v26  ;;  %v4276_v13 = vld [vmem:[%s6836_s10] ss:$0 sm:$0xff] }
0x10ea   :  { %v2466_v62 = vsub.f32 %v6528_v4, %v2464_v16  ;;  %5263 = vmatpush3.bf16.msra.mxu0 %v5260_v26 }
0x10eb   :  { %v2469_v54 = vmul.f32 %v6535_v48, %v6535_v48 }
0x10ec   :  { %v2468_v46 = vmul.f32 %v2466_v62, %v2466_v62 }
0x10ed   :  { %v2473_v55 = vsel %vm1376_vm5, %v2469_v54, 0.0 }
0x10ee   :  { %v2470_v51 = vsel %vm521_vm2, %v2468_v46, 0.0 }
0x10ef   :  { %2471 = vadd.xlane.f32.xlu0 %v2470_v51 }
0x10f3   :  { %2474 = vadd.xlane.f32.xlu0 %v2473_v55  ;;  %v4279_v55 = vld [vmem:[%s5868_s17] ss:$0 sm:$0xff] }
0x117c   :  { %v2472_v15 = vpop.xlane.xlu0 %2471 }
0x117d   :  { %v2476_v17 = vmul.f32 0.03125, %v2472_v15 }
0x117f   :  { %v2478_v19 = vadd.f32 1e-05, %v2476_v17  ;;  %v4282_v17 = vld [vmem:[%s6822_s0 + $0x1] ss:$0 sm:$0xff]  ;;  %s5724_s0 = smov [#allocation2]  }
0x1180   :  { %v2475_v22 = vpop.xlane.xlu0 %2474 }
0x1181   :  { %5604 = vrsqrt.f32 %v2478_v19  ;;  %v2477_v18 = vmul.f32 0.03125, %v2475_v22 }
0x1183   :  { %v2479_v6 = vadd.f32 1e-05, %v2477_v18 }
0x1185   :  { %5606 = vrsqrt.f32 %v2479_v6  ;;  %v4283_v6 = vld [vmem:[%s6823_s5 + $0x1] ss:$0 sm:$0xff]  ;;  %s4144_s5 = sshll.u32 %s5724_s0, 4  ;;  %s4145_s5 = int_to_ptr.vmem [resolvable:$true] %s4144_s5 }
0x1186   :  { %p5655_p1 = scmp.lt.s32.totalorder %s4145_s5, %s4145_s5 }
0x118b   :  { %v5605_v38 = vpop.eup %5604 }
0x118c   :  { %v2482_v60 = vmul.f32 %v5605_v38, %v2466_v62 }
0x118e   :  { %v2490_v0 = vmul.f32 %v4274_v53, %v2482_v60 }
0x118f   :  { %v5607_v23 = vpop.eup %5606 }
0x1190   :  { %v2483_v30 = vmul.f32 %v5607_v23, %v6535_v48  ;;  %v2498_v34 = vadd.f32 %v4275_v25, %v2490_v0  ;;  %v4289_v0 = vld [vmem:[%s6824_s9 + $0x1] ss:$0 sm:$0xff] }
0x1192   :  { %v2491_v39 = vmul.f32 %v4274_v53, %v2483_v30  ;;  %4903 = vmatprep.mubr.msk.f32.mxu1 %vm521_vm2, %v2498_v34 }
0x1194   :  { %v2499_v61 = vadd.f32 %v4275_v25, %v2491_v39 }
0x1196   :  { %4904 = vmatmul.mubr.msk.f32.vlgmr.msra.gmra.mrb[46].mxu1 %vm521_vm2, %v2499_v61 }
0x1197   :  { %5267 = vmatpush3.bf16.msra.mxu1 %v5264_v9 }
0x1198   :  { %5269 = vmatprep.subr.bf16.mxu1 %v5268_v10 }
0x119b   :  { %5271 = vmatpush3.bf16.msra.mxu1 %v5268_v10 }
0x1269   :  { %v4905_v8 = vpop.f32.mrb[46].mxu1 }
0x126a   :  { %v2589_v16 = vadd.f32 %v4905_v8, %v4276_v13  ;;  %v2583_v62 = vpop.f32.mrb[47].mxu1 }
0x126b   :  { %v2584_v46 = vadd.f32 %v4276_v13, %v2583_v62 }
0x126c   :  { %v2593_v48 = vmax.f32 %v2589_v16, 0.0 }
0x126d   :  { %v2592_v51 = vmax.f32 %v2584_v46, 0.0 }
0x126f   :  { %4938 = vmatprep.mubr.f32.mxu0 %v2592_v51 }
0x1270   :  { %4939 = vmatmul.mubr.f32.vlgmr.msra.gmra.mrb[26].mxu0 %v2593_v48 }
0x1343   :  { %v4940_v54 = vpop.f32.mrb[26].mxu0 }
0x1344   :  { %v2686_v36 = vadd.f32 %v4940_v54, %v6525_v1  ;;  %v2676_v58 = vpop.f32.mrb[27].mxu0 }
0x1345   :  { %v2685_v20 = vadd.f32 %v2676_v58, %v6528_v4 }
0x1346   :  { %v6571_v63 = vadd.f32 %v4279_v55, %v2686_v36 }
0x1347   :  { %v6573_v3 = vadd.f32 %v4279_v55, %v2685_v20 }
0x1348   :  { %v2703_v33 = vsel %vm1376_vm5, %v6571_v63, 0.0 }
0x1349   :  { %2704 = vadd.xlane.f32.xlu1 %v2703_v33  ;;  %v2700_v21 = vsel %vm521_vm2, %v6573_v3, 0.0 }
0x134a   :  { %2701 = vadd.xlane.f32.xlu0 %v2700_v21 }
0x13d6   :  { %v2705_v2 = vpop.xlane.xlu1 %2704 }
0x13d7   :  { %v2707_v1 = vmul.f32 0.03125, %v2705_v2  ;;  %v2702_v24 = vpop.xlane.xlu0 %2701 }
0x13d8   :  { %v2706_v4 = vmul.f32 0.03125, %v2702_v24 }
0x13d9   :  { %v2709_v47 = vsub.f32 %v6571_v63, %v2707_v1 }
0x13da   :  { %v2708_v29 = vsub.f32 %v6573_v3, %v2706_v4 }
0x13db   :  { %v2711_v50 = vmul.f32 %v2709_v47, %v2709_v47 }
0x13dc   :  { %v2710_v37 = vmul.f32 %v2708_v29, %v2708_v29 }
0x13dd   :  { %v2715_v40 = vsel %vm1376_vm5, %v2711_v50, 0.0 }
0x13de   :  { %2716 = vadd.xlane.f32.xlu1 %v2715_v40  ;;  %v2712_v44 = vsel %vm521_vm2, %v2710_v37, 0.0 }
0x13df   :  { %2713 = vadd.xlane.f32.xlu0 %v2712_v44 }
0x146b   :  { %v2717_v52 = vpop.xlane.xlu1 %2716 }
0x146c   :  { %v2719_v49 = vmul.f32 0.03125, %v2717_v52  ;;  %v2714_v56 = vpop.xlane.xlu0 %2713 }
0x146d   :  { %v2718_v41 = vmul.f32 0.03125, %v2714_v56 }
0x146e   :  { %v2721_v27 = vadd.f32 1e-05, %v2719_v49 }
0x146f   :  { %v2720_v57 = vadd.f32 1e-05, %v2718_v41 }
0x1470   :  { %5608 = vrsqrt.f32 %v2721_v27 }
0x1471   :  { %5610 = vrsqrt.f32 %v2720_v57 }
0x147a   :  { %v5609_v15 = vpop.eup %5608 }
0x147b   :  { %v5611_v19 = vpop.eup %5610  ;;  %v2725_v22 = vmul.f32 %v5609_v15, %v2709_v47 }
0x147c   :  { %v2724_v18 = vmul.f32 %v5611_v19, %v2708_v29 }
0x147d   :  { %v2733_v38 = vmul.f32 %v4282_v17, %v2725_v22 }
0x147e   :  { %v2732_v53 = vmul.f32 %v4282_v17, %v2724_v18 }
0x147f   :  { %v2741_v25 = vadd.f32 %v4283_v6, %v2733_v38 }
0x1480   :  { %v2740_v60 = vadd.f32 %v4283_v6, %v2732_v53 }
0x1482   :  { %4949 = vmatprep.mubr.msk.f32.mxu1 %vm521_vm2, %v2740_v60 }
0x1483   :  { %4950 = vmatmul.mubr.msk.f32.vlgmr.msra.gmra.mrb[48].mxu1 %vm521_vm2, %v2741_v25 }
0x1556   :  { %v4951_v23 = vpop.f32.mrb[48].mxu1 }
0x1557   :  { %v6592_v30 = vadd.f32 %v4951_v23, %v4289_v0  ;;  %v2827_v34 = vpop.f32.mrb[49].mxu1 }
0x1558   :  { %v6594_v39 = vadd.f32 %v4289_v0, %v2827_v34 }
0x155a   :  { %4956 = vmatprep.mubr.msk.f32.mxu1 %vm1514_vm6, %v6594_v39  ;;  %v6600_v61 = vpack.i.bf16 %v6592_v30, %v6594_v39 }
0x155c   :  { %5496 = vrot.lane.b32.xlu0 %v6600_v61, %s5708_s21 }
0x1560   :  { %5506 = vrot.lane.b32.xlu0 %v6600_v61, %s5707_s13 }
0x1564   :  { %3039 = vrot.lane.b32.xlu0 %v6594_v39, %s5709_s3 }
0x1568   :  { %5511 = vrot.lane.b32.xlu0 %v6600_v61, %s5712_s24 }
0x156c   :  { %3244 = vrot.lane.b32.xlu0 %v6594_v39, %s5713_s30 }
0x15ce   :  { %v5497_v43 = vpop.permute.xlu0 %5496 }
0x15cf   :  { %v5499_v45 = vunpack.i.h.bf16 %v5497_v43  ;;  %v5498_v26 = vunpack.i.l.bf16 %v5497_v43 }
0x15d1   :  { %v5272_v13 = vpack.c.bf16 %v5499_v45, %v5498_v26 }
0x15d2   :  { %v5507_v8 = vpop.permute.xlu0 %5506 }
0x15d3   :  { %5274 = vmatprep.subr.msk.bf16.mxu1 %vm6387_vm7, %v5272_v13  ;;  %v5509_v40 = vunpack.i.h.bf16 %v5507_v8  ;;  %v5508_v7 = vunpack.i.l.bf16 %v5507_v8 }
0x15d4   :  { %5277 = vmatpush3.bf16.xpose.msk.msra.mxu1 %vm6387_vm7, %v5272_v13 }
0x15d5   :  { %v5284_v14 = vpack.c.bf16 %v5509_v40, %v5508_v7 }
0x15d6   :  { %v3040_v16 = vpop.permute.xlu0 %3039 }
0x15da   :  { %v5512_v62 = vpop.permute.xlu0 %5511 }
0x15db   :  { %v5514_v46 = vunpack.i.h.bf16 %v5512_v62  ;;  %v5513_v51 = vunpack.i.l.bf16 %v5512_v62  ;;  %4957 = vmatmul.mubr.msk.f32.vlgmr.msra.gmra.mrb[50].mxu1 %vm1514_vm6, %v6592_v30 }
0x15dd   :  { %v5296_v48 = vpack.c.bf16 %v5514_v46, %v5513_v51 }
0x15de   :  { %v3245_v54 = vpop.permute.xlu0 %3244 }
0x15df   :  { %5298 = vmatprep.subr.msk.bf16.mxu0 %vm6387_vm7, %v5296_v48  ;;  %4984 = vmatprep.mubr.msk.f32.mxu0 %vm1514_vm6, %v3245_v54 }
0x15e0   :  { %5301 = vmatpush3.bf16.xpose.msk.msra.mxu0 %vm6387_vm7, %v5296_v48 }
0x16ae   :  { %v4958_v55 = vpop.f32.mrb[50].mxu1 }
0x16af   :  { %v2916_v36 = vpop.f32.mrb[51].mxu1  ;;  %v2926_v58 = vmul.f32 0.35355338, %v4958_v55 }
0x16b0   :  { %v2925_v20 = vmul.f32 0.35355338, %v2916_v36 }
0x16b1   :  { %v2928_v2 = vadd.f32 %v2926_v58, %v6404_v28 }
0x16b2   :  { %v2927_v33 = vadd.f32 %v2925_v20, %v6407_v12 }
0x16b3   :  { %v2932_v1 = vsel %vm1606_vm8, %v2928_v2, -inf }
0x16b4   :  { %v2929_v21 = vsel %vm1602_vm9, %v2927_v33, -inf }
0x16b5   :  { %2930 = vmax.xlane.f32.xlu1 %v2929_v21 }
0x16b9   :  { %2933 = vmax.xlane.f32.xlu1 %v2932_v1 }
0x16ca   :  { %5501 = vrot.lane.b32.xlu1 %v6600_v61, %s5711_s19 }
0x1742   :  { %v2931_v24 = vpop.xlane.xlu1 %2930 }
0x1743   :  { %v2935_v4 = vsub.f32 %v2927_v33, %v2931_v24 }
0x1745   :  { %v2937_v50 = vmul.f32 1.442695, %v2935_v4 }
0x1746   :  { %v2934_v47 = vpop.xlane.xlu1 %2933 }
0x1747   :  { %v2936_v29 = vsub.f32 %v2928_v2, %v2934_v47 }
0x1749   :  { %v2939_v37 = vmul.f32 1.442695, %v2936_v29 }
0x174a   :  { %v5502_v44 = vpop.permute.xlu1 %5501 }
0x174b   :  { %5612 = vpow2.f32 %v2939_v37  ;;  %v5504_v59 = vunpack.i.h.bf16 %v5502_v44  ;;  %v5503_v9 = vunpack.i.l.bf16 %v5502_v44 }
0x174c   :  { %5614 = vpow2.f32 %v2937_v50 }
0x174d   :  { %v5278_v11 = vpack.c.bf16 %v5504_v59, %v5503_v9 }
0x174f   :  { %5280 = vmatprep.subr.msk.bf16.mxu1 %vm6432_vm12, %v5278_v11 }
0x1750   :  { %5283 = vmatpush3.bf16.msk.msra.mxu1 %vm6432_vm12, %v5278_v11 }
0x1751   :  { %5286 = vmatprep.subr.msk.bf16.mxu1 %vm6387_vm7, %v5284_v14 }
0x1755   :  { %v5613_v10 = vpop.eup %5612 }
0x1756   :  { %v2944_v52 = vsel %vm1606_vm8, %v5613_v10, 0.0  ;;  %v5615_v49 = vpop.eup %5614 }
0x1757   :  { %2945 = vadd.xlane.f32.xlu1 %v2944_v52  ;;  %v2941_v56 = vsel %vm1602_vm9, %v5615_v49, 0.0 }
0x175b   :  { %2942 = vadd.xlane.f32.xlu1 %v2941_v56 }
0x176c   :  { %3041 = vrot.lane.b32.xlu1 %v6592_v30, %s5709_s3 }
0x1770   :  { %3246 = vrot.lane.b32.xlu1 %v6592_v30, %s5713_s30 }
0x17e4   :  { %v2946_v41 = vpop.xlane.xlu1 %2945 }
0x17e5   :  { %5616 = vrcp.f32 %v2946_v41 }
0x17e8   :  { %v2943_v27 = vpop.xlane.xlu1 %2942 }
0x17e9   :  { %5618 = vrcp.f32 %v2943_v27 }
0x17ec   :  { %v3042_v57 = vpop.permute.xlu1 %3041 }
0x17ef   :  { %v5617_v17 = vpop.eup %5616 }
0x17f0   :  { %v3247_v15 = vpop.permute.xlu1 %3246  ;;  %v2950_v18 = vmul.f32 %v5617_v17, %v5613_v10 }
0x17f1   :  { %4985 = vmatmul.mubr.msk.f32.vlgmr.msra.gmra.mrb[28].mxu0 %vm1514_vm6, %v3247_v15 }
0x17f3   :  { %v5619_v19 = vpop.eup %5618 }
0x17f4   :  { %v2949_v22 = vmul.f32 %v5619_v19, %v5615_v49 }
0x17f6   :  { %4963 = vmatprep.mubr.msk.f32.mxu1 %vm1602_vm9, %v2949_v22 }
0x17f7   :  { %4964 = vmatmul.mubr.msk.f32.vlgmr.msra.gmra.mrb[52].mxu1 %vm1602_vm9, %v2950_v18 }
0x17f8   :  { %5289 = vmatpush3.bf16.xpose.msk.msra.mxu1 %vm6387_vm7, %v5284_v14  ;;  %4970 = vmatprep.mubr.msk.f32.mxu1 %vm1514_vm6, %v3040_v16 }
0x17ff   :  { %4971 = vmatmul.mubr.msk.f32.vlgmr.msra.gmra.mrb[54].mxu1 %vm1514_vm6, %v3042_v57 }
0x18c4   :  { %v4986_v6 = vpop.f32.mrb[28].mxu0 }
0x18c5   :  { %v3326_v38 = vpop.f32.mrb[29].mxu0  ;;  %v3336_v8 = vmul.f32 0.35355338, %v4986_v6 }
0x18c6   :  { %v3335_v34 = vmul.f32 0.35355338, %v3326_v38 }
0x18c7   :  { %v3338_v51 = vadd.f32 %v3336_v8, %v6404_v28 }
0x18c8   :  { %v3337_v62 = vadd.f32 %v3335_v34, %v6407_v12 }
0x18c9   :  { %v3342_v48 = vsel %vm1606_vm8, %v3338_v51, -inf }
0x18ca   :  { %v6648_v53 = vpop.f32.mrb[52].mxu1  ;;  %v3339_v46 = vsel %vm1602_vm9, %v3337_v62, -inf }
0x18cb   :  { %v6650_v60 = vpop.f32.mrb[53].mxu1 }
0x18d2   :  { %v4972_v25 = vpop.f32.mrb[54].mxu1 }
0x18d3   :  { %v3131_v0 = vmul.f32 0.35355338, %v4972_v25  ;;  %v3121_v23 = vpop.f32.mrb[55].mxu1 }
0x18d4   :  { %v3130_v43 = vmul.f32 0.35355338, %v3121_v23 }
0x18d5   :  { %v3133_v45 = vadd.f32 %v3131_v0, %v6404_v28 }
0x18d6   :  { %v3132_v26 = vadd.f32 %v3130_v43, %v6407_v12 }
0x18d7   :  { %v3137_v13 = vsel %vm1606_vm8, %v3133_v45, -inf }
0x18d8   :  { %3138 = vmax.xlane.f32.xlu1 %v3137_v13  ;;  %v3134_v16 = vsel %vm1602_vm9, %v3132_v26, -inf }
0x18d9   :  { %3135 = vmax.xlane.f32.xlu0 %v3134_v16 }
0x18dd   :  { %3340 = vmax.xlane.f32.xlu0 %v3339_v46 }
0x18e1   :  { %3343 = vmax.xlane.f32.xlu0 %v3342_v48 }
0x1965   :  { %v3139_v36 = vpop.xlane.xlu1 %3138 }
0x1966   :  { %v3136_v54 = vpop.xlane.xlu0 %3135  ;;  %v3141_v33 = vsub.f32 %v3133_v45, %v3139_v36  ;;  %v5649_v36 = vld [vmem:[%s6825_s8] sm:$0xff] }
0x1967   :  { %v3140_v55 = vsub.f32 %v3132_v26, %v3136_v54  ;;  %v5648_v54 = vld [vmem:[%s6825_s8 + $0x8] sm:$0x3f] }
0x1968   :  { %v3144_v24 = vmul.f32 1.442695, %v3141_v33 }
0x1969   :  { %v3142_v21 = vmul.f32 1.442695, %v3140_v55 }
0x196a   :  { %v3341_v58 = vpop.xlane.xlu0 %3340 }
0x196b   :  { %v3345_v20 = vsub.f32 %v3337_v62, %v3341_v58 }
0x196d   :  { %v3347_v2 = vmul.f32 1.442695, %v3345_v20 }
0x196e   :  { %v3344_v1 = vpop.xlane.xlu0 %3343 }
0x196f   :  { %5620 = vpow2.f32 %v3347_v2  ;;  %v3346_v12 = vsub.f32 %v3338_v51, %v3344_v1 }
0x1970   :  { %5622 = vpow2.f32 %v3142_v21 }
0x1971   :  { %v3349_v4 = vmul.f32 1.442695, %v3346_v12 }
0x1973   :  { %5624 = vpow2.f32 %v3349_v4 }
0x1974   :  { %5626 = vpow2.f32 %v3144_v24 }
0x1979   :  { %v5621_v28 = vpop.eup %5620 }
0x197a   :  { %v3351_v47 = vsel %vm1602_vm9, %v5621_v28, 0.0  ;;  %v5623_v29 = vpop.eup %5622 }
0x197b   :  { %3352 = vadd.xlane.f32.xlu0 %v3351_v47  ;;  %v3146_v37 = vsel %vm1602_vm9, %v5623_v29, 0.0 }
0x197d   :  { %v5625_v50 = vpop.eup %5624 }
0x197e   :  { %v3354_v40 = vsel %vm1606_vm8, %v5625_v50, 0.0  ;;  %v5627_v44 = vpop.eup %5626 }
0x197f   :  { %3147 = vadd.xlane.f32.xlu0 %v3146_v37  ;;  %3355 = vadd.xlane.f32.xlu1 %v3354_v40  ;;  %v3149_v7 = vsel %vm1606_vm8, %v5627_v44, 0.0 }
0x1983   :  { %3150 = vadd.xlane.f32.xlu1 %v3149_v7 }
0x1994   :  { %5521 = vrot.lane.b32.xlu1 %v6600_v61, %s5715_s6 }
0x1995   :  { %5516 = vrot.lane.b32.xlu0 %v6600_v61, %s5710_s14 }
0x1998   :  { %5526 = vrot.lane.b32.xlu1 %v6600_v61, %s5717_s20 }
0x1999   :  { %3451 = vrot.lane.b32.xlu0 %v6592_v30, %s5716_s12 }
0x199c   :  { %3449 = vrot.lane.b32.xlu1 %v6594_v39, %s5716_s12 }
0x1a08   :  { %v3353_v59 = vpop.xlane.xlu0 %3352 }
0x1a0c   :  { %v3356_v9 = vpop.xlane.xlu1 %3355  ;;  %v3148_v11 = vpop.xlane.xlu0 %3147 }
0x1a0d   :  { %5628 = vrcp.f32 %v3148_v11 }
0x1a0e   :  { %5630 = vrcp.f32 %v3353_v59 }
0x1a10   :  { %v3151_v14 = vpop.xlane.xlu1 %3150  ;;  %v5517_v10 = vpop.permute.xlu0 %5516 }
0x1a11   :  { %5632 = vrcp.f32 %v3151_v14  ;;  %v5519_v52 = vunpack.i.h.bf16 %v5517_v10  ;;  %v5518_v49 = vunpack.i.l.bf16 %v5517_v10  ;;  %v4320_v10 = vld [vmem:[%s6830_s22 + $0x20] sm:$0xff] }
0x1a12   :  { %5634 = vrcp.f32 %v3356_v9 }
0x1a13   :  { %v5290_v56 = vpack.c.bf16 %v5519_v52, %v5518_v49  ;;  %v4321_v52 = vld [vmem:[%s6830_s22 + $0x28] sm:$0xff]  ;;  %v4322_v49 = vld [vmem:[%s6830_s22 + $0x30] sm:$0xff] }
0x1a14   :  { %v5522_v41 = vpop.permute.xlu1 %5521  ;;  %v3452_v45 = vpop.permute.xlu0 %3451 }
0x1a15   :  { %v5524_v27 = vunpack.i.h.bf16 %v5522_v41  ;;  %v5523_v57 = vunpack.i.l.bf16 %v5522_v41  ;;  %5292 = vmatprep.subr.msk.bf16.mxu1 %vm6432_vm12, %v5290_v56  ;;  %v4323_v41 = vld [vmem:[%s6830_s22 + $0x38] sm:$0xff] }
0x1a16   :  { %5295 = vmatpush3.bf16.msk.msra.mxu1 %vm6432_vm12, %v5290_v56  ;;  %v5320_v56 = vpack.c.bf16 %v4321_v52, %v4320_v10  ;;  %v4351_v10 = vld [vmem:[%s6833_s1 + $0xd8] sm:$0xff] }
0x1a17   :  { %v5302_v30 = vpack.c.bf16 %v5524_v27, %v5523_v57  ;;  %v5629_v39 = vpop.eup %5628  ;;  %v5324_v27 = vpack.c.bf16 %v4323_v41, %v4322_v49  ;;  %v4352_v49 = vld [vmem:[%s6833_s1 + $0xe0] sm:$0xff] }
0x1a18   :  { %v5527_v15 = vpop.permute.xlu1 %5526  ;;  %v3154_v17 = vmul.f32 %v5629_v39, %v5623_v29  ;;  %v5631_v19 = vpop.eup %5630 }
0x1a19   :  { %5304 = vmatprep.subr.msk.bf16.mxu1 %vm6432_vm12, %v5302_v30  ;;  %v5529_v22 = vunpack.i.h.bf16 %v5527_v15  ;;  %v5528_v18 = vunpack.i.l.bf16 %v5527_v15  ;;  %v3359_v0 = vmul.f32 %v5631_v19, %v5621_v28 }
0x1a1a   :  { %4977 = vmatprep.mubr.msk.f32.mxu1 %vm1602_vm9, %v3154_v17 }
0x1a1b   :  { %v5633_v6 = vpop.eup %5632  ;;  %v5308_v23 = vpack.c.bf16 %v5529_v22, %v5528_v18 }
0x1a1c   :  { %v3155_v38 = vmul.f32 %v5633_v6, %v5627_v44  ;;  %v5635_v25 = vpop.eup %5634  ;;  %v3450_v43 = vpop.permute.xlu1 %3449 }
0x1a1d   :  { %v3360_v34 = vmul.f32 %v5635_v25, %v5625_v50 }
0x1a1e   :  { %4978 = vmatmul.mubr.msk.f32.vlgmr.msra.gmra.mrb[56].mxu1 %vm1602_vm9, %v3155_v38 }
0x1a1f   :  { %5307 = vmatpush3.bf16.msk.msra.mxu1 %vm6432_vm12, %v5302_v30  ;;  %4991 = vmatprep.mubr.msk.f32.mxu1 %vm1602_vm9, %v3359_v0 }
0x1a20   :  { %5310 = vmatprep.subr.msk.bf16.mxu1 %vm6387_vm7, %v5308_v23 }
0x1a22   :  { %4992 = vmatmul.mubr.msk.f32.vlgmr.msra.gmra.mrb[58].mxu1 %vm1602_vm9, %v3360_v34 }
0x1a23   :  { %4998 = vmatprep.mubr.msk.f32.mxu1 %vm1514_vm6, %v3450_v43  ;;  %v4325_v43 = vld [vmem:[%s6831_s26 + $0x1] ss:$0 sm:$0xff] }
0x1a28   :  { %5313 = vmatpush3.bf16.xpose.msk.msra.mxu1 %vm6387_vm7, %v5308_v23 }
0x1a2f   :  { %4999 = vmatmul.mubr.msk.f32.vlgmr.msra.gmra.mrb[60].mxu1 %vm1514_vm6, %v3452_v45 }
0x1af1   :  { %v4979_v26 = vpop.f32.mrb[56].mxu1 }
0x1af2   :  { %v3235_v13 = vpop.f32.mrb[57].mxu1 }
0x1af5   :  { %v4993_v8 = vpop.f32.mrb[58].mxu1 }
0x1af6   :  { %v3440_v16 = vpop.f32.mrb[59].mxu1 }
0x1b02   :  { %v5000_v62 = vpop.f32.mrb[60].mxu1 }
0x1b03   :  { %v3541_v46 = vmul.f32 0.35355338, %v5000_v62  ;;  %v3531_v51 = vpop.f32.mrb[61].mxu1 }
0x1b04   :  { %v3540_v48 = vmul.f32 0.35355338, %v3531_v51 }
0x1b05   :  { %v3543_v55 = vadd.f32 %v5648_v54, %v3541_v46 }
0x1b06   :  { %v3542_v58 = vadd.f32 %v5649_v36, %v3540_v48 }
0x1b07   :  { %v3547_v20 = vsel %vm1606_vm8, %v3543_v55, -inf }
0x1b08   :  { %3548 = vmax.xlane.f32.xlu0 %v3547_v20  ;;  %v3544_v31 = vsel %vm1602_vm9, %v3542_v58, -inf }
0x1b09   :  { %3545 = vmax.xlane.f32.xlu1 %v3544_v31  ;;  %v4332_v31 = vld [vmem:[%s6832_s28 + $0x20] sm:$0xff] }
0x1b1a   :  { %5531 = vrot.lane.b32.xlu1 %v6600_v61, %s5718_s15 }
0x1b1e   :  { %3658 = vrot.lane.b32.xlu1 %v4979_v26, %s5719_s16 }
0x1b22   :  { %3664 = vrot.lane.b32.xlu1 %v3440_v16, %s5720_s18 }
0x1b26   :  { %3666 = vrot.lane.b32.xlu1 %v4993_v8, %s5720_s18 }
0x1b95   :  { %v3549_v33 = vpop.xlane.xlu0 %3548 }
0x1b96   :  { %v3551_v21 = vsub.f32 %v3543_v55, %v3549_v33  ;;  %v3546_v2 = vpop.xlane.xlu1 %3545  ;;  %v4333_v33 = vld [vmem:[%s6832_s28 + $0x28] sm:$0xff] }
0x1b97   :  { %v3550_v1 = vsub.f32 %v3542_v58, %v3546_v2  ;;  %v4334_v2 = vld [vmem:[%s6832_s28 + $0x30] sm:$0xff] }
0x1b98   :  { %v3554_v12 = vmul.f32 1.442695, %v3551_v21  ;;  %v5328_v21 = vpack.c.bf16 %v4333_v33, %v4332_v31 }
0x1b99   :  { %v3552_v24 = vmul.f32 1.442695, %v3550_v1  ;;  %v4335_v1 = vld [vmem:[%s6832_s28 + $0x38] sm:$0xff] }
0x1b9a   :  { %v5532_v4 = vpop.permute.xlu1 %5531  ;;  %5329 = vmatprep.subr.bf16.mxu1 %v5328_v21 }
0x1b9b   :  { %5636 = vpow2.f32 %v3552_v24  ;;  %v5534_v28 = vunpack.i.h.bf16 %v5532_v4  ;;  %v5533_v47 = vunpack.i.l.bf16 %v5532_v4  ;;  %5331 = vmatpush3.bf16.msra.mxu1 %v5328_v21  ;;  %v4340_v24 = vld [vmem:[%s6833_s1 + $0x80] sm:$0xff]  ;;  %v4341_v4 = vld [vmem:[%s6833_s1 + $0x88] sm:$0xff] }
0x1b9c   :  { %5638 = vpow2.f32 %v3554_v12  ;;  %v5332_v12 = vpack.c.bf16 %v4335_v1, %v4334_v2  ;;  %v4026_v2 = vld [vmem:[%s6838_s11] sm:$0x3] }
0x1b9d   :  { %v5314_v29 = vpack.c.bf16 %v5534_v28, %v5533_v47  ;;  %v4342_v28 = vld [vmem:[%s6833_s1 + $0x90] sm:$0xff]  ;;  %v5336_v47 = vpack.c.bf16 %v4341_v4, %v4340_v24  ;;  %v4360_v1 = vld [vmem:[%s5873_s29] ss:$0 sm:$0xff]  ;;  %s5650_s29 = scalar_lea.vmem %s4145_s5, 32 }
0x1b9e   :  { %v3659_v39 = vpop.permute.xlu1 %3658  ;;  %5333 = vmatprep.subr.bf16.mxu1 %v5332_v12  ;;  %v4361_v4 = vld [vmem:[%s5878_s4] ss:$0 sm:$0xff]  ;;  %p5651_p0 = scmp.ne.s32.totalorder %s4145_s5, %s5650_s29  ;;  %p5656_p2 = scmp.lt.s32.totalorder %s5650_s29, %s5650_s29 }
0x1b9f   :  { %5316 = vmatprep.subr.msk.bf16.mxu0 %vm6432_vm12, %v5314_v29  ;;  %v3679_v6 = vsel %vm1514_vm6, %v6648_v53, %v3659_v39  ;;  %5335 = vmatpush3.bf16.msra.mxu1 %v5332_v12 }
0x1ba0   :  { %5319 = vmatpush3.bf16.msk.msra.mxu0 %vm6432_vm12, %v5314_v29  ;;  %5368 = vmatprep.subr.bf16.mxu1 %v5704_v32  ;;  %v4343_v29 = vld [vmem:[%s6833_s1 + $0x98] sm:$0xff]  ;;  %p5657_p3 = por %p5656_p2, %p5655_p1 }
0x1ba1   :  { %5321 = vmatprep.subr.bf16.mxu0 %v5320_v56  ;;  %v4347_v32 = vld [vmem:[%s6833_s1 + $0xb8] sm:$0xff] }
0x1ba2   :  { %v3665_v15 = vpop.permute.xlu1 %3664  ;;  %p5658_p4 = pnand %p5657_p3, %p5651_p0 }
0x1ba5   :  { %v5637_v61 = vpop.eup %5636 }
0x1ba6   :  { %v3556_v50 = vsel %vm1602_vm9, %v5637_v61, 0.0  ;;  %v5639_v37 = vpop.eup %5638  ;;  %v3667_v19 = vpop.permute.xlu1 %3666 }
0x1ba7   :  { %3557 = vadd.xlane.f32.xlu0 %v3556_v50  ;;  %v3559_v40 = vsel %vm1606_vm8, %v5639_v37, 0.0  ;;  %v3681_v0 = vsel %vm2356_vm13, %v3679_v6, %v3667_v19  ;;  %v4344_v50 = vld [vmem:[%s6833_s1 + $0xa0] sm:$0xff] }
0x1ba8   :  { %v4331_v6 = vld [vmem:[%s6835_s7 + $0x1] ss:$0 sm:$0xff] }
0x1bab   :  { %3560 = vadd.xlane.f32.xlu0 %v3559_v40 }
0x1bc1   :  { %3656 = vrot.lane.b32.xlu0 %v3235_v13, %s5719_s16 }
0x1c34   :  { %v3558_v44 = vpop.xlane.xlu0 %3557 }
0x1c35   :  { %5640 = vrcp.f32 %v3558_v44  ;;  %v4346_v44 = vld [vmem:[%s6833_s1 + $0xb0] sm:$0xff] }
0x1c38   :  { %v3561_v7 = vpop.xlane.xlu0 %3560 }
0x1c39   :  { %5642 = vrcp.f32 %v3561_v7  ;;  %v5348_v7 = vpack.c.bf16 %v4347_v32, %v4346_v44 }
0x1c3c   :  { %v3657_v17 = vpop.permute.xlu0 %3656 }
0x1c3d   :  { %v3678_v22 = vsel %vm1514_vm6, %v6650_v60, %v3657_v17 }
0x1c3e   :  { %v3680_v38 = vsel %vm2356_vm13, %v3678_v22, %v3665_v15  ;;  %v4330_v22 = vld [vmem:[%s6834_s2 + $0x1] ss:$0 sm:$0xff] }
0x1c3f   :  { %v5641_v59 = vpop.eup %5640 }
0x1c40   :  { %v3564_v9 = vmul.f32 %v5641_v59, %v5637_v61  ;;  %v5340_v61 = vpack.c.bf16 %v4343_v29, %v4342_v28  ;;  %v4348_v59 = vld [vmem:[%s6833_s1 + $0xc0] sm:$0xff] }
0x1c42   :  { %5005 = vmatprep.mubr.msk.f32.mxu0 %vm1602_vm9, %v3564_v9  ;;  %v4349_v9 = vld [vmem:[%s6833_s1 + $0xc8] sm:$0xff] }
0x1c43   :  { %v5643_v11 = vpop.eup %5642 }
0x1c44   :  { %v3565_v14 = vmul.f32 %v5643_v11, %v5639_v37  ;;  %v4345_v37 = vld [vmem:[%s6833_s1 + $0xa8] sm:$0xff]  ;;  %v5352_v11 = vpack.c.bf16 %v4349_v9, %v4348_v59 }
0x1c45   :  { %v5344_v40 = vpack.c.bf16 %v4345_v37, %v4344_v50 }
0x1c46   :  { %5006 = vmatmul.mubr.msk.f32.vlgmr.msra.gmra.mrb[30].mxu0 %vm1602_vm9, %v3565_v14  ;;  %v4350_v14 = vld [vmem:[%s6833_s1 + $0xd0] sm:$0xff] }
0x1c47   :  { %5323 = vmatpush3.bf16.msra.mxu0 %v5320_v56  ;;  %v5356_v52 = vpack.c.bf16 %v4351_v10, %v4350_v14  ;;  %v4353_v56 = vld [vmem:[%s6833_s1 + $0xe8] sm:$0xff] }
0x1c48   :  { %5325 = vmatprep.subr.bf16.mxu0 %v5324_v27  ;;  %v5360_v41 = vpack.c.bf16 %v4353_v56, %v4352_v49 }
0x1c4b   :  { %5327 = vmatpush3.bf16.msra.mxu0 %v5324_v27 }
0x1c4c   :  { %5337 = vmatprep.subr.bf16.mxu0 %v5336_v47 }
0x1d19   :  { %v5007_v57 = vpop.f32.mrb[30].mxu0 }
0x1d1a   :  { %3674 = vrot.lane.b32.xlu1 %v5007_v57, %s5721_s23  ;;  %v3645_v30 = vpop.f32.mrb[31].mxu0 }
0x1d1b   :  { %3672 = vrot.lane.b32.xlu0 %v3645_v30, %s5721_s23 }
0x1d8c   :  { %v3675_v18 = vpop.permute.xlu1 %3674 }
0x1d8d   :  { %v3673_v25 = vpop.permute.xlu0 %3672  ;;  %v3683_v34 = vsel %vm2359_vm14, %v3681_v0, %v3675_v18 }
0x1d8e   :  { %v3682_v23 = vsel %vm2359_vm14, %v3680_v38, %v3673_v25 }
0x1d8f   :  { %5016 = vmatprep.mubr.msk.f32.mxu0 %vm521_vm2, %v3682_v23 }
0x1d90   :  { %5017 = vmatmul.mubr.msk.f32.vlgmr.msra.gmra.mrb[32].mxu0 %vm521_vm2, %v3683_v34 }
0x1d91   :  { %5339 = vmatpush3.bf16.msra.mxu0 %v5336_v47 }
0x1d92   :  { %5341 = vmatprep.subr.bf16.mxu0 %v5340_v61 }
0x1d95   :  { %5343 = vmatpush3.bf16.msra.mxu0 %v5340_v61 }
0x1d96   :  { %5345 = vmatprep.subr.bf16.mxu0 %v5344_v40 }
0x1d99   :  { %5347 = vmatpush3.bf16.msra.mxu0 %v5344_v40 }
0x1d9a   :  { %5349 = vmatprep.subr.bf16.mxu0 %v5348_v7 }
0x1d9d   :  { %5351 = vmatpush3.bf16.msra.mxu0 %v5348_v7 }
0x1d9e   :  { %5353 = vmatprep.subr.bf16.mxu0 %v5352_v11 }
0x1da1   :  { %5355 = vmatpush3.bf16.msra.mxu0 %v5352_v11 }
0x1da2   :  { %5357 = vmatprep.subr.bf16.mxu0 %v5356_v52 }
0x1da5   :  { %5359 = vmatpush3.bf16.msra.mxu0 %v5356_v52 }
0x1da6   :  { %5361 = vmatprep.subr.bf16.mxu0 %v5360_v41 }
0x1da9   :  { %5363 = vmatpush3.bf16.msra.mxu0 %v5360_v41 }
0x1e63   :  { %v5018_v45 = vpop.f32.mrb[32].mxu0 }
0x1e64   :  { %v3775_v60 = vadd.f32 %v5018_v45, %v4325_v43  ;;  %v3769_v26 = vpop.f32.mrb[33].mxu0  ;;  %v4354_v45 = vld [vmem:[%s6833_s1 + $0xf0] sm:$0xff] }
0x1e65   :  { %v3770_v13 = vadd.f32 %v4325_v43, %v3769_v26 }
0x1e66   :  { %v6728_v53 = vadd.f32 %v3775_v60, %v6571_v63  ;;  %v4355_v60 = vld [vmem:[%s6833_s1 + $0xf8] sm:$0xff] }
0x1e67   :  { %v6731_v8 = vadd.f32 %v3770_v13, %v6573_v3  ;;  %v5364_v26 = vpack.c.bf16 %v4355_v60, %v4354_v45  ;;  %v4337_v13 = vld [vmem:[%s6836_s10 + $0x1] ss:$0 sm:$0xff] }
0x1e68   :  { %v3787_v16 = vsel %vm1376_vm5, %v6728_v53, 0.0 }
0x1e69   :  { %3788 = vadd.xlane.f32.xlu1 %v3787_v16  ;;  %v3784_v62 = vsel %vm521_vm2, %v6731_v8, 0.0  ;;  %5365 = vmatprep.subr.bf16.mxu0 %v5364_v26 }
0x1e6a   :  { %3785 = vadd.xlane.f32.xlu0 %v3784_v62  ;;  %5367 = vmatpush3.bf16.msra.mxu0 %v5364_v26 }
0x1ef6   :  { %v3789_v46 = vpop.xlane.xlu1 %3788 }
0x1ef7   :  { %v3791_v51 = vmul.f32 0.03125, %v3789_v46  ;;  %v3786_v48 = vpop.xlane.xlu0 %3785 }
0x1ef8   :  { %v3790_v63 = vmul.f32 0.03125, %v3786_v48 }
0x1ef9   :  { %v6738_v54 = vsub.f32 %v6728_v53, %v3791_v51 }
0x1efa   :  { %v6741_v3 = vsub.f32 %v6731_v8, %v3790_v63 }
0x1efb   :  { %v3795_v58 = vmul.f32 %v6738_v54, %v6738_v54 }
0x1efc   :  { %v3794_v55 = vmul.f32 %v6741_v3, %v6741_v3 }
0x1efd   :  { %v3799_v20 = vsel %vm1376_vm5, %v3795_v58, 0.0 }
0x1efe   :  { %v3796_v36 = vsel %vm521_vm2, %v3794_v55, 0.0  ;;  %v4357_v55 = vld [vmem:[%s5868_s17 + $0x1] ss:$0 sm:$0xff]  ;;  %s5723_s17 = smov 32  }
0x1eff   :  { %3797 = vadd.xlane.f32.xlu0 %v3796_v36 }
0x1f03   :  { %3800 = vadd.xlane.f32.xlu0 %v3799_v20 }
0x1f8c   :  { %v3798_v27 = vpop.xlane.xlu0 %3797 }
0x1f8d   :  { %v3802_v57 = vmul.f32 0.03125, %v3798_v27 }
0x1f8f   :  { %v3804_v30 = vadd.f32 1e-05, %v3802_v57 }
0x1f90   :  { %v3801_v39 = vpop.xlane.xlu0 %3800 }
0x1f91   :  { %5644 = vrsqrt.f32 %v3804_v30  ;;  %v3803_v15 = vmul.f32 0.03125, %v3801_v39 }
0x1f93   :  { %v3805_v17 = vadd.f32 1e-05, %v3803_v15 }
0x1f95   :  { %5646 = vrsqrt.f32 %v3805_v17 }
0x1f9b   :  { %v5645_v19 = vpop.eup %5644 }
0x1f9c   :  { %v3808_v18 = vmul.f32 %v5645_v19, %v6741_v3  ;;  %v5722_v3 = vmov 0  }
0x1f9d   :  { %5535 = vset.pattern.permute.xlu0 %v5722_v3 }
0x1f9e   :  { %v3816_v38 = vmul.f32 %v4330_v22, %v3808_v18 }
0x1f9f   :  { %v5647_v25 = vpop.eup %5646 }
0x1fa0   :  { %v3809_v0 = vmul.f32 %v5647_v25, %v6738_v54  ;;  %v3824_v23 = vadd.f32 %v4331_v6, %v3816_v38  ;;  %v4103_v54 = vld [vmem:[%s6837_s27] sm:$0x3] }
0x1fa1   :  { %4107 = vperm.xlu0 %5535, %v4103_v54  }
0x1fa2   :  { %v3817_v34 = vmul.f32 %v4330_v22, %v3809_v0  ;;  %5027 = vmatprep.mubr.msk.f32.mxu1 %vm521_vm2, %v3824_v23 }
0x1fa4   :  { %v3825_v43 = vadd.f32 %v4331_v6, %v3817_v34 }
0x1fa6   :  { %5028 = vmatmul.mubr.msk.f32.vlgmr.msra.gmra.mrb[62].mxu1 %vm521_vm2, %v3825_v43 }
0x1fa7   :  { %5069 = vmatprep.mubr.msk.f32.mxu1 %vm5705_vm3, %v5706_v42 }
0x2020   :  { %v4108_v12 = vpop.permute.xlu0 %4107 }
0x2021   :  { %v4116_v24 = vmul.f32 %v4360_v1, %v4108_v12 }
0x2023   :  { %v4124_v28 = vadd.f32 %v4361_v4, %v4116_v24 }
0x2025   :  { %v4125_v29 = vmax.f32 %v4124_v28, 0.0 }
0x2079   :  { %v5029_v16 = vpop.f32.mrb[62].mxu1 }
0x207a   :  { %v3917_v62 = vadd.f32 %v5029_v16, %v4337_v13  ;;  %v3911_v46 = vpop.f32.mrb[63].mxu1 }
0x207b   :  { %v3912_v51 = vadd.f32 %v4337_v13, %v3911_v46 }
0x207c   :  { %v3921_v63 = vmax.f32 %v3917_v62, 0.0 }
0x207d   :  { %v3920_v48 = vmax.f32 %v3912_v51, 0.0 }
0x207f   :  { %5062 = vmatprep.mubr.f32.mxu0 %v3920_v48 }
0x2080   :  { %5063 = vmatmul.mubr.f32.vlgmr.msra.gmra.mrb[34].mxu0 %v3921_v63 }
0x2153   :  { %v5064_v42 = vpop.f32.mrb[34].mxu0 }
0x2154   :  { %v4015_v36 = vadd.f32 %v5064_v42, %v6728_v53  ;;  %v4005_v58 = vpop.f32.mrb[35].mxu0 }
0x2155   :  { %v4014_v20 = vadd.f32 %v4005_v58, %v6731_v8 }
0x2156   :  { %v4025_v31 = vadd.f32 %v4357_v55, %v4015_v36 }
0x2157   :  { %v4024_v33 = vadd.f32 %v4357_v55, %v4014_v20 }
0x2159   :  { %v5369_v21 = vpack.c.bf16 %v4025_v31, %v4024_v33 }
0x215b   :  { %5371 = vmatpush3.bf16.msk.msra.mxu1 %vm6432_vm12, %v5369_v21 }
0x215e   :  { %5070 = vmatmul.mubr.msk.f32.vlgmr.msra.gmra.mrb[64].mxu1 %vm1602_vm9, %v4026_v2 }
0x2231   :  { %v4099_v47 = vpop.f32.mrb[64].mxu1 }
0x2232   :  { %4127 = vrot.lane.b32.xlu1 %v4099_v47, %s5723_s17  ;;  %v5071_v53 = vpop.f32.mrb[65].mxu1 }
0x2236   :  { %4131 = vrot.lane.b32.xlu1 %v4125_v29, %s5711_s19 }
0x22a4   :  { %v4128_v8 = vpop.permute.xlu1 %4127 }
0x22a5   :  { %v4134_v35 = vsel %vm521_vm2, %v6343_v5, %v4128_v8 }
0x22a8   :  { %v4132_v61 = vpop.permute.xlu1 %4131 }
0x22a9   :  { %v4135_v50 = vsel %vm1287_vm4, %v4134_v35, %v4132_v61 }
0x22aa   :  { %4137 = vst.msk [vmem:[#allocation2] sm:$0x3] %vm4136_vm15, %v4135_v50 }
0x22ab   :  { %5661 = shalt.err (!%p5658_p4)
}
0x22ac   :  { %s5662_s4 = scalar_lea.hbm %s5883_s25, 32 }
0x22ad   :  { %p5663_p5 = scmp.ne.s32.totalorder %s5883_s25, %s5662_s4  ;;  %p5666_p6 = scmp.lt.u32.totalorder %s5662_s4, %s5883_s25 }
0x22af   :  { %p5668_p7 = pnand %p5666_p6, %p5663_p5 }
0x22b1   :  { %5671 = shalt.err (!%p5668_p7)
}
0x22b2   :  { %4147 = dma.vmem_to_hbm [thread:$0]  %s4145_s5, 32, %s5883_s25, [#allocation3]  }
0x22b3   :  { %5672 = dma.done.wait [#allocation3], 32  }
0x22b4   :  { %5673 = vsyncadd [#allocation3], 4294967264 }
0x22b5   :  { %4151 = vsyncpa [#allocation3], 1 }

</bundles_post_ra>
